<compile_context>
chip_gen: v7x
topology: tpu7x:2x2x1
jax: 0.10.0
libtpu: 0.0.40
codegen_flags: <defaults>
</compile_context>

<pallas_src>
import jax
import jax.numpy as jnp
from jax.experimental import pallas as pl
from jax.experimental.pallas import tpu as pltpu

# ---- module hyper-parameters (from cv1/pl1/cv2/lstm1/fc1/fc2 classes) ------
C1_IN, C1_OUT, K1, S1 = 1, 12, 8, 2      # conv1
POOL = 2                                 # pool1 (2x2, stride 2)
C2_OUT, K2, S2 = 4, 4, 1                 # conv2
HIDDEN, LAYERS = 80, 2                   # LSTM, bidirectional
LSTM_HP = 128                            # hidden padded to a full lane register
GATES = 4 * LSTM_HP                      # 512  (i,f,g,o blocks, 128 each)
FC1_OUT = 120
N_CHARS = 12                             # n_chars constructor argument
BN_EPS = 1e-5


def conv_out(s, k, stride):
    return (s - k) // stride + 1


def round_up(x, m):
    return ((x + m - 1) // m) * m


def pick_tile(m, target, align=128):
    """Largest tile <= target that keeps padding small for tiny problems."""
    return min(target, max(align, round_up(m, align)))


# ----------------------------- Pallas kernels -------------------------------

def _conv1_pool_kernel(p_ref, w_ref, b_ref, o_ref):
    """maxpool2x2(relu(BN(conv1(x)))) with BN folded into W/b.

    p_ref: (4, K, TILE_M) bf16 corner-blocked patches (corner = 2x2 window pos)
    w_ref: (C, K) bf16;  b_ref: (C, 1) f32;  o_ref: (C, TILE_M) f32.
    The shared bias + relu commute with the max, so: relu(max_c(W@P_c) + b).
    """
    y = jnp.dot(w_ref[...], p_ref[0], preferred_element_type=jnp.float32)
    for c in range(1, POOL * POOL):
        y = jnp.maximum(
            y, jnp.dot(w_ref[...], p_ref[c], preferred_element_type=jnp.float32))
    o_ref[...] = jnp.maximum(y + b_ref[...], 0.0).astype(o_ref.dtype)


def conv1_bn_relu_pool(patches, w, b, tile_m=2048):
    _, K, M = patches.shape
    C = w.shape[0]
    tile_m = pick_tile(M, tile_m)
    m_pad = round_up(M, tile_m)
    if m_pad != M:
        patches = jnp.pad(patches, ((0, 0), (0, 0), (0, m_pad - M)))
    out = pl.pallas_call(
        _conv1_pool_kernel,
        out_shape=jax.ShapeDtypeStruct((C, m_pad), jnp.float32),
        grid=(m_pad // tile_m,),
        in_specs=[pl.BlockSpec((POOL * POOL, K, tile_m), lambda i: (0, 0, i)),
                  pl.BlockSpec((C, K), lambda i: (0, 0)),
                  pl.BlockSpec((C, 1), lambda i: (0, 0))],
        out_specs=pl.BlockSpec((C, tile_m), lambda i: (0, i)),
        compiler_params=pltpu.CompilerParams(
            dimension_semantics=("parallel",)),
    )(patches, w, b)
    return out[:, :M]


def _conv_bn_relu_kernel(p_ref, w_ref, b_ref, o_ref):
    """relu(W @ P + b), BN folded into W/b.  Lane-dense along M."""
    y = jnp.dot(w_ref[...], p_ref[...], preferred_element_type=jnp.float32)
    o_ref[...] = jnp.maximum(y + b_ref[...], 0.0).astype(o_ref.dtype)


def conv_bn_relu(patches_t, w, b, tile_m=2048):
    K, M = patches_t.shape
    C = w.shape[0]
    tile_m = pick_tile(M, tile_m)
    m_pad = round_up(M, tile_m)
    if m_pad != M:
        patches_t = jnp.pad(patches_t, ((0, 0), (0, m_pad - M)))
    out = pl.pallas_call(
        _conv_bn_relu_kernel,
        out_shape=jax.ShapeDtypeStruct((C, m_pad), jnp.float32),
        grid=(m_pad // tile_m,),
        in_specs=[pl.BlockSpec((K, tile_m), lambda i: (0, i)),
                  pl.BlockSpec((C, K), lambda i: (0, 0)),
                  pl.BlockSpec((C, 1), lambda i: (0, 0))],
        out_specs=pl.BlockSpec((C, tile_m), lambda i: (0, i)),
        compiler_params=pltpu.CompilerParams(
            dimension_semantics=("parallel",)),
    )(patches_t, w, b)
    return out[:, :M]


def _lstm_proj_kernel(x_ref, w_ref, b_ref, gf_ref, gb_ref):
    """Fused input projection for BOTH directions: g = x @ [Wih_f|Wih_b] + b.

    x_ref: (TILE_R, In);  w_ref: (In, 8*Hp);  b_ref: (1, 8*Hp);
    gf_ref/gb_ref: (TILE_R, 4*Hp) per-direction pre-activations (lane-dense).
    """
    g = jnp.dot(x_ref[...], w_ref[...],
                preferred_element_type=jnp.float32) + b_ref[...]
    gf_ref[...] = g[:, :GATES]
    gb_ref[...] = g[:, GATES:]


def lstm_input_proj(x2d, w_cat, b_cat, tile_r=256):
    R, In = x2d.shape
    tile_r = min(tile_r, max(8, round_up(R, 8)))
    r_pad = round_up(R, tile_r)
    if r_pad != R:
        x2d = jnp.pad(x2d, ((0, r_pad - R), (0, 0)))
    gf, gb = pl.pallas_call(
        _lstm_proj_kernel,
        out_shape=(jax.ShapeDtypeStruct((r_pad, GATES), jnp.float32),
                   jax.ShapeDtypeStruct((r_pad, GATES), jnp.float32)),
        grid=(r_pad // tile_r,),
        in_specs=[pl.BlockSpec((tile_r, In), lambda i: (i, 0)),
                  pl.BlockSpec((In, 2 * GATES), lambda i: (0, 0)),
                  pl.BlockSpec((1, 2 * GATES), lambda i: (0, 0))],
        out_specs=(pl.BlockSpec((tile_r, GATES), lambda i: (i, 0)),
                   pl.BlockSpec((tile_r, GATES), lambda i: (i, 0))),
        compiler_params=pltpu.CompilerParams(
            dimension_semantics=("parallel",)),
    )(x2d, w_cat, b_cat)
    return gf[:R], gb[:R]


def _bilstm_rec_kernel(gf_ref, gb_ref, whh_ref, of_ref, ob_ref,
                       h_ref, cf_ref, cb_ref):
    """One timestep of the fused fwd+bwd recurrence (grid axis = time).

    gf_ref: (1, N, 4*Hp) fwd gates for time t; gb_ref: same for time T-1-t.
    whh_ref: (2*Hp, 8*Hp) block-diag(W_hh_f, W_hh_b) so one K=256 matmul
             covers both directions per step (fills the 256-deep MXU).
    of_ref/ob_ref: (1, N, Hp) outputs at times t / T-1-t.
    h_ref (N, 2*Hp), cf_ref/cb_ref (N, Hp): persistent state scratch.
    PyTorch gate order along 4*Hp: i, f, g, o (each zero-padded 80 -> 128).
    """
    Hp = LSTM_HP
    t = pl.program_id(0)

    @pl.when(t == 0)
    def _():
        h_ref[...] = jnp.zeros_like(h_ref)
        cf_ref[...] = jnp.zeros_like(cf_ref)
        cb_ref[...] = jnp.zeros_like(cb_ref)

    rec = jnp.dot(h_ref[...], whh_ref[...], preferred_element_type=jnp.float32)
    g_f = gf_ref[0] + rec[:, :GATES]
    g_b = gb_ref[0] + rec[:, GATES:]

    def cell(g, c):
        i_g = jax.nn.sigmoid(g[:, 0 * Hp:1 * Hp])
        f_g = jax.nn.sigmoid(g[:, 1 * Hp:2 * Hp])
        g_g = jnp.tanh(g[:, 2 * Hp:3 * Hp])
        o_g = jax.nn.sigmoid(g[:, 3 * Hp:4 * Hp])
        c_new = f_g * c + i_g * g_g
        return o_g * jnp.tanh(c_new), c_new

    hf, cf = cell(g_f, cf_ref[...])       # two independent chains: their
    hb, cb = cell(g_b, cb_ref[...])       # MXU/EUP latencies overlap
    cf_ref[...] = cf
    cb_ref[...] = cb
    h_ref[:, :Hp] = hf
    h_ref[:, Hp:] = hb
    of_ref[0] = hf
    ob_ref[0] = hb


def bilstm_layer(x_seq, w_ih_cat, b_cat, whh_bd):
    """One bidirectional LSTM layer: tiled input projection + streamed recurrence."""
    T, N, In = x_seq.shape
    gf, gb = lstm_input_proj(x_seq.reshape(T * N, In), w_ih_cat, b_cat)
    gf = gf.reshape(T, N, GATES)
    gb = gb.reshape(T, N, GATES)
    out_sd = jax.ShapeDtypeStruct((T, N, LSTM_HP), jnp.float32)
    fwd, bwd = pl.pallas_call(
        _bilstm_rec_kernel,
        out_shape=(out_sd, out_sd),
        grid=(T,),
        in_specs=[pl.BlockSpec((1, N, GATES), lambda t: (t, 0, 0)),
                  pl.BlockSpec((1, N, GATES), lambda t: (T - 1 - t, 0, 0)),
                  pl.BlockSpec((2 * LSTM_HP, 2 * GATES), lambda t: (0, 0))],
        out_specs=(pl.BlockSpec((1, N, LSTM_HP), lambda t: (t, 0, 0)),
                   pl.BlockSpec((1, N, LSTM_HP), lambda t: (T - 1 - t, 0, 0))),
        scratch_shapes=[pltpu.VMEM((N, 2 * LSTM_HP), jnp.float32),
                        pltpu.VMEM((N, LSTM_HP), jnp.float32),
                        pltpu.VMEM((N, LSTM_HP), jnp.float32)],
        compiler_params=pltpu.CompilerParams(
            dimension_semantics=("arbitrary",)),
    )(gf, gb, whh_bd)
    return fwd, bwd


def _head_kernel(x_ref, w1_ref, b1_ref, w2_ref, b2_ref, o_ref):
    """fc1 -> (dropout=identity) -> fc2 -> (dropout=identity) -> log_softmax.

    Transposed: x_ref (2*Hp, TILE_M), w1 (FC1, 2*Hp), w2 (C, FC1),
    o_ref (C, TILE_M) -- lane-dense stores, softmax over the class sublanes.
    """
    h = jnp.dot(w1_ref[...], x_ref[...],
                preferred_element_type=jnp.float32) + b1_ref[...]
    z = jnp.dot(w2_ref[...], h,
                preferred_element_type=jnp.float32) + b2_ref[...]
    m = jnp.max(z, axis=0, keepdims=True)
    zs = z - m
    lse = jnp.log(jnp.sum(jnp.exp(zs), axis=0, keepdims=True))
    o_ref[...] = (zs - lse).astype(o_ref.dtype)


def head(x_t, w1, b1, w2, b2, tile_m=1024):
    F2, M = x_t.shape
    C = w2.shape[0]
    tile_m = pick_tile(M, tile_m)
    m_pad = round_up(M, tile_m)
    if m_pad != M:
        x_t = jnp.pad(x_t, ((0, 0), (0, m_pad - M)))
    out = pl.pallas_call(
        _head_kernel,
        out_shape=jax.ShapeDtypeStruct((C, m_pad), jnp.float32),
        grid=(m_pad // tile_m,),
        in_specs=[pl.BlockSpec((F2, tile_m), lambda i: (0, i)),
                  pl.BlockSpec(w1.shape, lambda i: (0, 0)),
                  pl.BlockSpec(b1.shape, lambda i: (0, 0)),
                  pl.BlockSpec(w2.shape, lambda i: (0, 0)),
                  pl.BlockSpec(b2.shape, lambda i: (0, 0))],
        out_specs=pl.BlockSpec((C, tile_m), lambda i: (0, i)),
        compiler_params=pltpu.CompilerParams(
            dimension_semantics=("parallel",)),
    )(x_t, w1, b1, w2, b2)
    return out[:, :M]


# ------------------------------- glue (JAX) ---------------------------------

def conv1_pool_patches(x_nhw, hp1, wp1):
    """Corner-blocked im2col for the fused conv1+pool kernel.

    x: (N, H, W) single-channel input -> (4, K1*K1, N*hp1*wp1) bf16 where
    axis0 = 2x2 pooling-window corner (dh*2+dw); column order (n, hp, wp).
    """
    n = x_nhw.shape[0]
    corners = []
    for dh in range(POOL):
        for dw in range(POOL):
            cols = []
            for kh in range(K1):
                for kw in range(K1):
                    r0 = S1 * dh + kh
                    c0 = S1 * dw + kw
                    step = S1 * POOL
                    cols.append(x_nhw[:,
                                      r0:r0 + step * (hp1 - 1) + 1:step,
                                      c0:c0 + step * (wp1 - 1) + 1:step])
            corners.append(jnp.stack(cols, axis=0))       # (K1*K1, N, hp1, wp1)
    p = jnp.stack(corners, axis=0)                        # (4, K1*K1, N, hp1, wp1)
    # TODO(synk): build these patch tiles in-kernel (strided DMA) to avoid the
    #             expanded HBM intermediate entirely; bf16 halves it meanwhile.
    return p.reshape(POOL * POOL, K1 * K1, n * hp1 * wp1).astype(jnp.bfloat16)


def im2col_cmajor(x_cnhw, k, stride):
    """x: (C, N, H, W) -> patches (C*k*k, N*Ho*Wo); K order (c, kh, kw)."""
    C, N, H, W = x_cnhw.shape
    Ho = conv_out(H, k, stride)
    Wo = conv_out(W, k, stride)
    cols = []
    for kh in range(k):
        for kw in range(k):
            cols.append(x_cnhw[:, :,
                               kh:kh + stride * (Ho - 1) + 1:stride,
                               kw:kw + stride * (Wo - 1) + 1:stride])
    p = jnp.stack(cols, axis=1)                     # (C, k*k, N, Ho, Wo)
    return p.reshape(C * k * k, N * Ho * Wo), Ho, Wo


def convnet_forward(x, params):
    N, _, H, W = x.shape
    Ho1, Wo1 = conv_out(H, K1, S1), conv_out(W, K1, S1)
    Hp1, Wp1 = Ho1 // POOL, Wo1 // POOL

    # conv1 -> bn1 (folded) -> relu -> maxpool(2): one fused Pallas kernel.
    p1 = conv1_pool_patches(x[:, 0], Hp1, Wp1)
    y1 = conv1_bn_relu_pool(p1, params['w1'], params['b1'])   # (C1, N*Hp1*Wp1)
    y1 = y1.reshape(C1_OUT, N, Hp1, Wp1)                      # channel-major

    # conv2 -> bn2 (folded) -> relu
    p2, Ho2, Wo2 = im2col_cmajor(y1, K2, S2)
    y2 = conv_bn_relu(p2.astype(jnp.bfloat16), params['w2'], params['b2'])
    y2 = y2.reshape(C2_OUT, N, Ho2, Wo2)

    # torch: permute(0,3,1,2) + reshape  ==  time-major (W, N, C*H) features,
    # zero-padded to the 128-aligned LSTM input width.
    feat = jnp.transpose(y2, (3, 1, 0, 2)).reshape(Wo2, N, C2_OUT * Ho2)
    in0_pad = params['lstm_wih_l0'].shape[0]
    feat = jnp.pad(feat, ((0, 0), (0, 0), (0, in0_pad - C2_OUT * Ho2)))

    # 2-layer bidirectional LSTM.  Hidden kept zero-padded (80 -> 128) between
    # layers and into the head (padded weight rows/cols are zero), so all
    # contractions stay 128-lane aligned and no [:80] slicing copies are made.
    layer_in = feat
    for l in range(LAYERS):
        fwd, bwd = bilstm_layer(layer_in,
                                params[f'lstm_wih_l{l}'],
                                params[f'lstm_b_l{l}'],
                                params[f'lstm_whh_l{l}'])
        layer_in = jnp.concatenate([fwd, bwd], axis=-1)       # (T, N, 2*Hp)
        # TODO(synk): LSTM inter-layer dropout (p=0.3) is training-only; identity here.

    # fc1 -> fc2 -> log_softmax head (transposed, classes on sublanes)
    T = layer_in.shape[0]
    x_t = jnp.transpose(layer_in, (2, 1, 0)).reshape(2 * LSTM_HP, N * T)
    logp_t = head(x_t, params['fc1_w'], params['fc1_b'],
                  params['fc2_w'], params['fc2_b'])           # (N_CHARS, N*T)
    return jnp.transpose(logp_t, (1, 0)).reshape(N, T, N_CHARS)


# --------------------------- deterministic params ---------------------------

def init_params(key, lstm_in0):
    keys = iter(jax.random.split(key, 64))

    def nrm(shape, scale=0.1):
        return (scale * jax.random.normal(next(keys), shape)).astype(jnp.float32)

    def bn_fold(c):
        gamma = 1.0 + nrm((c,))
        beta = nrm((c,))
        mean = nrm((c,))
        var = 1.0 + jnp.abs(nrm((c,)))
        scale = gamma / jnp.sqrt(var + BN_EPS)
        return scale, beta - mean * scale

    def fold_conv(w_oihw, bias, scale, shift):
        # BN(conv(x)) == conv'(x) with w' = scale*w, b' = scale*b + shift.
        w_flat = w_oihw.reshape(w_oihw.shape[0], -1)          # (Cout, Cin*k*k)
        return ((scale[:, None] * w_flat).astype(jnp.bfloat16),
                (scale * bias + shift)[:, None])

    def pad_gates(a, h=HIDDEN, hp=LSTM_HP):
        # (..., 4*h) -> (..., 4*hp): zero-pad each i/f/g/o block so gate slices
        # are 128-lane aligned; the padded hidden state provably stays zero.
        lead = a.shape[:-1]
        a4 = a.reshape(lead + (4, h))
        a4 = jnp.pad(a4, [(0, 0)] * len(lead) + [(0, 0), (0, hp - h)])
        return a4.reshape(lead + (4 * hp,))

    p = {}
    # conv1 (torch layout (Cout, Cin, kh, kw)) + folded bn1, bf16 weights
    w1 = nrm((C1_OUT, C1_IN, K1, K1))
    b1 = nrm((C1_OUT,))
    s1, sh1 = bn_fold(C1_OUT)
    p['w1'], p['b1'] = fold_conv(w1, b1, s1, sh1)

    # conv2 + folded bn2
    w2 = nrm((C2_OUT, C1_OUT, K2, K2))
    b2 = nrm((C2_OUT,))
    s2, sh2 = bn_fold(C2_OUT)
    p['w2'], p['b2'] = fold_conv(w2, b2, s2, sh2)

    # LSTM: 2 layers x 2 directions; gate order i,f,g,o; H padded 80 -> 128;
    # per layer: one fused input-projection weight (in_pad, 8*Hp) and one
    # block-diagonal recurrent weight (2*Hp, 8*Hp).
    in0_pad = round_up(lstm_in0, 128)
    for l in range(LAYERS):
        if l == 0:
            in_pad = in0_pad
            real_rows = [(0, lstm_in0)]
        else:
            in_pad = 2 * LSTM_HP
            real_rows = [(0, HIDDEN), (LSTM_HP, HIDDEN)]      # padded h concat
        wih_dirs, b_dirs, whh_dirs = [], [], []
        for _d in range(2):
            wih = jnp.zeros((in_pad, 4 * HIDDEN), jnp.float32)
            for off, nrows in real_rows:
                wih = wih.at[off:off + nrows].set(nrm((nrows, 4 * HIDDEN)))
            wih_dirs.append(pad_gates(wih))                    # (in_pad, 4*Hp)
            bias = nrm((1, 4 * HIDDEN)) + nrm((1, 4 * HIDDEN))  # b_ih + b_hh
            b_dirs.append(pad_gates(bias))                     # (1, 4*Hp)
            whh = pad_gates(nrm((HIDDEN, 4 * HIDDEN)))          # (H, 4*Hp)
            whh = jnp.pad(whh, ((0, LSTM_HP - HIDDEN), (0, 0)))  # (Hp, 4*Hp)
            whh_dirs.append(whh)
        p[f'lstm_wih_l{l}'] = jnp.concatenate(wih_dirs, axis=1)  # (in_pad, 8*Hp)
        p[f'lstm_b_l{l}'] = jnp.concatenate(b_dirs, axis=1)      # (1, 8*Hp)
        z = jnp.zeros((LSTM_HP, 4 * LSTM_HP), jnp.float32)
        p[f'lstm_whh_l{l}'] = jnp.block([[whh_dirs[0], z],
                                         [z, whh_dirs[1]]])      # (256, 1024)

    # fc1 over the padded hidden concat: real columns at [0:80] and [128:208]
    fc1_w = jnp.zeros((FC1_OUT, 2 * LSTM_HP), jnp.float32)
    fc1_w = fc1_w.at[:, 0:HIDDEN].set(nrm((FC1_OUT, HIDDEN)))
    fc1_w = fc1_w.at[:, LSTM_HP:LSTM_HP + HIDDEN].set(nrm((FC1_OUT, HIDDEN)))
    p['fc1_w'] = fc1_w
    p['fc1_b'] = nrm((FC1_OUT, 1))
    p['fc2_w'] = nrm((N_CHARS, FC1_OUT))
    p['fc2_b'] = nrm((N_CHARS, 1))
    return p


# ----------------------------------- main ------------------------------------

if __name__ == "__main__":
    key = jax.random.PRNGKey(0)
    kx, kp = jax.random.split(key)

    # Small shapes consistent with the module (original: (B, 1, 161, 101)).
    N, H_IN, W_IN = 2, 40, 50
    x = jax.random.normal(kx, (N, C1_IN, H_IN, W_IN), dtype=jnp.float32)

    # Derive conv stack output sizes to size the LSTM input features.
    h1 = conv_out(H_IN, K1, S1)
    w1o = conv_out(W_IN, K1, S1)
    hp, wp = h1 // POOL, w1o // POOL
    h2 = conv_out(hp, K2, S2)
    w2o = conv_out(wp, K2, S2)       # sequence length T = 8 at these shapes

    params = init_params(kp, lstm_in0=C2_OUT * h2)

    fwd = jax.jit(convnet_forward)
    out = jax.block_until_ready(fwd(x, params))

    assert out.shape == (N, w2o, N_CHARS), out.shape
    assert out.dtype == jnp.float32
    # log_softmax rows must (approximately) normalize
    assert jnp.allclose(jnp.sum(jnp.exp(out), axis=-1), 1.0, atol=1e-3)
    print("KERNEL_OK")
</pallas_src>

<mosaic_0001>
module attributes {stable_mosaic.version = 11 : i64} {
  func.func @_conv1_pool_kernel(%arg0: i32, %arg1: memref<4x64x256xbf16, #tpu.memory_space<vmem>>, %arg2: memref<12x64xbf16, #tpu.memory_space<vmem>>, %arg3: memref<12x1xf32, #tpu.memory_space<vmem>>, %arg4: memref<12x256xf32, #tpu.memory_space<vmem>>) attributes {dimension_semantics = [#tpu.dimension_semantics<parallel>], iteration_bounds = array<i64: 1>, scalar_prefetch = 0 : i64, scratch_operands = 0 : i64, tpu.core_type = #tpu.core_type<tc>, window_params = [{transform_indices = @transform_0, window_bounds = array<i64: 4, 64, 256>}, {pipeline_mode = #tpu.pipeline_mode<synchronous>, transform_indices = @transform_1, window_bounds = array<i64: 12, 64>}, {pipeline_mode = #tpu.pipeline_mode<synchronous>, transform_indices = @transform_2, window_bounds = array<i64: 12, 1>}, {transform_indices = @transform_3, window_bounds = array<i64: 12, 256>}]} {
    %c0 = arith.constant 0 : index
    %c0_0 = arith.constant 0 : index
    %0 = vector.load %arg2[%c0, %c0_0] : memref<12x64xbf16, #tpu.memory_space<vmem>>, vector<12x64xbf16>
    %c0_1 = arith.constant 0 : index
    %c0_2 = arith.constant 0 : index
    %c0_3 = arith.constant 0 : index
    %1 = vector.load %arg1[%c0_1, %c0_2, %c0_3] : memref<4x64x256xbf16, #tpu.memory_space<vmem>>, vector<1x64x256xbf16>
    %2 = vector.shape_cast %1 : vector<1x64x256xbf16> to vector<64x256xbf16>
    %cst = arith.constant dense<0.000000e+00> : vector<12x256xf32>
    %3 = tpu.matmul %0, %2, %cst {dimension_numbers = #tpu.dot_dimension_numbers<[1], [0], [0], [1], [0, 0, 1, 1], [], []>} : vector<12x64xbf16>, vector<64x256xbf16>, vector<12x256xf32> -> vector<12x256xf32>
    %c0_4 = arith.constant 0 : index
    %c0_5 = arith.constant 0 : index
    %4 = vector.load %arg2[%c0_4, %c0_5] : memref<12x64xbf16, #tpu.memory_space<vmem>>, vector<12x64xbf16>
    %c1 = arith.constant 1 : index
    %c0_6 = arith.constant 0 : index
    %c0_7 = arith.constant 0 : index
    %5 = vector.load %arg1[%c1, %c0_6, %c0_7] : memref<4x64x256xbf16, #tpu.memory_space<vmem>>, vector<1x64x256xbf16>
    %6 = vector.shape_cast %5 : vector<1x64x256xbf16> to vector<64x256xbf16>
    %cst_8 = arith.constant dense<0.000000e+00> : vector<12x256xf32>
    %7 = tpu.matmul %4, %6, %cst_8 {dimension_numbers = #tpu.dot_dimension_numbers<[1], [0], [0], [1], [0, 0, 1, 1], [], []>} : vector<12x64xbf16>, vector<64x256xbf16>, vector<12x256xf32> -> vector<12x256xf32>
    %8 = arith.maximumf %3, %7 : vector<12x256xf32>
    %c0_9 = arith.constant 0 : index
    %c0_10 = arith.constant 0 : index
    %9 = vector.load %arg2[%c0_9, %c0_10] : memref<12x64xbf16, #tpu.memory_space<vmem>>, vector<12x64xbf16>
    %c2 = arith.constant 2 : index
    %c0_11 = arith.constant 0 : index
    %c0_12 = arith.constant 0 : index
    %10 = vector.load %arg1[%c2, %c0_11, %c0_12] : memref<4x64x256xbf16, #tpu.memory_space<vmem>>, vector<1x64x256xbf16>
    %11 = vector.shape_cast %10 : vector<1x64x256xbf16> to vector<64x256xbf16>
    %cst_13 = arith.constant dense<0.000000e+00> : vector<12x256xf32>
    %12 = tpu.matmul %9, %11, %cst_13 {dimension_numbers = #tpu.dot_dimension_numbers<[1], [0], [0], [1], [0, 0, 1, 1], [], []>} : vector<12x64xbf16>, vector<64x256xbf16>, vector<12x256xf32> -> vector<12x256xf32>
    %13 = arith.maximumf %8, %12 : vector<12x256xf32>
    %c0_14 = arith.constant 0 : index
    %c0_15 = arith.constant 0 : index
    %14 = vector.load %arg2[%c0_14, %c0_15] : memref<12x64xbf16, #tpu.memory_space<vmem>>, vector<12x64xbf16>
    %c3 = arith.constant 3 : index
    %c0_16 = arith.constant 0 : index
    %c0_17 = arith.constant 0 : index
    %15 = vector.load %arg1[%c3, %c0_16, %c0_17] : memref<4x64x256xbf16, #tpu.memory_space<vmem>>, vector<1x64x256xbf16>
    %16 = vector.shape_cast %15 : vector<1x64x256xbf16> to vector<64x256xbf16>
    %cst_18 = arith.constant dense<0.000000e+00> : vector<12x256xf32>
    %17 = tpu.matmul %14, %16, %cst_18 {dimension_numbers = #tpu.dot_dimension_numbers<[1], [0], [0], [1], [0, 0, 1, 1], [], []>} : vector<12x64xbf16>, vector<64x256xbf16>, vector<12x256xf32> -> vector<12x256xf32>
    %18 = arith.maximumf %13, %17 : vector<12x256xf32>
    %c0_19 = arith.constant 0 : index
    %c0_20 = arith.constant 0 : index
    %19 = vector.load %arg3[%c0_19, %c0_20] : memref<12x1xf32, #tpu.memory_space<vmem>>, vector<12x1xf32>
    %20 = vector.broadcast %19 : vector<12x1xf32> to vector<12x256xf32>
    %21 = arith.addf %18, %20 : vector<12x256xf32>
    %cst_21 = arith.constant 0.000000e+00 : f32
    %22 = vector.broadcast %cst_21 : f32 to vector<12x256xf32>
    %23 = arith.maximumf %21, %22 : vector<12x256xf32>
    %c0_22 = arith.constant 0 : index
    %c0_23 = arith.constant 0 : index
    %24 = vector.load %arg4[%c0_22, %c0_23] : memref<12x256xf32, #tpu.memory_space<vmem>>, vector<12x256xf32>
    tpu.vector_store %arg4[%c0_22, %c0_23], %23 {strides = array<i32>} : memref<12x256xf32, #tpu.memory_space<vmem>>, vector<12x256xf32>,
    return
  }
  func.func @transform_0(%arg0: i32) -> (i32, i32, i32) {
    %c0_i32 = arith.constant 0 : i32
    %c0_i32_0 = arith.constant 0 : i32
    %c0_i32_1 = arith.constant 0 : i32
    return %c0_i32, %c0_i32_0, %arg0 : i32, i32, i32
  }
  func.func @transform_1(%arg0: i32) -> (i32, i32) {
    %c0_i32 = arith.constant 0 : i32
    %c0_i32_0 = arith.constant 0 : i32
    %c0_i32_1 = arith.constant 0 : i32
    return %c0_i32, %c0_i32_0 : i32, i32
  }
  func.func @transform_2(%arg0: i32) -> (i32, i32) {
    %c0_i32 = arith.constant 0 : i32
    %c0_i32_0 = arith.constant 0 : i32
    %c0_i32_1 = arith.constant 0 : i32
    return %c0_i32, %c0_i32_0 : i32, i32
  }
  func.func @transform_3(%arg0: i32) -> (i32, i32) {
    %c0_i32 = arith.constant 0 : i32
    %c0_i32_0 = arith.constant 0 : i32
    return %c0_i32, %arg0 : i32, i32
  }
}

module attributes {stable_mosaic.version = 11 : i64} {
  func.func @_conv_bn_relu_kernel(%arg0: i32, %arg1: memref<192x128xbf16, #tpu.memory_space<vmem>>, %arg2: memref<4x192xbf16, #tpu.memory_space<vmem>>, %arg3: memref<4x1xf32, #tpu.memory_space<vmem>>, %arg4: memref<4x128xf32, #tpu.memory_space<vmem>>) attributes {dimension_semantics = [#tpu.dimension_semantics<parallel>], iteration_bounds = array<i64: 1>, scalar_prefetch = 0 : i64, scratch_operands = 0 : i64, tpu.core_type = #tpu.core_type<tc>, window_params = [{transform_indices = @transform_0, window_bounds = array<i64: 192, 128>}, {pipeline_mode = #tpu.pipeline_mode<synchronous>, transform_indices = @transform_1, window_bounds = array<i64: 4, 192>}, {pipeline_mode = #tpu.pipeline_mode<synchronous>, transform_indices = @transform_2, window_bounds = array<i64: 4, 1>}, {transform_indices = @transform_3, window_bounds = array<i64: 4, 128>}]} {
    %c0 = arith.constant 0 : index
    %c0_0 = arith.constant 0 : index
    %0 = vector.load %arg2[%c0, %c0_0] : memref<4x192xbf16, #tpu.memory_space<vmem>>, vector<4x192xbf16>
    %c0_1 = arith.constant 0 : index
    %c0_2 = arith.constant 0 : index
    %1 = vector.load %arg1[%c0_1, %c0_2] : memref<192x128xbf16, #tpu.memory_space<vmem>>, vector<192x128xbf16>
    %cst = arith.constant dense<0.000000e+00> : vector<4x128xf32>
    %2 = tpu.matmul %0, %1, %cst {dimension_numbers = #tpu.dot_dimension_numbers<[1], [0], [0], [1], [0, 0, 1, 1], [], []>} : vector<4x192xbf16>, vector<192x128xbf16>, vector<4x128xf32> -> vector<4x128xf32>
    %c0_3 = arith.constant 0 : index
    %c0_4 = arith.constant 0 : index
    %3 = vector.load %arg3[%c0_3, %c0_4] : memref<4x1xf32, #tpu.memory_space<vmem>>, vector<4x1xf32>
    %4 = vector.broadcast %3 : vector<4x1xf32> to vector<4x128xf32>
    %5 = arith.addf %2, %4 : vector<4x128xf32>
    %cst_5 = arith.constant 0.000000e+00 : f32
    %6 = vector.broadcast %cst_5 : f32 to vector<4x128xf32>
    %7 = arith.maximumf %5, %6 : vector<4x128xf32>
    %c0_6 = arith.constant 0 : index
    %c0_7 = arith.constant 0 : index
    %8 = vector.load %arg4[%c0_6, %c0_7] : memref<4x128xf32, #tpu.memory_space<vmem>>, vector<4x128xf32>
    tpu.vector_store %arg4[%c0_6, %c0_7], %7 {strides = array<i32>} : memref<4x128xf32, #tpu.memory_space<vmem>>, vector<4x128xf32>,
    return
  }
  func.func @transform_0(%arg0: i32) -> (i32, i32) {
    %c0_i32 = arith.constant 0 : i32
    %c0_i32_0 = arith.constant 0 : i32
    return %c0_i32, %arg0 : i32, i32
  }
  func.func @transform_1(%arg0: i32) -> (i32, i32) {
    %c0_i32 = arith.constant 0 : i32
    %c0_i32_0 = arith.constant 0 : i32
    %c0_i32_1 = arith.constant 0 : i32
    return %c0_i32, %c0_i32_0 : i32, i32
  }
  func.func @transform_2(%arg0: i32) -> (i32, i32) {
    %c0_i32 = arith.constant 0 : i32
    %c0_i32_0 = arith.constant 0 : i32
    %c0_i32_1 = arith.constant 0 : i32
    return %c0_i32, %c0_i32_0 : i32, i32
  }
  func.func @transform_3(%arg0: i32) -> (i32, i32) {
    %c0_i32 = arith.constant 0 : i32
    %c0_i32_0 = arith.constant 0 : i32
    return %c0_i32, %arg0 : i32, i32
  }
}

module attributes {stable_mosaic.version = 11 : i64} {
  func.func @_lstm_proj_kernel(%arg0: i32, %arg1: memref<16x128xf32, #tpu.memory_space<vmem>>, %arg2: memref<128x1024xf32, #tpu.memory_space<vmem>>, %arg3: memref<1x1024xf32, #tpu.memory_space<vmem>>, %arg4: memref<16x512xf32, #tpu.memory_space<vmem>>, %arg5: memref<16x512xf32, #tpu.memory_space<vmem>>) attributes {dimension_semantics = [#tpu.dimension_semantics<parallel>], iteration_bounds = array<i64: 1>, scalar_prefetch = 0 : i64, scratch_operands = 0 : i64, tpu.core_type = #tpu.core_type<tc>, window_params = [{transform_indices = @transform_0, window_bounds = array<i64: 16, 128>}, {pipeline_mode = #tpu.pipeline_mode<synchronous>, transform_indices = @transform_1, window_bounds = array<i64: 128, 1024>}, {pipeline_mode = #tpu.pipeline_mode<synchronous>, transform_indices = @transform_2, window_bounds = array<i64: 1, 1024>}, {transform_indices = @transform_3, window_bounds = array<i64: 16, 512>}, {transform_indices = @transform_4, window_bounds = array<i64: 16, 512>}]} {
    %c0 = arith.constant 0 : index
    %c0_0 = arith.constant 0 : index
    %0 = vector.load %arg1[%c0, %c0_0] : memref<16x128xf32, #tpu.memory_space<vmem>>, vector<16x128xf32>
    %c0_1 = arith.constant 0 : index
    %c0_2 = arith.constant 0 : index
    %1 = vector.load %arg2[%c0_1, %c0_2] : memref<128x1024xf32, #tpu.memory_space<vmem>>, vector<128x1024xf32>
    %cst = arith.constant dense<0.000000e+00> : vector<16x1024xf32>
    %2 = tpu.matmul %0, %1, %cst {dimension_numbers = #tpu.dot_dimension_numbers<[1], [0], [0], [1], [0, 0, 1, 1], [], []>} : vector<16x128xf32>, vector<128x1024xf32>, vector<16x1024xf32> -> vector<16x1024xf32>
    %c0_3 = arith.constant 0 : index
    %c0_4 = arith.constant 0 : index
    %3 = vector.load %arg3[%c0_3, %c0_4] : memref<1x1024xf32, #tpu.memory_space<vmem>>, vector<1x1024xf32>
    %4 = vector.broadcast %3 : vector<1x1024xf32> to vector<16x1024xf32>
    %5 = arith.addf %2, %4 : vector<16x1024xf32>
    %6 = vector.extract_strided_slice %5 {offsets = [0, 0], sizes = [16, 512], strides = [1, 1]} : vector<16x1024xf32> to vector<16x512xf32>
    %c0_5 = arith.constant 0 : index
    %c0_6 = arith.constant 0 : index
    %7 = vector.load %arg4[%c0_5, %c0_6] : memref<16x512xf32, #tpu.memory_space<vmem>>, vector<16x512xf32>
    tpu.vector_store %arg4[%c0_5, %c0_6], %6 {strides = array<i32>} : memref<16x512xf32, #tpu.memory_space<vmem>>, vector<16x512xf32>,
    %8 = vector.extract_strided_slice %5 {offsets = [0, 512], sizes = [16, 512], strides = [1, 1]} : vector<16x1024xf32> to vector<16x512xf32>
    %c0_7 = arith.constant 0 : index
    %c0_8 = arith.constant 0 : index
    %9 = vector.load %arg5[%c0_7, %c0_8] : memref<16x512xf32, #tpu.memory_space<vmem>>, vector<16x512xf32>
    tpu.vector_store %arg5[%c0_7, %c0_8], %8 {strides = array<i32>} : memref<16x512xf32, #tpu.memory_space<vmem>>, vector<16x512xf32>,
    return
  }
  func.func @transform_0(%arg0: i32) -> (i32, i32) {
    %c0_i32 = arith.constant 0 : i32
    %c0_i32_0 = arith.constant 0 : i32
    return %arg0, %c0_i32 : i32, i32
  }
  func.func @transform_1(%arg0: i32) -> (i32, i32) {
    %c0_i32 = arith.constant 0 : i32
    %c0_i32_0 = arith.constant 0 : i32
    %c0_i32_1 = arith.constant 0 : i32
    return %c0_i32, %c0_i32_0 : i32, i32
  }
  func.func @transform_2(%arg0: i32) -> (i32, i32) {
    %c0_i32 = arith.constant 0 : i32
    %c0_i32_0 = arith.constant 0 : i32
    %c0_i32_1 = arith.constant 0 : i32
    return %c0_i32, %c0_i32_0 : i32, i32
  }
  func.func @transform_3(%arg0: i32) -> (i32, i32) {
    %c0_i32 = arith.constant 0 : i32
    %c0_i32_0 = arith.constant 0 : i32
    return %arg0, %c0_i32 : i32, i32
  }
  func.func @transform_4(%arg0: i32) -> (i32, i32) {
    %c0_i32 = arith.constant 0 : i32
    %c0_i32_0 = arith.constant 0 : i32
    return %arg0, %c0_i32 : i32, i32
  }
}

module attributes {stable_mosaic.version = 11 : i64} {
  func.func @_bilstm_rec_kernel(%arg0: i32, %arg1: memref<1x2x512xf32, #tpu.memory_space<vmem>>, %arg2: memref<1x2x512xf32, #tpu.memory_space<vmem>>, %arg3: memref<256x1024xf32, #tpu.memory_space<vmem>>, %arg4: memref<1x2x128xf32, #tpu.memory_space<vmem>>, %arg5: memref<1x2x128xf32, #tpu.memory_space<vmem>>, %arg6: memref<2x256xf32, #tpu.memory_space<vmem>>, %arg7: memref<2x128xf32, #tpu.memory_space<vmem>>, %arg8: memref<2x128xf32, #tpu.memory_space<vmem>>) attributes {dimension_semantics = [#tpu.dimension_semantics<arbitrary>], iteration_bounds = array<i64: 8>, scalar_prefetch = 0 : i64, scratch_operands = 3 : i64, tpu.core_type = #tpu.core_type<tc>, window_params = [{transform_indices = @transform_0, window_bounds = array<i64: 1, 2, 512>}, {transform_indices = @transform_1, window_bounds = array<i64: 1, 2, 512>}, {pipeline_mode = #tpu.pipeline_mode<synchronous>, transform_indices = @transform_2, window_bounds = array<i64: 256, 1024>}, {transform_indices = @transform_3, window_bounds = array<i64: 1, 2, 128>}, {transform_indices = @transform_4, window_bounds = array<i64: 1, 2, 128>}]} {
    %c0_i32 = arith.constant 0 : i32
    %0 = arith.cmpi eq, %arg0, %c0_i32 : i32
    %1 = arith.extui %0 : i1 to i32
    %c0_i32_0 = arith.constant 0 : i32
    %2 = arith.cmpi ne, %1, %c0_i32_0 : i32
    scf.if %2 {
      %cst_33 = arith.constant 0.000000e+00 : f32
      %76 = vector.broadcast %cst_33 : f32 to vector<2x256xf32>
      %c0_34 = arith.constant 0 : index
      %c0_35 = arith.constant 0 : index
      %77 = vector.load %arg6[%c0_34, %c0_35] : memref<2x256xf32, #tpu.memory_space<vmem>>, vector<2x256xf32>
      tpu.vector_store %arg6[%c0_34, %c0_35], %76 {strides = array<i32>} : memref<2x256xf32, #tpu.memory_space<vmem>>, vector<2x256xf32>,
      %cst_36 = arith.constant 0.000000e+00 : f32
      %78 = vector.broadcast %cst_36 : f32 to vector<2x128xf32>
      %c0_37 = arith.constant 0 : index
      %c0_38 = arith.constant 0 : index
      %79 = vector.load %arg7[%c0_37, %c0_38] : memref<2x128xf32, #tpu.memory_space<vmem>>, vector<2x128xf32>
      tpu.vector_store %arg7[%c0_37, %c0_38], %78 {strides = array<i32>} : memref<2x128xf32, #tpu.memory_space<vmem>>, vector<2x128xf32>,
      %cst_39 = arith.constant 0.000000e+00 : f32
      %80 = vector.broadcast %cst_39 : f32 to vector<2x128xf32>
      %c0_40 = arith.constant 0 : index
      %c0_41 = arith.constant 0 : index
      %81 = vector.load %arg8[%c0_40, %c0_41] : memref<2x128xf32, #tpu.memory_space<vmem>>, vector<2x128xf32>
      tpu.vector_store %arg8[%c0_40, %c0_41], %80 {strides = array<i32>} : memref<2x128xf32, #tpu.memory_space<vmem>>, vector<2x128xf32>,
    } else {
    }
    %c0 = arith.constant 0 : index
    %c0_1 = arith.constant 0 : index
    %3 = vector.load %arg6[%c0, %c0_1] : memref<2x256xf32, #tpu.memory_space<vmem>>, vector<2x256xf32>
    %c0_2 = arith.constant 0 : index
    %c0_3 = arith.constant 0 : index
    %4 = vector.load %arg3[%c0_2, %c0_3] : memref<256x1024xf32, #tpu.memory_space<vmem>>, vector<256x1024xf32>
    %cst = arith.constant dense<0.000000e+00> : vector<2x1024xf32>
    %5 = tpu.matmul %3, %4, %cst {dimension_numbers = #tpu.dot_dimension_numbers<[1], [0], [0], [1], [0, 0, 1, 1], [], []>} : vector<2x256xf32>, vector<256x1024xf32>, vector<2x1024xf32> -> vector<2x1024xf32>
    %c0_4 = arith.constant 0 : index
    %c0_5 = arith.constant 0 : index
    %c0_6 = arith.constant 0 : index
    %6 = vector.load %arg1[%c0_4, %c0_5, %c0_6] : memref<1x2x512xf32, #tpu.memory_space<vmem>>, vector<1x2x512xf32>
    %7 = vector.shape_cast %6 : vector<1x2x512xf32> to vector<2x512xf32>
    %8 = vector.extract_strided_slice %5 {offsets = [0, 0], sizes = [2, 512], strides = [1, 1]} : vector<2x1024xf32> to vector<2x512xf32>
    %9 = arith.addf %7, %8 : vector<2x512xf32>
    %c0_7 = arith.constant 0 : index
    %c0_8 = arith.constant 0 : index
    %c0_9 = arith.constant 0 : index
    %10 = vector.load %arg2[%c0_7, %c0_8, %c0_9] : memref<1x2x512xf32, #tpu.memory_space<vmem>>, vector<1x2x512xf32>
    %11 = vector.shape_cast %10 : vector<1x2x512xf32> to vector<2x512xf32>
    %12 = vector.extract_strided_slice %5 {offsets = [0, 512], sizes = [2, 512], strides = [1, 1]} : vector<2x1024xf32> to vector<2x512xf32>
    %13 = arith.addf %11, %12 : vector<2x512xf32>
    %c0_10 = arith.constant 0 : index
    %c0_11 = arith.constant 0 : index
    %14 = vector.load %arg7[%c0_10, %c0_11] : memref<2x128xf32, #tpu.memory_space<vmem>>, vector<2x128xf32>
    %15 = vector.extract_strided_slice %9 {offsets = [0, 0], sizes = [2, 128], strides = [1, 1]} : vector<2x512xf32> to vector<2x128xf32>
    %16 = arith.negf %15 : vector<2x128xf32>
    %17 = math.exp %16 : vector<2x128xf32>
    %cst_12 = arith.constant 1.000000e+00 : f32
    %18 = vector.broadcast %cst_12 : f32 to vector<2x128xf32>
    %19 = arith.addf %18, %17 : vector<2x128xf32>
    %20 = arith.divf %18, %19 : vector<2x128xf32>
    %21 = vector.extract_strided_slice %9 {offsets = [0, 128], sizes = [2, 128], strides = [1, 1]} : vector<2x512xf32> to vector<2x128xf32>
    %22 = arith.negf %21 : vector<2x128xf32>
    %23 = math.exp %22 : vector<2x128xf32>
    %cst_13 = arith.constant 1.000000e+00 : f32
    %24 = vector.broadcast %cst_13 : f32 to vector<2x128xf32>
    %25 = arith.addf %24, %23 : vector<2x128xf32>
    %26 = arith.divf %24, %25 : vector<2x128xf32>
    %27 = vector.extract_strided_slice %9 {offsets = [0, 256], sizes = [2, 128], strides = [1, 1]} : vector<2x512xf32> to vector<2x128xf32>
    %28 = math.tanh %27 : vector<2x128xf32>
    %29 = vector.extract_strided_slice %9 {offsets = [0, 384], sizes = [2, 128], strides = [1, 1]} : vector<2x512xf32> to vector<2x128xf32>
    %30 = arith.negf %29 : vector<2x128xf32>
    %31 = math.exp %30 : vector<2x128xf32>
    %cst_14 = arith.constant 1.000000e+00 : f32
    %32 = vector.broadcast %cst_14 : f32 to vector<2x128xf32>
    %33 = arith.addf %32, %31 : vector<2x128xf32>
    %34 = arith.divf %32, %33 : vector<2x128xf32>
    %35 = arith.mulf %26, %14 : vector<2x128xf32>
    %36 = arith.mulf %20, %28 : vector<2x128xf32>
    %37 = arith.addf %35, %36 : vector<2x128xf32>
    %38 = math.tanh %37 : vector<2x128xf32>
    %39 = arith.mulf %34, %38 : vector<2x128xf32>
    %c0_15 = arith.constant 0 : index
    %c0_16 = arith.constant 0 : index
    %40 = vector.load %arg8[%c0_15, %c0_16] : memref<2x128xf32, #tpu.memory_space<vmem>>, vector<2x128xf32>
    %41 = vector.extract_strided_slice %13 {offsets = [0, 0], sizes = [2, 128], strides = [1, 1]} : vector<2x512xf32> to vector<2x128xf32>
    %42 = arith.negf %41 : vector<2x128xf32>
    %43 = math.exp %42 : vector<2x128xf32>
    %cst_17 = arith.constant 1.000000e+00 : f32
    %44 = vector.broadcast %cst_17 : f32 to vector<2x128xf32>
    %45 = arith.addf %44, %43 : vector<2x128xf32>
    %46 = arith.divf %44, %45 : vector<2x128xf32>
    %47 = vector.extract_strided_slice %13 {offsets = [0, 128], sizes = [2, 128], strides = [1, 1]} : vector<2x512xf32> to vector<2x128xf32>
    %48 = arith.negf %47 : vector<2x128xf32>
    %49 = math.exp %48 : vector<2x128xf32>
    %cst_18 = arith.constant 1.000000e+00 : f32
    %50 = vector.broadcast %cst_18 : f32 to vector<2x128xf32>
    %51 = arith.addf %50, %49 : vector<2x128xf32>
    %52 = arith.divf %50, %51 : vector<2x128xf32>
    %53 = vector.extract_strided_slice %13 {offsets = [0, 256], sizes = [2, 128], strides = [1, 1]} : vector<2x512xf32> to vector<2x128xf32>
    %54 = math.tanh %53 : vector<2x128xf32>
    %55 = vector.extract_strided_slice %13 {offsets = [0, 384], sizes = [2, 128], strides = [1, 1]} : vector<2x512xf32> to vector<2x128xf32>
    %56 = arith.negf %55 : vector<2x128xf32>
    %57 = math.exp %56 : vector<2x128xf32>
    %cst_19 = arith.constant 1.000000e+00 : f32
    %58 = vector.broadcast %cst_19 : f32 to vector<2x128xf32>
    %59 = arith.addf %58, %57 : vector<2x128xf32>
    %60 = arith.divf %58, %59 : vector<2x128xf32>
    %61 = arith.mulf %52, %40 : vector<2x128xf32>
    %62 = arith.mulf %46, %54 : vector<2x128xf32>
    %63 = arith.addf %61, %62 : vector<2x128xf32>
    %64 = math.tanh %63 : vector<2x128xf32>
    %65 = arith.mulf %60, %64 : vector<2x128xf32>
    %c0_20 = arith.constant 0 : index
    %c0_21 = arith.constant 0 : index
    %66 = vector.load %arg7[%c0_20, %c0_21] : memref<2x128xf32, #tpu.memory_space<vmem>>, vector<2x128xf32>
    tpu.vector_store %arg7[%c0_20, %c0_21], %37 {strides = array<i32>} : memref<2x128xf32, #tpu.memory_space<vmem>>, vector<2x128xf32>,
    %c0_22 = arith.constant 0 : index
    %c0_23 = arith.constant 0 : index
    %67 = vector.load %arg8[%c0_22, %c0_23] : memref<2x128xf32, #tpu.memory_space<vmem>>, vector<2x128xf32>
    tpu.vector_store %arg8[%c0_22, %c0_23], %63 {strides = array<i32>} : memref<2x128xf32, #tpu.memory_space<vmem>>, vector<2x128xf32>,
    %c0_24 = arith.constant 0 : index
    %c0_25 = arith.constant 0 : index
    %68 = vector.load %arg6[%c0_24, %c0_25] : memref<2x256xf32, #tpu.memory_space<vmem>>, vector<2x128xf32>
    tpu.vector_store %arg6[%c0_24, %c0_25], %39 {strides = array<i32>} : memref<2x256xf32, #tpu.memory_space<vmem>>, vector<2x128xf32>,
    %c0_26 = arith.constant 0 : index
    %c128 = arith.constant 128 : index
    %69 = vector.load %arg6[%c0_26, %c128] : memref<2x256xf32, #tpu.memory_space<vmem>>, vector<2x128xf32>
    tpu.vector_store %arg6[%c0_26, %c128], %65 {strides = array<i32>} : memref<2x256xf32, #tpu.memory_space<vmem>>, vector<2x128xf32>,
    %c0_27 = arith.constant 0 : index
    %c0_28 = arith.constant 0 : index
    %c0_29 = arith.constant 0 : index
    %70 = vector.load %arg4[%c0_27, %c0_28, %c0_29] : memref<1x2x128xf32, #tpu.memory_space<vmem>>, vector<1x2x128xf32>
    %71 = vector.shape_cast %70 : vector<1x2x128xf32> to vector<2x128xf32>
    %72 = vector.shape_cast %39 : vector<2x128xf32> to vector<1x2x128xf32>
    tpu.vector_store %arg4[%c0_27, %c0_28, %c0_29], %72 {strides = array<i32>} : memref<1x2x128xf32, #tpu.memory_space<vmem>>, vector<1x2x128xf32>,
    %c0_30 = arith.constant 0 : index
    %c0_31 = arith.constant 0 : index
    %c0_32 = arith.constant 0 : index
    %73 = vector.load %arg5[%c0_30, %c0_31, %c0_32] : memref<1x2x128xf32, #tpu.memory_space<vmem>>, vector<1x2x128xf32>
    %74 = vector.shape_cast %73 : vector<1x2x128xf32> to vector<2x128xf32>
    %75 = vector.shape_cast %65 : vector<2x128xf32> to vector<1x2x128xf32>
    tpu.vector_store %arg5[%c0_30, %c0_31, %c0_32], %75 {strides = array<i32>} : memref<1x2x128xf32, #tpu.memory_space<vmem>>, vector<1x2x128xf32>,
    return
  }
  func.func @transform_0(%arg0: i32) -> (i32, i32, i32) {
    %c0_i32 = arith.constant 0 : i32
    %c0_i32_0 = arith.constant 0 : i32
    %c0_i32_1 = arith.constant 0 : i32
    return %arg0, %c0_i32, %c0_i32_0 : i32, i32, i32
  }
  func.func @transform_1(%arg0: i32) -> (i32, i32, i32) {
    %c7_i32 = arith.constant 7 : i32
    %0 = arith.subi %c7_i32, %arg0 : i32
    %c0_i32 = arith.constant 0 : i32
    %c0_i32_0 = arith.constant 0 : i32
    %c0_i32_1 = arith.constant 0 : i32
    return %0, %c0_i32, %c0_i32_0 : i32, i32, i32
  }
  func.func @transform_2(%arg0: i32) -> (i32, i32) {
    %c0_i32 = arith.constant 0 : i32
    %c0_i32_0 = arith.constant 0 : i32
    %c0_i32_1 = arith.constant 0 : i32
    return %c0_i32, %c0_i32_0 : i32, i32
  }
  func.func @transform_3(%arg0: i32) -> (i32, i32, i32) {
    %c0_i32 = arith.constant 0 : i32
    %c0_i32_0 = arith.constant 0 : i32
    %c0_i32_1 = arith.constant 0 : i32
    return %arg0, %c0_i32, %c0_i32_0 : i32, i32, i32
  }
  func.func @transform_4(%arg0: i32) -> (i32, i32, i32) {
    %c7_i32 = arith.constant 7 : i32
    %0 = arith.subi %c7_i32, %arg0 : i32
    %c0_i32 = arith.constant 0 : i32
    %c0_i32_0 = arith.constant 0 : i32
    %c0_i32_1 = arith.constant 0 : i32
    return %0, %c0_i32, %c0_i32_0 : i32, i32, i32
  }
}

module attributes {stable_mosaic.version = 11 : i64} {
  func.func @_lstm_proj_kernel(%arg0: i32, %arg1: memref<16x256xf32, #tpu.memory_space<vmem>>, %arg2: memref<256x1024xf32, #tpu.memory_space<vmem>>, %arg3: memref<1x1024xf32, #tpu.memory_space<vmem>>, %arg4: memref<16x512xf32, #tpu.memory_space<vmem>>, %arg5: memref<16x512xf32, #tpu.memory_space<vmem>>) attributes {dimension_semantics = [#tpu.dimension_semantics<parallel>], iteration_bounds = array<i64: 1>, scalar_prefetch = 0 : i64, scratch_operands = 0 : i64, tpu.core_type = #tpu.core_type<tc>, window_params = [{transform_indices = @transform_0, window_bounds = array<i64: 16, 256>}, {pipeline_mode = #tpu.pipeline_mode<synchronous>, transform_indices = @transform_1, window_bounds = array<i64: 256, 1024>}, {pipeline_mode = #tpu.pipeline_mode<synchronous>, transform_indices = @transform_2, window_bounds = array<i64: 1, 1024>}, {transform_indices = @transform_3, window_bounds = array<i64: 16, 512>}, {transform_indices = @transform_4, window_bounds = array<i64: 16, 512>}]} {
    %c0 = arith.constant 0 : index
    %c0_0 = arith.constant 0 : index
    %0 = vector.load %arg1[%c0, %c0_0] : memref<16x256xf32, #tpu.memory_space<vmem>>, vector<16x256xf32>
    %c0_1 = arith.constant 0 : index
    %c0_2 = arith.constant 0 : index
    %1 = vector.load %arg2[%c0_1, %c0_2] : memref<256x1024xf32, #tpu.memory_space<vmem>>, vector<256x1024xf32>
    %cst = arith.constant dense<0.000000e+00> : vector<16x1024xf32>
    %2 = tpu.matmul %0, %1, %cst {dimension_numbers = #tpu.dot_dimension_numbers<[1], [0], [0], [1], [0, 0, 1, 1], [], []>} : vector<16x256xf32>, vector<256x1024xf32>, vector<16x1024xf32> -> vector<16x1024xf32>
    %c0_3 = arith.constant 0 : index
    %c0_4 = arith.constant 0 : index
    %3 = vector.load %arg3[%c0_3, %c0_4] : memref<1x1024xf32, #tpu.memory_space<vmem>>, vector<1x1024xf32>
    %4 = vector.broadcast %3 : vector<1x1024xf32> to vector<16x1024xf32>
    %5 = arith.addf %2, %4 : vector<16x1024xf32>
    %6 = vector.extract_strided_slice %5 {offsets = [0, 0], sizes = [16, 512], strides = [1, 1]} : vector<16x1024xf32> to vector<16x512xf32>
    %c0_5 = arith.constant 0 : index
    %c0_6 = arith.constant 0 : index
    %7 = vector.load %arg4[%c0_5, %c0_6] : memref<16x512xf32, #tpu.memory_space<vmem>>, vector<16x512xf32>
    tpu.vector_store %arg4[%c0_5, %c0_6], %6 {strides = array<i32>} : memref<16x512xf32, #tpu.memory_space<vmem>>, vector<16x512xf32>,
    %8 = vector.extract_strided_slice %5 {offsets = [0, 512], sizes = [16, 512], strides = [1, 1]} : vector<16x1024xf32> to vector<16x512xf32>
    %c0_7 = arith.constant 0 : index
    %c0_8 = arith.constant 0 : index
    %9 = vector.load %arg5[%c0_7, %c0_8] : memref<16x512xf32, #tpu.memory_space<vmem>>, vector<16x512xf32>
    tpu.vector_store %arg5[%c0_7, %c0_8], %8 {strides = array<i32>} : memref<16x512xf32, #tpu.memory_space<vmem>>, vector<16x512xf32>,
    return
  }
  func.func @transform_0(%arg0: i32) -> (i32, i32) {
    %c0_i32 = arith.constant 0 : i32
    %c0_i32_0 = arith.constant 0 : i32
    return %arg0, %c0_i32 : i32, i32
  }
  func.func @transform_1(%arg0: i32) -> (i32, i32) {
    %c0_i32 = arith.constant 0 : i32
    %c0_i32_0 = arith.constant 0 : i32
    %c0_i32_1 = arith.constant 0 : i32
    return %c0_i32, %c0_i32_0 : i32, i32
  }
  func.func @transform_2(%arg0: i32) -> (i32, i32) {
    %c0_i32 = arith.constant 0 : i32
    %c0_i32_0 = arith.constant 0 : i32
    %c0_i32_1 = arith.constant 0 : i32
    return %c0_i32, %c0_i32_0 : i32, i32
  }
  func.func @transform_3(%arg0: i32) -> (i32, i32) {
    %c0_i32 = arith.constant 0 : i32
    %c0_i32_0 = arith.constant 0 : i32
    return %arg0, %c0_i32 : i32, i32
  }
  func.func @transform_4(%arg0: i32) -> (i32, i32) {
    %c0_i32 = arith.constant 0 : i32
    %c0_i32_0 = arith.constant 0 : i32
    return %arg0, %c0_i32 : i32, i32
  }
}

module attributes {stable_mosaic.version = 11 : i64} {
  func.func @_head_kernel(%arg0: i32, %arg1: memref<256x128xf32, #tpu.memory_space<vmem>>, %arg2: memref<120x256xf32, #tpu.memory_space<vmem>>, %arg3: memref<120x1xf32, #tpu.memory_space<vmem>>, %arg4: memref<12x120xf32, #tpu.memory_space<vmem>>, %arg5: memref<12x1xf32, #tpu.memory_space<vmem>>, %arg6: memref<12x128xf32, #tpu.memory_space<vmem>>) attributes {dimension_semantics = [#tpu.dimension_semantics<parallel>], iteration_bounds = array<i64: 1>, scalar_prefetch = 0 : i64, scratch_operands = 0 : i64, tpu.core_type = #tpu.core_type<tc>, window_params = [{transform_indices = @transform_0, window_bounds = array<i64: 256, 128>}, {pipeline_mode = #tpu.pipeline_mode<synchronous>, transform_indices = @transform_1, window_bounds = array<i64: 120, 256>}, {pipeline_mode = #tpu.pipeline_mode<synchronous>, transform_indices = @transform_2, window_bounds = array<i64: 120, 1>}, {pipeline_mode = #tpu.pipeline_mode<synchronous>, transform_indices = @transform_3, window_bounds = array<i64: 12, 120>}, {pipeline_mode = #tpu.pipeline_mode<synchronous>, transform_indices = @transform_4, window_bounds = array<i64: 12, 1>}, {transform_indices = @transform_5, window_bounds = array<i64: 12, 128>}]} {
    %c0 = arith.constant 0 : index
    %c0_0 = arith.constant 0 : index
    %0 = vector.load %arg2[%c0, %c0_0] : memref<120x256xf32, #tpu.memory_space<vmem>>, vector<120x256xf32>
    %c0_1 = arith.constant 0 : index
    %c0_2 = arith.constant 0 : index
    %1 = vector.load %arg1[%c0_1, %c0_2] : memref<256x128xf32, #tpu.memory_space<vmem>>, vector<256x128xf32>
    %cst = arith.constant dense<0.000000e+00> : vector<120x128xf32>
    %2 = tpu.matmul %0, %1, %cst {dimension_numbers = #tpu.dot_dimension_numbers<[1], [0], [0], [1], [0, 0, 1, 1], [], []>} : vector<120x256xf32>, vector<256x128xf32>, vector<120x128xf32> -> vector<120x128xf32>
    %c0_3 = arith.constant 0 : index
    %c0_4 = arith.constant 0 : index
    %3 = vector.load %arg3[%c0_3, %c0_4] : memref<120x1xf32, #tpu.memory_space<vmem>>, vector<120x1xf32>
    %4 = vector.broadcast %3 : vector<120x1xf32> to vector<120x128xf32>
    %5 = arith.addf %2, %4 : vector<120x128xf32>
    %c0_5 = arith.constant 0 : index
    %c0_6 = arith.constant 0 : index
    %6 = vector.load %arg4[%c0_5, %c0_6] : memref<12x120xf32, #tpu.memory_space<vmem>>, vector<12x120xf32>
    %cst_7 = arith.constant dense<0.000000e+00> : vector<12x128xf32>
    %7 = tpu.matmul %6, %5, %cst_7 {dimension_numbers = #tpu.dot_dimension_numbers<[1], [0], [0], [1], [0, 0, 1, 1], [], []>} : vector<12x120xf32>, vector<120x128xf32>, vector<12x128xf32> -> vector<12x128xf32>
    %c0_8 = arith.constant 0 : index
    %c0_9 = arith.constant 0 : index
    %8 = vector.load %arg5[%c0_8, %c0_9] : memref<12x1xf32, #tpu.memory_space<vmem>>, vector<12x1xf32>
    %9 = vector.broadcast %8 : vector<12x1xf32> to vector<12x128xf32>
    %10 = arith.addf %7, %9 : vector<12x128xf32>
    %cst_10 = arith.constant dense<0xFF800000> : vector<128xf32>
    %11 = vector.multi_reduction <maximumf>, %10, %cst_10 [0] : vector<12x128xf32> to vector<128xf32>
    %12 = vector.shape_cast %11 : vector<128xf32> to vector<1x128xf32>
    %13 = vector.broadcast %12 : vector<1x128xf32> to vector<12x128xf32>
    %14 = arith.subf %10, %13 : vector<12x128xf32>
    %15 = math.exp %14 : vector<12x128xf32>
    %cst_11 = arith.constant dense<0.000000e+00> : vector<128xf32>
    %16 = vector.multi_reduction <add>, %15, %cst_11 [0] : vector<12x128xf32> to vector<128xf32>
    %17 = vector.shape_cast %16 : vector<128xf32> to vector<1x128xf32>
    %18 = math.log %17 : vector<1x128xf32>
    %19 = vector.broadcast %18 : vector<1x128xf32> to vector<12x128xf32>
    %20 = arith.subf %14, %19 : vector<12x128xf32>
    %c0_12 = arith.constant 0 : index
    %c0_13 = arith.constant 0 : index
    %21 = vector.load %arg6[%c0_12, %c0_13] : memref<12x128xf32, #tpu.memory_space<vmem>>, vector<12x128xf32>
    tpu.vector_store %arg6[%c0_12, %c0_13], %20 {strides = array<i32>} : memref<12x128xf32, #tpu.memory_space<vmem>>, vector<12x128xf32>,
    return
  }
  func.func @transform_0(%arg0: i32) -> (i32, i32) {
    %c0_i32 = arith.constant 0 : i32
    %c0_i32_0 = arith.constant 0 : i32
    return %c0_i32, %arg0 : i32, i32
  }
  func.func @transform_1(%arg0: i32) -> (i32, i32) {
    %c0_i32 = arith.constant 0 : i32
    %c0_i32_0 = arith.constant 0 : i32
    %c0_i32_1 = arith.constant 0 : i32
    return %c0_i32, %c0_i32_0 : i32, i32
  }
  func.func @transform_2(%arg0: i32) -> (i32, i32) {
    %c0_i32 = arith.constant 0 : i32
    %c0_i32_0 = arith.constant 0 : i32
    %c0_i32_1 = arith.constant 0 : i32
    return %c0_i32, %c0_i32_0 : i32, i32
  }
  func.func @transform_3(%arg0: i32) -> (i32, i32) {
    %c0_i32 = arith.constant 0 : i32
    %c0_i32_0 = arith.constant 0 : i32
    %c0_i32_1 = arith.constant 0 : i32
    return %c0_i32, %c0_i32_0 : i32, i32
  }
  func.func @transform_4(%arg0: i32) -> (i32, i32) {
    %c0_i32 = arith.constant 0 : i32
    %c0_i32_0 = arith.constant 0 : i32
    %c0_i32_1 = arith.constant 0 : i32
    return %c0_i32, %c0_i32_0 : i32, i32
  }
  func.func @transform_5(%arg0: i32) -> (i32, i32) {
    %c0_i32 = arith.constant 0 : i32
    %c0_i32_0 = arith.constant 0 : i32
    return %c0_i32, %arg0 : i32, i32
  }
}

</mosaic_0001>

<bundles_post_ra>
// kernel: convnet_forward.7
= control target key start
LH: loop header
LB: loop body
LE: loop exit
PB: predicated region body
PF: predicated region fallthrough
CT: control target
= control target key end

     0   :  { %v545_v1 = vmov 0   ;;  %vm70_vm0 = vcmask 523264   ;;  %s687_s0 = inlined_call_operand.vmem [shape: bf16[4,64,256], index: 0, kind: input, shape index: {}]   ;;  %s688_s1 = inlined_call_operand.vmem [shape: bf16[12,64], index: 1, kind: input, shape index: {}]   ;;  %s689_s2 = inlined_call_operand.vmem [shape: f32[12,1], index: 2, kind: input, shape index: {}]   ;;  %s690_s3 = inlined_call_operand.vmem [shape: f32[12,256], index: 3, kind: output, shape index: {}]  }
   0x1   :  { %v496_v0 = vld [vmem:[%s687_s0 + $0x4] ss:$8 sps:$4 sm:$0xff]   ;;  %106 = vmatprep.mubr.bf16.mxu0 %v545_v1  ;;  %198 = vmatprep.mubr.bf16.mxu1 %v545_v1  ;;  %v500_v3 = vld [vmem:[%s687_s0] ss:$8 sps:$4 sm:$0xff]   ;;  %v502_v5 = vld [vmem:[%s687_s0 + $0x14] ss:$8 sps:$4 sm:$0xff]  }
   0x2   :  { %v498_v2 = vld [vmem:[%s687_s0 + $0x44] ss:$8 sps:$4 sm:$0xff]   ;;  %495 = vset.pattern.permute.xlu0 %v545_v1  ;;  %74 = vmatprep.subr.bf16.mxu0 %v496_v0  ;;  %v501_v4 = vld [vmem:[%s687_s0 + $0x40] ss:$8 sps:$4 sm:$0xff]   ;;  %v504_v6 = vld [vmem:[%s687_s0 + $0x54] ss:$8 sps:$4 sm:$0xff]  }
   0x3   :  { %166 = vmatprep.subr.bf16.mxu1 %v498_v2  ;;  %75 = vmatpush1.bf16.msra.mxu0 %v500_v3  ;;  %v506_v7 = vld [vmem:[%s687_s0 + $0x10] ss:$8 sps:$4 sm:$0xff]   ;;  %v508_v9 = vld [vmem:[%s687_s0 + $0x24] ss:$8 sps:$4 sm:$0xff]   ;;  %v512_v11 = vld [vmem:[%s687_s0 + $0x20] ss:$8 sps:$4 sm:$0xff]  }
   0x4   :  { %167 = vmatpush1.bf16.msra.mxu1 %v501_v4  ;;  %76 = vmatprep.subr.bf16.mxu0 %v502_v5  ;;  %v507_v8 = vld [vmem:[%s687_s0 + $0x50] ss:$8 sps:$4 sm:$0xff]   ;;  %v510_v10 = vld [vmem:[%s687_s0 + $0x64] ss:$8 sps:$4 sm:$0xff]   ;;  %v513_v12 = vld [vmem:[%s687_s0 + $0x60] ss:$8 sps:$4 sm:$0xff]  }
   0x5   :  { %168 = vmatprep.subr.bf16.mxu1 %v504_v6  ;;  %v514_v13 = vld [vmem:[%s687_s0 + $0x34] ss:$8 sps:$4 sm:$0xff]   ;;  %v518_v15 = vld [vmem:[%s687_s0 + $0x30] ss:$8 sps:$4 sm:$0xff]   ;;  %v523_v17 = vld [vmem:[%s687_s0 + $0x84] ss:$8 sps:$4 sm:$0xff]  }
   0x6   :  { %v516_v14 = vld [vmem:[%s687_s0 + $0x74] ss:$8 sps:$4 sm:$0xff]   ;;  %v519_v16 = vld [vmem:[%s687_s0 + $0x70] ss:$8 sps:$4 sm:$0xff]   ;;  %v526_v18 = vld [vmem:[%s687_s0 + $0xc4] ss:$8 sps:$4 sm:$0xff]  }
   0x7   :  { %77 = vmatpush1.bf16.msra.mxu0 %v506_v7  ;;  %v520_v19 = vld [vmem:[%s688_s1] sm:$0x3f]   ;;  %v529_v22 = vld [vmem:[%s687_s0 + $0x94] ss:$8 sps:$4 sm:$0xff]   ;;  %v527_v24 = vld [vmem:[%s687_s0 + $0x90] ss:$8 sps:$4 sm:$0xff]  }
   0x8   :  { %169 = vmatpush1.bf16.msra.mxu1 %v507_v8  ;;  %78 = vmatprep.subr.bf16.mxu0 %v508_v9  ;;  %v521_v20 = vld [vmem:[%s687_s0 + $0x80] ss:$8 sps:$4 sm:$0xff]   ;;  %v532_v23 = vld [vmem:[%s687_s0 + $0xd4] ss:$8 sps:$4 sm:$0xff]   ;;  %v530_v25 = vld [vmem:[%s687_s0 + $0xd0] ss:$8 sps:$4 sm:$0xff]  }
   0x9   :  { %170 = vmatprep.subr.bf16.mxu1 %v510_v10  ;;  %v524_v21 = vld [vmem:[%s687_s0 + $0xc0] ss:$8 sps:$4 sm:$0xff]   ;;  %v535_v26 = vld [vmem:[%s687_s0 + $0xa4] ss:$8 sps:$4 sm:$0xff]   ;;  %v541_v32 = vld [vmem:[%s687_s0 + $0xb4] ss:$8 sps:$4 sm:$0xff]  }
   0xa   :  { %v538_v27 = vld [vmem:[%s687_s0 + $0xe4] ss:$8 sps:$4 sm:$0xff]   ;;  %v533_v29 = vld [vmem:[%s687_s0 + $0xa0] ss:$8 sps:$4 sm:$0xff]   ;;  %v544_v33 = vld [vmem:[%s687_s0 + $0xf4] ss:$8 sps:$4 sm:$0xff]  }
   0xb   :  { %79 = vmatpush1.bf16.msra.mxu0 %v512_v11  ;;  %v405_v28 = vld [vmem:[%s689_s2] sm:$0xff]  ;;  %v406_v31 = vld [vmem:[%s689_s2 + $0x8] sm:$0xf]  ;;  %v539_v34 = vld [vmem:[%s687_s0 + $0xb0] ss:$8 sps:$4 sm:$0xff]  }
   0xc   :  { %171 = vmatpush1.bf16.msra.mxu1 %v513_v12  ;;  %80 = vmatprep.subr.bf16.mxu0 %v514_v13  ;;  %v536_v30 = vld [vmem:[%s687_s0 + $0xe0] ss:$8 sps:$4 sm:$0xff]   ;;  %v542_v35 = vld [vmem:[%s687_s0 + $0xf0] ss:$8 sps:$4 sm:$0xff]  }
   0xd   :  { %172 = vmatprep.subr.bf16.mxu1 %v516_v14  ;;  %409 = vperm.xlu0 %495, %v405_v28  }
   0xf   :  { %81 = vmatpush1.bf16.msra.mxu0 %v518_v15 }
  0x10   :  { %173 = vmatpush1.bf16.msra.mxu1 %v519_v16  ;;  %262 = vmatprep.subr.bf16.mxu0 %v523_v17 }
  0x11   :  { %358 = vmatprep.subr.bf16.mxu1 %v526_v18  ;;  %414 = vperm.xlu0 %495, %v406_v31  }
  0x12   :  { %442 = vmatmul.mubr.msk.bf16.vlgmr.msra.gmra.mrb[0].mxu0 %vm70_vm0, %v520_v19 }
  0x13   :  { %459 = vmatmul.mubr.msk.bf16.vlgmr.msra.gmra.mrb[0].mxu1 %vm70_vm0, %v520_v19  ;;  %263 = vmatpush1.bf16.msra.mxu0 %v521_v20 }
  0x14   :  { %359 = vmatpush1.bf16.msra.mxu1 %v524_v21  ;;  %264 = vmatprep.subr.bf16.mxu0 %v529_v22 }
  0x15   :  { %360 = vmatprep.subr.bf16.mxu1 %v532_v23  ;;  %294 = vmatprep.mubr.bf16.mxu0 %v545_v1 }
  0x16   :  { %390 = vmatprep.mubr.bf16.mxu1 %v545_v1 }
  0x17   :  { %265 = vmatpush1.bf16.msra.mxu0 %v527_v24 }
  0x18   :  { %361 = vmatpush1.bf16.msra.mxu1 %v530_v25  ;;  %266 = vmatprep.subr.bf16.mxu0 %v535_v26 }
  0x19   :  { %362 = vmatprep.subr.bf16.mxu1 %v538_v27 }
  0x1b   :  { %267 = vmatpush1.bf16.msra.mxu0 %v533_v29 }
  0x1c   :  { %363 = vmatpush1.bf16.msra.mxu1 %v536_v30  ;;  %268 = vmatprep.subr.bf16.mxu0 %v541_v32 }
  0x1d   :  { %364 = vmatprep.subr.bf16.mxu1 %v544_v33 }
  0x1f   :  { %269 = vmatpush1.bf16.msra.mxu0 %v539_v34 }
  0x20   :  { %365 = vmatpush1.bf16.msra.mxu1 %v542_v35 }
  0x22   :  { %476 = vmatmul.mubr.msk.bf16.vlgmr.msra.gmra.mrb[4].mxu0 %vm70_vm0, %v520_v19 }
  0x23   :  { %493 = vmatmul.mubr.msk.bf16.vlgmr.msra.gmra.mrb[4].mxu1 %vm70_vm0, %v520_v19 }
  0x8c   :  { %v410_v48 = vpop.permute.xlu0 %409 }
  0x90   :  { %v415_v2 = vpop.permute.xlu0 %414 }
  0xe5   :  { %v108_v36 = vpop.f32.mrb[0].mxu0 }
  0xe6   :  { %v200_v37 = vpop.f32.mrb[0].mxu1  ;;  %v110_v39 = vpop.f32.mrb[1].mxu0 }
  0xe7   :  { %v209_v38 = vmax.f32 %v108_v36, %v200_v37  ;;  %v202_v40 = vpop.f32.mrb[1].mxu1  ;;  %v112_v42 = vpop.f32.mrb[2].mxu0 }
  0xe8   :  { %v210_v41 = vmax.f32 %v110_v39, %v202_v40  ;;  %v204_v43 = vpop.f32.mrb[2].mxu1  ;;  %v114_v45 = vpop.f32.mrb[3].mxu0 }
  0xe9   :  { %v211_v44 = vmax.f32 %v112_v42, %v204_v43  ;;  %v206_v46 = vpop.f32.mrb[3].mxu1 }
  0xea   :  { %v212_v47 = vmax.f32 %v114_v45, %v206_v46 }
  0xf5   :  { %v296_v49 = vpop.f32.mrb[4].mxu0 }
  0xf6   :  { %v392_v50 = vpop.f32.mrb[4].mxu1  ;;  %v305_v51 = vmax.f32 %v209_v38, %v296_v49  ;;  %v298_v52 = vpop.f32.mrb[5].mxu0 }
  0xf7   :  { %v394_v53 = vpop.f32.mrb[5].mxu1  ;;  %v306_v54 = vmax.f32 %v210_v41, %v298_v52  ;;  %v300_v55 = vpop.f32.mrb[6].mxu0 }
  0xf8   :  { %v396_v56 = vpop.f32.mrb[6].mxu1  ;;  %v401_v57 = vmax.f32 %v305_v51, %v392_v50  ;;  %v307_v58 = vmax.f32 %v211_v44, %v300_v55  ;;  %v302_v59 = vpop.f32.mrb[7].mxu0 }
  0xf9   :  { %v398_v60 = vpop.f32.mrb[7].mxu1  ;;  %v402_v61 = vmax.f32 %v306_v54, %v394_v53  ;;  %v308_v62 = vmax.f32 %v212_v47, %v302_v59 }
  0xfa   :  { %v417_v63 = vadd.f32 %v410_v48, %v401_v57  ;;  %v403_v0 = vmax.f32 %v307_v58, %v396_v56 }
  0xfb   :  { %v418_v1 = vadd.f32 %v410_v48, %v402_v61  ;;  %v404_v3 = vmax.f32 %v308_v62, %v398_v60 }
  0xfc   :  { %v421_v4 = vmax.f32 %v417_v63, 0.0  ;;  %v419_v5 = vadd.f32 %v415_v2, %v403_v0 }
  0xfd   :  { %v422_v6 = vmax.f32 %v418_v1, 0.0  ;;  %v420_v7 = vadd.f32 %v415_v2, %v404_v3 }
  0xfe   :  { %425 = vst [vmem:[%s690_s3] sm:$0xff] %v421_v4  ;;  %v423_v8 = vmax.f32 %v419_v5, 0.0 }
  0xff   :  { %426 = vst [vmem:[%s690_s3 + $0x8] sm:$0xff] %v422_v6  ;;  %v424_v9 = vmax.f32 %v420_v7, 0.0 }
 0x100   :  { %427 = vst [vmem:[%s690_s3 + $0x10] sm:$0xf] %v423_v8 }
 0x101   :  { %428 = vst [vmem:[%s690_s3 + $0x18] sm:$0xf] %v424_v9 }

// kernel: convnet_forward.8
= control target key start
LH: loop header
LB: loop body
LE: loop exit
PB: predicated region body
PF: predicated region fallthrough
CT: control target
= control target key end

     0   :  { %v206_v0 = vmov 0   ;;  %vm128_vm0 = vcmask 523264   ;;  %s272_s0 = inlined_call_operand.vmem [shape: bf16[192,128], index: 0, kind: input, shape index: {}]   ;;  %s273_s1 = inlined_call_operand.vmem [shape: bf16[4,192], index: 1, kind: input, shape index: {}]   ;;  %s274_s2 = inlined_call_operand.vmem [shape: f32[4,1], index: 2, kind: input, shape index: {}]   ;;  %s275_s3 = inlined_call_operand.vmem [shape: f32[4,128], index: 3, kind: output, shape index: {}]  }
   0x1   :  { %132 = vmatprep.subr.bf16.mxu0 %v206_v0  ;;  %v194_v1 = vld [vmem:[%s272_s0] sm:$0xff]   ;;  %193 = vset.pattern.permute.xlu0 %v206_v0  ;;  %v195_v2 = vld [vmem:[%s272_s0 + $0x8] sm:$0xff]   ;;  %v196_v3 = vld [vmem:[%s272_s0 + $0x10] sm:$0xff]  }
   0x2   :  { %133 = vmatpush1.bf16.msra.mxu0 %v194_v1  ;;  %v197_v4 = vld [vmem:[%s272_s0 + $0x18] sm:$0xff]   ;;  %v178_v5 = vld.sshfl [vmem:[%s273_s1] sm:$0x33 pattern:$0x76325410]  ;;  %v199_v9 = vld [vmem:[%s272_s0 + $0x28] sm:$0xff]  }
   0x3   :  { %134 = vmatprep.subr.bf16.mxu0 %v206_v0  ;;  %v40_v6 = vld [vmem:[%s274_s2] sm:$0xf]  ;;  %v54_v7 = vcombine.high %v178_v5, %v178_v5  ;;  %v200_v10 = vld [vmem:[%s272_s0 + $0x30] sm:$0xff]   ;;  %v201_v11 = vld [vmem:[%s272_s0 + $0x38] sm:$0xff]  }
   0x4   :  { %43 = vperm.xlu0 %193, %v40_v6   ;;  %v198_v8 = vld [vmem:[%s272_s0 + $0x20] sm:$0xff]   ;;  %v203_v13 = vld [vmem:[%s272_s0 + $0x48] sm:$0xff]   ;;  %v204_v14 = vld [vmem:[%s272_s0 + $0x50] sm:$0xff]  }
   0x5   :  { %191 = vmatprep.mubr.msk.bf16.mxu0 %vm128_vm0, %v54_v7  ;;  %v202_v12 = vld [vmem:[%s272_s0 + $0x40] sm:$0xff]   ;;  %v205_v15 = vld [vmem:[%s272_s0 + $0x58] sm:$0xff]  }
   0x6   :  { %135 = vmatpush1.bf16.msra.mxu0 %v195_v2 }
   0x7   :  { %136 = vmatprep.subr.bf16.mxu0 %v206_v0 }
   0xa   :  { %137 = vmatpush1.bf16.msra.mxu0 %v196_v3 }
   0xb   :  { %138 = vmatprep.subr.bf16.mxu0 %v206_v0 }
   0xe   :  { %139 = vmatpush1.bf16.msra.mxu0 %v197_v4 }
   0xf   :  { %140 = vmatprep.subr.bf16.mxu0 %v206_v0 }
  0x12   :  { %141 = vmatpush1.bf16.msra.mxu0 %v198_v8 }
  0x13   :  { %142 = vmatprep.subr.bf16.mxu0 %v206_v0 }
  0x16   :  { %143 = vmatpush1.bf16.msra.mxu0 %v199_v9 }
  0x17   :  { %144 = vmatprep.subr.bf16.mxu0 %v206_v0 }
  0x1a   :  { %145 = vmatpush1.bf16.msra.mxu0 %v200_v10 }
  0x1b   :  { %146 = vmatprep.subr.bf16.mxu0 %v206_v0 }
  0x1e   :  { %147 = vmatpush1.bf16.msra.mxu0 %v201_v11 }
  0x1f   :  { %148 = vmatprep.subr.bf16.mxu0 %v206_v0 }
  0x22   :  { %149 = vmatpush1.bf16.msra.mxu0 %v202_v12 }
  0x23   :  { %150 = vmatprep.subr.bf16.mxu0 %v206_v0 }
  0x26   :  { %151 = vmatpush1.bf16.msra.mxu0 %v203_v13 }
  0x27   :  { %152 = vmatprep.subr.bf16.mxu0 %v206_v0 }
  0x2a   :  { %153 = vmatpush1.bf16.msra.mxu0 %v204_v14 }
  0x2b   :  { %154 = vmatprep.subr.bf16.mxu0 %v206_v0 }
  0x2e   :  { %155 = vmatpush1.bf16.msra.mxu0 %v205_v15 }
  0x31   :  { %165 = vmatmul.mubr.bf16.vlgmr.msra.gmra.mrb[0].mxu0 %v178_v5 }
  0x83   :  { %v44_v16 = vpop.permute.xlu0 %43 }
 0x104   :  { %v166_v17 = vpop.f32.mrb[0].mxu0 }
 0x105   :  { %v167_v18 = vadd.f32 %v166_v17, %v44_v16  ;;  %v168_v19 = vpop.f32.mrb[1].mxu0 }
 0x106   :  { %v169_v20 = vpop.f32.mrb[2].mxu0 }
 0x107   :  { %v172_v21 = vmax.f32 %v167_v18, 0.0  ;;  %v170_v22 = vpop.f32.mrb[3].mxu0 }
 0x109   :  { %173 = vst [vmem:[%s275_s3] sm:$0xf] %v172_v21 }

// kernel: convnet_forward.9
= control target key start
LH: loop header
LB: loop body
LE: loop exit
PB: predicated region body
PF: predicated region fallthrough
CT: control target
= control target key end

     0   :  { %v649_v3 = vmov 0.0   ;;  %s1136_s1 = inlined_call_operand.vmem [shape: f32[128,1024], index: 1, kind: input, shape index: {}]   ;;  %s1137_s0 = inlined_call_operand.vmem [shape: f32[16,128], index: 0, kind: input, shape index: {}]   ;;  %s1138_s2 = inlined_call_operand.vmem [shape: f32[1,1024], index: 2, kind: input, shape index: {}]   ;;  %s1139_s3 = inlined_call_operand.vmem [shape: f32[16,512], index: 3, kind: output, shape index: {0}]   ;;  %s1140_s4 = inlined_call_operand.vmem [shape: f32[16,512], index: 4, kind: output, shape index: {1}]  }
   0x1   :  { %v19_v0 = vld [vmem:[%s1136_s1 + $0x8] sm:$0xff]  ;;  %v21_v2 = vld [vmem:[%s1136_s1 + $0x18] sm:$0xff]  ;;  %252 = vmatprep.mubr.f32.mxu0 %v649_v3  ;;  %329 = vmatprep.mubr.f32.mxu1 %v649_v3  ;;  %v18_v6 = vld [vmem:[%s1136_s1] sm:$0xff] }
   0x2   :  { %v27_v1 = vld [vmem:[%s1136_s1 + $0x48] sm:$0xff]  ;;  %v29_v5 = vld [vmem:[%s1136_s1 + $0x58] sm:$0xff]  ;;  %v26_v7 = vld [vmem:[%s1136_s1 + $0x40] sm:$0xff] }
   0x3   :  { %v520_v4 = vpack.c.bf16 %v27_v1, %v19_v0  ;;  %v552_v8 = vpack.c.bf16 %v29_v5, %v21_v2  ;;  %v522_v9 = vpack.c.bf16 %v26_v7, %v18_v6  ;;  %v20_v10 = vld [vmem:[%s1136_s1 + $0x10] sm:$0xff]  ;;  %v35_v12 = vld [vmem:[%s1136_s1 + $0x88] sm:$0xff]  ;;  %v37_v15 = vld [vmem:[%s1136_s1 + $0x98] sm:$0xff] }
   0x4   :  { %v28_v11 = vld [vmem:[%s1136_s1 + $0x50] sm:$0xff]  ;;  %v43_v14 = vld [vmem:[%s1136_s1 + $0xc8] sm:$0xff]  ;;  %v45_v16 = vld [vmem:[%s1136_s1 + $0xd8] sm:$0xff] }
   0x5   :  { %521 = vmatprep.subr.bf16.mxu0 %v520_v4  ;;  %v554_v13 = vpack.c.bf16 %v28_v11, %v20_v10  ;;  %553 = vmatprep.subr.bf16.mxu1 %v552_v8  ;;  %v524_v17 = vpack.c.bf16 %v43_v14, %v35_v12  ;;  %v556_v18 = vpack.c.bf16 %v45_v16, %v37_v15  ;;  %v34_v19 = vld [vmem:[%s1136_s1 + $0x80] sm:$0xff]  ;;  %v36_v21 = vld [vmem:[%s1136_s1 + $0x90] sm:$0xff]  ;;  %v51_v24 = vld [vmem:[%s1136_s1 + $0x108] sm:$0xff] }
   0x6   :  { %523 = vmatpush1.bf16.msra.mxu0 %v522_v9  ;;  %v42_v20 = vld [vmem:[%s1136_s1 + $0xc0] sm:$0xff]  ;;  %v44_v23 = vld [vmem:[%s1136_s1 + $0xd0] sm:$0xff]  ;;  %v59_v25 = vld [vmem:[%s1136_s1 + $0x148] sm:$0xff] }
   0x7   :  { %555 = vmatpush1.bf16.msra.mxu1 %v554_v13  ;;  %v526_v22 = vpack.c.bf16 %v42_v20, %v34_v19  ;;  %525 = vmatprep.subr.bf16.mxu0 %v524_v17  ;;  %v558_v26 = vpack.c.bf16 %v44_v23, %v36_v21  ;;  %v528_v27 = vpack.c.bf16 %v59_v25, %v51_v24  ;;  %v53_v28 = vld [vmem:[%s1136_s1 + $0x118] sm:$0xff]  ;;  %v50_v30 = vld [vmem:[%s1136_s1 + $0x100] sm:$0xff]  ;;  %v52_v33 = vld [vmem:[%s1136_s1 + $0x110] sm:$0xff] }
   0x8   :  { %557 = vmatprep.subr.bf16.mxu1 %v556_v18  ;;  %v61_v29 = vld [vmem:[%s1136_s1 + $0x158] sm:$0xff]  ;;  %v58_v32 = vld [vmem:[%s1136_s1 + $0x140] sm:$0xff]  ;;  %v60_v34 = vld [vmem:[%s1136_s1 + $0x150] sm:$0xff] }
   0x9   :  { %v560_v31 = vpack.c.bf16 %v61_v29, %v53_v28  ;;  %v530_v35 = vpack.c.bf16 %v58_v32, %v50_v30  ;;  %v67_v36 = vld [vmem:[%s1136_s1 + $0x188] sm:$0xff]  ;;  %v69_v38 = vld [vmem:[%s1136_s1 + $0x198] sm:$0xff]  ;;  %v562_v39 = vpack.c.bf16 %v60_v34, %v52_v33  ;;  %v66_v42 = vld [vmem:[%s1136_s1 + $0x180] sm:$0xff] }
   0xa   :  { %527 = vmatpush1.bf16.msra.mxu0 %v526_v22  ;;  %v75_v37 = vld [vmem:[%s1136_s1 + $0x1c8] sm:$0xff]  ;;  %v77_v41 = vld [vmem:[%s1136_s1 + $0x1d8] sm:$0xff]  ;;  %v74_v43 = vld [vmem:[%s1136_s1 + $0x1c0] sm:$0xff] }
   0xb   :  { %559 = vmatpush1.bf16.msra.mxu1 %v558_v26  ;;  %529 = vmatprep.subr.bf16.mxu0 %v528_v27  ;;  %v532_v40 = vpack.c.bf16 %v75_v37, %v67_v36  ;;  %v564_v44 = vpack.c.bf16 %v77_v41, %v69_v38  ;;  %v68_v45 = vld [vmem:[%s1136_s1 + $0x190] sm:$0xff]  ;;  %v83_v47 = vld [vmem:[%s1136_s1 + $0x208] sm:$0xff]  ;;  %v85_v49 = vld [vmem:[%s1136_s1 + $0x218] sm:$0xff]  ;;  %v534_v51 = vpack.c.bf16 %v74_v43, %v66_v42 }
   0xc   :  { %561 = vmatprep.subr.bf16.mxu1 %v560_v31  ;;  %v76_v46 = vld [vmem:[%s1136_s1 + $0x1d0] sm:$0xff]  ;;  %v91_v48 = vld [vmem:[%s1136_s1 + $0x248] sm:$0xff]  ;;  %v93_v50 = vld [vmem:[%s1136_s1 + $0x258] sm:$0xff] }
   0xd   :  { %v566_v52 = vpack.c.bf16 %v76_v46, %v68_v45  ;;  %v536_v53 = vpack.c.bf16 %v91_v48, %v83_v47  ;;  %v82_v54 = vld [vmem:[%s1136_s1 + $0x200] sm:$0xff]  ;;  %v84_v56 = vld [vmem:[%s1136_s1 + $0x210] sm:$0xff]  ;;  %v568_v57 = vpack.c.bf16 %v93_v50, %v85_v49  ;;  %v99_v59 = vld [vmem:[%s1136_s1 + $0x288] sm:$0xff] }
   0xe   :  { %531 = vmatpush1.bf16.msra.mxu0 %v530_v35  ;;  %v90_v55 = vld [vmem:[%s1136_s1 + $0x240] sm:$0xff]  ;;  %v92_v58 = vld [vmem:[%s1136_s1 + $0x250] sm:$0xff]  ;;  %v107_v60 = vld [vmem:[%s1136_s1 + $0x2c8] sm:$0xff] }
   0xf   :  { %563 = vmatpush1.bf16.msra.mxu1 %v562_v39  ;;  %533 = vmatprep.subr.bf16.mxu0 %v532_v40  ;;  %v101_v61 = vld [vmem:[%s1136_s1 + $0x298] sm:$0xff]  ;;  %v538_v63 = vpack.c.bf16 %v90_v55, %v82_v54  ;;  %v570_v0 = vpack.c.bf16 %v92_v58, %v84_v56  ;;  %v540_v1 = vpack.c.bf16 %v107_v60, %v99_v59  ;;  %v98_v2 = vld [vmem:[%s1136_s1 + $0x280] sm:$0xff]  ;;  %v100_v5 = vld [vmem:[%s1136_s1 + $0x290] sm:$0xff] }
  0x10   :  { %565 = vmatprep.subr.bf16.mxu1 %v564_v44  ;;  %v109_v62 = vld [vmem:[%s1136_s1 + $0x2d8] sm:$0xff]  ;;  %v106_v4 = vld [vmem:[%s1136_s1 + $0x2c0] sm:$0xff]  ;;  %v108_v7 = vld [vmem:[%s1136_s1 + $0x2d0] sm:$0xff] }
  0x11   :  { %v572_v6 = vpack.c.bf16 %v109_v62, %v101_v61  ;;  %v115_v8 = vld [vmem:[%s1136_s1 + $0x308] sm:$0xff]  ;;  %v117_v10 = vld [vmem:[%s1136_s1 + $0x318] sm:$0xff]  ;;  %v542_v12 = vpack.c.bf16 %v106_v4, %v98_v2  ;;  %v574_v13 = vpack.c.bf16 %v108_v7, %v100_v5  ;;  %v114_v15 = vld [vmem:[%s1136_s1 + $0x300] sm:$0xff] }
  0x12   :  { %535 = vmatpush1.bf16.msra.mxu0 %v534_v51  ;;  %v123_v9 = vld [vmem:[%s1136_s1 + $0x348] sm:$0xff]  ;;  %v125_v11 = vld [vmem:[%s1136_s1 + $0x358] sm:$0xff]  ;;  %v122_v16 = vld [vmem:[%s1136_s1 + $0x340] sm:$0xff] }
  0x13   :  { %567 = vmatpush1.bf16.msra.mxu1 %v566_v52  ;;  %537 = vmatprep.subr.bf16.mxu0 %v536_v53  ;;  %v544_v14 = vpack.c.bf16 %v123_v9, %v115_v8  ;;  %v116_v17 = vld [vmem:[%s1136_s1 + $0x310] sm:$0xff]  ;;  %v576_v18 = vpack.c.bf16 %v125_v11, %v117_v10  ;;  %v131_v20 = vld [vmem:[%s1136_s1 + $0x388] sm:$0xff]  ;;  %v133_v22 = vld [vmem:[%s1136_s1 + $0x398] sm:$0xff]  ;;  %v546_v24 = vpack.c.bf16 %v122_v16, %v114_v15 }
  0x14   :  { %569 = vmatprep.subr.bf16.mxu1 %v568_v57  ;;  %v124_v19 = vld [vmem:[%s1136_s1 + $0x350] sm:$0xff]  ;;  %v139_v21 = vld [vmem:[%s1136_s1 + $0x3c8] sm:$0xff]  ;;  %v141_v23 = vld [vmem:[%s1136_s1 + $0x3d8] sm:$0xff] }
  0x15   :  { %v578_v25 = vpack.c.bf16 %v124_v19, %v116_v17  ;;  %v548_v26 = vpack.c.bf16 %v139_v21, %v131_v20  ;;  %v130_v27 = vld [vmem:[%s1136_s1 + $0x380] sm:$0xff]  ;;  %v132_v29 = vld [vmem:[%s1136_s1 + $0x390] sm:$0xff]  ;;  %v580_v30 = vpack.c.bf16 %v141_v23, %v133_v22  ;;  %v23_v32 = vld [vmem:[%s1136_s1 + $0x28] sm:$0xff] }
  0x16   :  { %539 = vmatpush1.bf16.msra.mxu0 %v538_v63  ;;  %v138_v28 = vld [vmem:[%s1136_s1 + $0x3c0] sm:$0xff]  ;;  %v140_v31 = vld [vmem:[%s1136_s1 + $0x3d0] sm:$0xff]  ;;  %v31_v33 = vld [vmem:[%s1136_s1 + $0x68] sm:$0xff] }
  0x17   :  { %571 = vmatpush1.bf16.msra.mxu1 %v570_v0  ;;  %541 = vmatprep.subr.bf16.mxu0 %v540_v1  ;;  %v25_v34 = vld [vmem:[%s1136_s1 + $0x38] sm:$0xff]  ;;  %v550_v36 = vpack.c.bf16 %v138_v28, %v130_v27  ;;  %v582_v37 = vpack.c.bf16 %v140_v31, %v132_v29  ;;  %v584_v38 = vpack.c.bf16 %v31_v33, %v23_v32  ;;  %v22_v39 = vld [vmem:[%s1136_s1 + $0x20] sm:$0xff]  ;;  %v24_v41 = vld [vmem:[%s1136_s1 + $0x30] sm:$0xff] }
  0x18   :  { %573 = vmatprep.subr.bf16.mxu1 %v572_v6  ;;  %v33_v35 = vld [vmem:[%s1136_s1 + $0x78] sm:$0xff]  ;;  %v30_v40 = vld [vmem:[%s1136_s1 + $0x60] sm:$0xff]  ;;  %v32_v43 = vld [vmem:[%s1136_s1 + $0x70] sm:$0xff] }
  0x19   :  { %v616_v42 = vpack.c.bf16 %v33_v35, %v25_v34  ;;  %v39_v44 = vld [vmem:[%s1136_s1 + $0xa8] sm:$0xff]  ;;  %v41_v46 = vld [vmem:[%s1136_s1 + $0xb8] sm:$0xff]  ;;  %v908_v48 = vld [vmem:[%s1137_s0] sm:$0xff]  ;;  %v586_v49 = vpack.c.bf16 %v30_v40, %v22_v39  ;;  %v618_v50 = vpack.c.bf16 %v32_v43, %v24_v41 }
  0x1a   :  { %543 = vmatpush1.bf16.msra.mxu0 %v542_v12  ;;  %v47_v45 = vld [vmem:[%s1136_s1 + $0xe8] sm:$0xff]  ;;  %v49_v47 = vld [vmem:[%s1136_s1 + $0xf8] sm:$0xff]  ;;  %v38_v52 = vld [vmem:[%s1136_s1 + $0xa0] sm:$0xff] }
  0x1b   :  { %575 = vmatpush1.bf16.msra.mxu1 %v574_v13  ;;  %545 = vmatprep.subr.bf16.mxu0 %v544_v14  ;;  %v588_v51 = vpack.c.bf16 %v47_v45, %v39_v44  ;;  %v46_v53 = vld [vmem:[%s1136_s1 + $0xe0] sm:$0xff]  ;;  %v40_v54 = vld [vmem:[%s1136_s1 + $0xb0] sm:$0xff]  ;;  %v620_v55 = vpack.c.bf16 %v49_v47, %v41_v46  ;;  %v55_v57 = vld [vmem:[%s1136_s1 + $0x128] sm:$0xff] }
  0x1c   :  { %577 = vmatprep.subr.bf16.mxu1 %v576_v18  ;;  %v48_v56 = vld [vmem:[%s1136_s1 + $0xf0] sm:$0xff]  ;;  %v63_v58 = vld [vmem:[%s1136_s1 + $0x168] sm:$0xff]  ;;  %v57_v59 = vld [vmem:[%s1136_s1 + $0x138] sm:$0xff]  ;;  %v590_v61 = vpack.c.bf16 %v46_v53, %v38_v52 }
  0x1d   :  { %v65_v60 = vld [vmem:[%s1136_s1 + $0x178] sm:$0xff]  ;;  %v622_v62 = vpack.c.bf16 %v48_v56, %v40_v54  ;;  %v592_v63 = vpack.c.bf16 %v63_v58, %v55_v57  ;;  %v54_v0 = vld [vmem:[%s1136_s1 + $0x120] sm:$0xff]  ;;  %v56_v2 = vld [vmem:[%s1136_s1 + $0x130] sm:$0xff] }
  0x1e   :  { %547 = vmatpush1.bf16.msra.mxu0 %v546_v24  ;;  %v62_v1 = vld [vmem:[%s1136_s1 + $0x160] sm:$0xff]  ;;  %v624_v4 = vpack.c.bf16 %v65_v60, %v57_v59  ;;  %v64_v5 = vld [vmem:[%s1136_s1 + $0x170] sm:$0xff]  ;;  %v71_v6 = vld [vmem:[%s1136_s1 + $0x1a8] sm:$0xff] }
  0x1f   :  { %579 = vmatpush1.bf16.msra.mxu1 %v578_v25  ;;  %549 = vmatprep.subr.bf16.mxu0 %v548_v26  ;;  %v79_v7 = vld [vmem:[%s1136_s1 + $0x1e8] sm:$0xff]  ;;  %v73_v8 = vld [vmem:[%s1136_s1 + $0x1b8] sm:$0xff]  ;;  %v594_v10 = vpack.c.bf16 %v62_v1, %v54_v0  ;;  %v626_v12 = vpack.c.bf16 %v64_v5, %v56_v2  ;;  %v70_v14 = vld [vmem:[%s1136_s1 + $0x1a0] sm:$0xff] }
  0x20   :  { %581 = vmatprep.subr.bf16.mxu1 %v580_v30  ;;  %v81_v9 = vld [vmem:[%s1136_s1 + $0x1f8] sm:$0xff]  ;;  %v965_v11 = vld [vmem:[%s1137_s0 + $0x8] sm:$0xff]  ;;  %v596_v13 = vpack.c.bf16 %v79_v7, %v71_v6  ;;  %v78_v15 = vld [vmem:[%s1136_s1 + $0x1e0] sm:$0xff]  ;;  %v148_v7 = vlaneseq }
  0x21   :  { %v72_v16 = vld [vmem:[%s1136_s1 + $0x1b0] sm:$0xff]  ;;  %v628_v17 = vpack.c.bf16 %v81_v9, %v73_v8  ;;  %v87_v19 = vld [vmem:[%s1136_s1 + $0x228] sm:$0xff]  ;;  %v89_v21 = vld [vmem:[%s1136_s1 + $0x238] sm:$0xff]  ;;  %v598_v23 = vpack.c.bf16 %v78_v15, %v70_v14 }
  0x22   :  { %551 = vmatpush1.bf16.msra.mxu0 %v550_v36  ;;  %v80_v18 = vld [vmem:[%s1136_s1 + $0x1f0] sm:$0xff]  ;;  %v95_v20 = vld [vmem:[%s1136_s1 + $0x268] sm:$0xff]  ;;  %v97_v22 = vld [vmem:[%s1136_s1 + $0x278] sm:$0xff]  ;;  %v149_v8 = vshrl.u32 %v148_v7, 7 }
  0x23   :  { %583 = vmatpush1.bf16.msra.mxu1 %v582_v37  ;;  %585 = vmatprep.subr.bf16.mxu0 %v584_v38  ;;  %v630_v24 = vpack.c.bf16 %v80_v18, %v72_v16  ;;  %v600_v25 = vpack.c.bf16 %v95_v20, %v87_v19  ;;  %v86_v26 = vld [vmem:[%s1136_s1 + $0x220] sm:$0xff]  ;;  %v88_v28 = vld [vmem:[%s1136_s1 + $0x230] sm:$0xff]  ;;  %v632_v29 = vpack.c.bf16 %v97_v22, %v89_v21  ;;  %v103_v31 = vld [vmem:[%s1136_s1 + $0x2a8] sm:$0xff] }
  0x24   :  { %617 = vmatprep.subr.bf16.mxu1 %v616_v42  ;;  %v94_v27 = vld [vmem:[%s1136_s1 + $0x260] sm:$0xff]  ;;  %v96_v30 = vld [vmem:[%s1136_s1 + $0x270] sm:$0xff]  ;;  %v111_v32 = vld [vmem:[%s1136_s1 + $0x2e8] sm:$0xff]  ;;  %v150_v9 = vsub.s32 0, %v149_v8  ;;  %v162_v14 = vsub.s32 3, %v149_v8 }
  0x25   :  { %253 = vmatmul.mubr.f32.vlgmr.msra.gmra.mrb[0].mxu0 %v908_v48  ;;  %v105_v33 = vld [vmem:[%s1136_s1 + $0x2b8] sm:$0xff]  ;;  %v602_v35 = vpack.c.bf16 %v94_v27, %v86_v26  ;;  %v634_v36 = vpack.c.bf16 %v96_v30, %v88_v28  ;;  %v604_v37 = vpack.c.bf16 %v111_v32, %v103_v31  ;;  %v102_v38 = vld [vmem:[%s1136_s1 + $0x2a0] sm:$0xff]  ;;  %v104_v40 = vld [vmem:[%s1136_s1 + $0x2b0] sm:$0xff]  ;;  %v166_v32 = vsub.s32 4, %v149_v8 }
  0x26   :  { %330 = vmatmul.mubr.f32.vlgmr.msra.gmra.mrb[0].mxu1 %v908_v48  ;;  %587 = vmatpush1.bf16.msra.mxu0 %v586_v49  ;;  %v113_v34 = vld [vmem:[%s1136_s1 + $0x2f8] sm:$0xff]  ;;  %v110_v39 = vld [vmem:[%s1136_s1 + $0x2e0] sm:$0xff]  ;;  %v112_v42 = vld [vmem:[%s1136_s1 + $0x2f0] sm:$0xff] }
  0x27   :  { %619 = vmatpush1.bf16.msra.mxu1 %v618_v50  ;;  %589 = vmatprep.subr.bf16.mxu0 %v588_v51  ;;  %v636_v41 = vpack.c.bf16 %v113_v34, %v105_v33  ;;  %v119_v43 = vld [vmem:[%s1136_s1 + $0x328] sm:$0xff]  ;;  %v121_v45 = vld [vmem:[%s1136_s1 + $0x338] sm:$0xff]  ;;  %v606_v47 = vpack.c.bf16 %v110_v39, %v102_v38  ;;  %v638_v49 = vpack.c.bf16 %v112_v42, %v104_v40  ;;  %v118_v51 = vld [vmem:[%s1136_s1 + $0x320] sm:$0xff]  ;;  %v174_v33 = vsub.s32 6, %v149_v8 }
  0x28   :  { %621 = vmatprep.subr.bf16.mxu1 %v620_v55  ;;  %258 = vmatprep.mubr.f32.mxu0 %v649_v3  ;;  %v127_v44 = vld [vmem:[%s1136_s1 + $0x368] sm:$0xff]  ;;  %v129_v46 = vld [vmem:[%s1136_s1 + $0x378] sm:$0xff]  ;;  %v126_v52 = vld [vmem:[%s1136_s1 + $0x360] sm:$0xff]  ;;  %v170_v34 = vsub.s32 5, %v149_v8 }
  0x29   :  { %335 = vmatprep.mubr.f32.mxu1 %v649_v3  ;;  %259 = vmatmul.mubr.f32.gmra.mrb[2].mxu0 %v965_v11  ;;  %v608_v50 = vpack.c.bf16 %v127_v44, %v119_v43  ;;  %v120_v53 = vld [vmem:[%s1136_s1 + $0x330] sm:$0xff]  ;;  %v640_v54 = vpack.c.bf16 %v129_v46, %v121_v45  ;;  %v135_v56 = vld [vmem:[%s1136_s1 + $0x3a8] sm:$0xff]  ;;  %v137_v58 = vld [vmem:[%s1136_s1 + $0x3b8] sm:$0xff]  ;;  %v610_v60 = vpack.c.bf16 %v126_v52, %v118_v51 }
  0x2a   :  { %591 = vmatpush1.bf16.msra.mxu0 %v590_v61  ;;  %336 = vmatmul.mubr.f32.gmra.mrb[2].mxu1 %v965_v11  ;;  %v128_v55 = vld [vmem:[%s1136_s1 + $0x370] sm:$0xff]  ;;  %v143_v57 = vld [vmem:[%s1136_s1 + $0x3e8] sm:$0xff]  ;;  %v145_v59 = vld [vmem:[%s1136_s1 + $0x3f8] sm:$0xff] }
  0x2b   :  { %623 = vmatpush1.bf16.msra.mxu1 %v622_v62  ;;  %593 = vmatprep.subr.bf16.mxu0 %v592_v63  ;;  %v642_v61 = vpack.c.bf16 %v128_v55, %v120_v53  ;;  %v612_v62 = vpack.c.bf16 %v143_v57, %v135_v56  ;;  %v134_v63 = vld [vmem:[%s1136_s1 + $0x3a0] sm:$0xff]  ;;  %v644_v1 = vpack.c.bf16 %v145_v59, %v137_v58  ;;  %v136_v2 = vld [vmem:[%s1136_s1 + $0x3b0] sm:$0xff] }
  0x2c   :  { %625 = vmatprep.subr.bf16.mxu1 %v624_v4  ;;  %406 = vmatprep.mubr.f32.mxu0 %v649_v3  ;;  %v142_v0 = vld [vmem:[%s1136_s1 + $0x3e0] sm:$0xff]  ;;  %v144_v4 = vld [vmem:[%s1136_s1 + $0x3f0] sm:$0xff] }
  0x2d   :  { %483 = vmatprep.mubr.f32.mxu1 %v649_v3  ;;  %v614_v5 = vpack.c.bf16 %v142_v0, %v134_v63  ;;  %v646_v6 = vpack.c.bf16 %v144_v4, %v136_v2 }
  0x2e   :  { %595 = vmatpush1.bf16.msra.mxu0 %v594_v10  ;;  %v146_v10 = vld [vmem:[%s1138_s2] sm:$0xff] }
  0x2f   :  { %627 = vmatpush1.bf16.msra.mxu1 %v626_v12  ;;  %597 = vmatprep.subr.bf16.mxu0 %v596_v13  ;;  %v158_v12 = vsub.s32 2, %v149_v8  ;;  %v154_v13 = vsub.s32 1, %v149_v8  ;;  %v151_v15 = vrot.slane %v146_v10, %v150_v9  ;;  %v171_v38 = vrot.slane %v146_v10, %v170_v34 }
  0x30   :  { %629 = vmatprep.subr.bf16.mxu1 %v628_v17  ;;  %v163_v17 = vrot.slane %v146_v10, %v162_v14 }
  0x31   :  { %v155_v16 = vrot.slane %v146_v10, %v154_v13 }
  0x32   :  { %599 = vmatpush1.bf16.msra.mxu0 %v598_v23 }
  0x33   :  { %631 = vmatpush1.bf16.msra.mxu1 %v630_v24  ;;  %601 = vmatprep.subr.bf16.mxu0 %v600_v25 }
  0x34   :  { %633 = vmatprep.subr.bf16.mxu1 %v632_v29 }
  0x36   :  { %603 = vmatpush1.bf16.msra.mxu0 %v602_v35  ;;  %v178_v35 = vsub.s32 7, %v149_v8 }
  0x37   :  { %635 = vmatpush1.bf16.msra.mxu1 %v634_v36  ;;  %605 = vmatprep.subr.bf16.mxu0 %v604_v37  ;;  %v167_v36 = vrot.slane %v146_v10, %v166_v32  ;;  %v175_v37 = vrot.slane %v146_v10, %v174_v33 }
  0x38   :  { %637 = vmatprep.subr.bf16.mxu1 %v636_v41  ;;  %v179_v39 = vrot.slane %v146_v10, %v178_v35 }
  0x3a   :  { %607 = vmatpush1.bf16.msra.mxu0 %v606_v47 }
  0x3b   :  { %639 = vmatpush1.bf16.msra.mxu1 %v638_v49  ;;  %609 = vmatprep.subr.bf16.mxu0 %v608_v50 }
  0x3c   :  { %641 = vmatprep.subr.bf16.mxu1 %v640_v54 }
  0x3e   :  { %611 = vmatpush1.bf16.msra.mxu0 %v610_v60 }
  0x3f   :  { %643 = vmatpush1.bf16.msra.mxu1 %v642_v61  ;;  %613 = vmatprep.subr.bf16.mxu0 %v612_v62 }
  0x40   :  { %645 = vmatprep.subr.bf16.mxu1 %v644_v1 }
  0x42   :  { %615 = vmatpush1.bf16.msra.mxu0 %v614_v5 }
  0x43   :  { %647 = vmatpush1.bf16.msra.mxu1 %v646_v6 }
  0x45   :  { %407 = vmatmul.mubr.f32.vlgmr.msra.gmra.mrb[4].mxu0 %v908_v48 }
  0x46   :  { %484 = vmatmul.mubr.f32.vlgmr.msra.gmra.mrb[4].mxu1 %v908_v48  ;;  %412 = vmatprep.mubr.f32.mxu0 %v649_v3  ;;  %v159_v48 = vrot.slane %v146_v10, %v158_v12 }
  0x47   :  { %489 = vmatprep.mubr.f32.mxu1 %v649_v3 }
  0x49   :  { %413 = vmatmul.mubr.f32.gmra.mrb[6].mxu0 %v965_v11 }
  0x4a   :  { %490 = vmatmul.mubr.f32.gmra.mrb[6].mxu1 %v965_v11 }
  0xf8   :  { %v254_v18 = vpop.f32.mrb[0].mxu0 }
  0xf9   :  { %v255_v3 = vadd.f32 %v254_v18, %v151_v15  ;;  %v331_v19 = vpop.f32.mrb[0].mxu1  ;;  %v256_v20 = vpop.f32.mrb[1].mxu0 }
  0xfa   :  { %v332_v21 = vadd.f32 %v331_v19, %v159_v48  ;;  %v257_v11 = vadd.f32 %v256_v20, %v155_v16  ;;  %v333_v22 = vpop.f32.mrb[1].mxu1 }
  0xfb   :  { %496 = vst [vmem:[%s1139_s3] sm:$0xff] %v255_v3  ;;  %v334_v23 = vadd.f32 %v333_v22, %v163_v17 }
  0xfc   :  { %498 = vst [vmem:[%s1139_s3 + $0x10] sm:$0xff] %v332_v21  ;;  %497 = vst [vmem:[%s1139_s3 + $0x8] sm:$0xff] %v257_v11  ;;  %v260_v24 = vpop.f32.mrb[2].mxu0 }
  0xfd   :  { %499 = vst [vmem:[%s1139_s3 + $0x18] sm:$0xff] %v334_v23  ;;  %v261_v25 = vadd.f32 %v260_v24, %v151_v15  ;;  %v337_v26 = vpop.f32.mrb[2].mxu1  ;;  %v262_v27 = vpop.f32.mrb[3].mxu0 }
  0xfe   :  { %v338_v28 = vadd.f32 %v337_v26, %v159_v48  ;;  %v263_v29 = vadd.f32 %v262_v27, %v155_v16  ;;  %v339_v30 = vpop.f32.mrb[3].mxu1 }
  0xff   :  { %500 = vst [vmem:[%s1139_s3 + $0x20] sm:$0xff] %v261_v25  ;;  %v340_v31 = vadd.f32 %v339_v30, %v163_v17 }
 0x100   :  { %502 = vst [vmem:[%s1139_s3 + $0x30] sm:$0xff] %v338_v28  ;;  %501 = vst [vmem:[%s1139_s3 + $0x28] sm:$0xff] %v263_v29 }
 0x101   :  { %503 = vst [vmem:[%s1139_s3 + $0x38] sm:$0xff] %v340_v31 }
 0x118   :  { %v408_v40 = vpop.f32.mrb[4].mxu0 }
 0x119   :  { %v409_v41 = vadd.f32 %v408_v40, %v167_v36  ;;  %v485_v42 = vpop.f32.mrb[4].mxu1  ;;  %v410_v43 = vpop.f32.mrb[5].mxu0 }
 0x11a   :  { %v486_v44 = vadd.f32 %v485_v42, %v175_v37  ;;  %v411_v45 = vadd.f32 %v410_v43, %v171_v38  ;;  %v487_v46 = vpop.f32.mrb[5].mxu1 }
 0x11b   :  { %504 = vst [vmem:[%s1140_s4] sm:$0xff] %v409_v41  ;;  %v488_v47 = vadd.f32 %v487_v46, %v179_v39 }
 0x11c   :  { %506 = vst [vmem:[%s1140_s4 + $0x10] sm:$0xff] %v486_v44  ;;  %505 = vst [vmem:[%s1140_s4 + $0x8] sm:$0xff] %v411_v45  ;;  %v414_v49 = vpop.f32.mrb[6].mxu0 }
 0x11d   :  { %507 = vst [vmem:[%s1140_s4 + $0x18] sm:$0xff] %v488_v47  ;;  %v415_v50 = vadd.f32 %v414_v49, %v167_v36  ;;  %v491_v51 = vpop.f32.mrb[6].mxu1  ;;  %v416_v52 = vpop.f32.mrb[7].mxu0 }
 0x11e   :  { %v492_v53 = vadd.f32 %v491_v51, %v175_v37  ;;  %v417_v54 = vadd.f32 %v416_v52, %v171_v38  ;;  %v493_v55 = vpop.f32.mrb[7].mxu1 }
 0x11f   :  { %508 = vst [vmem:[%s1140_s4 + $0x20] sm:$0xff] %v415_v50  ;;  %v494_v56 = vadd.f32 %v493_v55, %v179_v39 }
 0x120   :  { %510 = vst [vmem:[%s1140_s4 + $0x30] sm:$0xff] %v492_v53  ;;  %509 = vst [vmem:[%s1140_s4 + $0x28] sm:$0xff] %v417_v54 }
 0x121   :  { %511 = vst [vmem:[%s1140_s4 + $0x38] sm:$0xff] %v494_v56 }

// kernel: convnet_forward.10
= control target key start
LH: loop header
LB: loop body
LE: loop exit
PB: predicated region body
PF: predicated region fallthrough
CT: control target
= control target key end

     0   :  { %s1371_s15 = smov 0   ;;  %s2188_s0 = inlined_call_operand.vmem [shape: f32[8,2,512], index: 0, kind: input, shape index: {}]   ;;  %s2189_s1 = inlined_call_operand.vmem [shape: f32[8,2,512], index: 1, kind: input, shape index: {}]   ;;  %s2190_s2 = inlined_call_operand.vmem [shape: f32[256,1024], index: 2, kind: input, shape index: {}]   ;;  %s2191_s3 = inlined_call_operand.vmem [shape: f32[8,2,128], index: 3, kind: output, shape index: {0}]   ;;  %s2192_s4 = inlined_call_operand.vmem [shape: f32[8,2,128], index: 4, kind: output, shape index: {1}]  }
   0x1 LB: > { %s1015_s16 = sadd.s32 4294967295, %s1342_s15   ;;  %p1019_p0 = scmp.ge.s32.totalorder %s1342_s15, 1  ;;  %s1342_s15 = sphi %s1371_s15, %s15_s15  }
   0x2   : > { %p181_p1 = scmp.lt.s32.totalorder %s1342_s15, 9 }
   0x4   : > { %p182_p2 = pnand %p1019_p0, %p181_p1 }
   0x5   : > { %p217_p3 = scmp.lt.s32.totalorder (!%p182_p2), %s1015_s16, 7  ;;  %s222_s17 = ssub.s32 (!%p182_p2), 7, %s1015_s16 }
   0x6   : > { %185 = sbr.rel (%p182_p2) target bundleno = 421 (0x1a5), region = 32  ;;  %p223_p4 = scmp.lt.s32.totalorder (!%p182_p2), %s222_s17, 7 }
   0x7   : > { %p1026_p5 = scmp.ne.s32.totalorder (!%p182_p2), %s1015_s16, 0 }
   0xd   : > { %s218_s18 = scalar_select %p217_p3, %s1015_s16, 7 }
   0xe   : > { %s2194_s17 = smov (!%p223_p4, %s222_s17), 7  ;;  %242 = sbr.rel (%p1026_p5) target bundleno = 21 (0x15), region = 36 }
   0xf   : > { %s1036_s19 = sshll.u32 %s218_s18, 3  ;;  %s1024_s20 = sshll.u32 %s218_s18, 1  ;;  %v1344_v0 = vmov (!%p1026_p5), 0.0  }
  0x10   : > { %s1382_s23 = scalar_lea.vmem %s2188_s0, %s1036_s19  ;;  %s1037_s24 = sshll.u32 %s2194_s17, 3  ;;  %243 = vst [vmem:[#allocation2] sm:$0xf] (!%p1026_p5), %v1344_v0  ;;  %244 = vst [vmem:[#allocation3] sm:$0x3] (!%p1026_p5), %v1344_v0 }
  0x11   : > { %s1387_s27 = scalar_lea.vmem %s2189_s1, %s1037_s24  ;;  %s1392_s30 = scalar_lea.vmem %s2191_s3, %s1024_s20  ;;  %245 = vst [vmem:[#allocation4] sm:$0x3] (!%p1026_p5), %v1344_v0 }
  0x12   : > { %s1025_s5 = sshll.u32 %s2194_s17, 1 }
  0x13   : > { %s1397_s8 = scalar_lea.vmem %s2192_s4, %s1025_s5 }
  0x15 PF: > { %v248_v1 = vld [vmem:[%s2190_s2 + $0x8] sm:$0xff]  ;;  %v250_v3 = vld [vmem:[%s2190_s2 + $0x18] sm:$0xff]  ;;  %v247_v6 = vld [vmem:[%s2190_s2] sm:$0xff] }
  0x16   : > { %v256_v2 = vld [vmem:[%s2190_s2 + $0x48] sm:$0xff]  ;;  %v258_v5 = vld [vmem:[%s2190_s2 + $0x58] sm:$0xff]  ;;  %v255_v7 = vld [vmem:[%s2190_s2 + $0x40] sm:$0xff] }
  0x17   : > { %v1038_v4 = vpack.c.bf16 %v256_v2, %v248_v1  ;;  %v1102_v8 = vpack.c.bf16 %v258_v5, %v250_v3  ;;  %v1040_v9 = vpack.c.bf16 %v255_v7, %v247_v6  ;;  %v249_v10 = vld [vmem:[%s2190_s2 + $0x10] sm:$0xff]  ;;  %v264_v12 = vld [vmem:[%s2190_s2 + $0x88] sm:$0xff]  ;;  %v266_v15 = vld [vmem:[%s2190_s2 + $0x98] sm:$0xff] }
  0x18   : > { %v257_v11 = vld [vmem:[%s2190_s2 + $0x50] sm:$0xff]  ;;  %v272_v14 = vld [vmem:[%s2190_s2 + $0xc8] sm:$0xff]  ;;  %v274_v16 = vld [vmem:[%s2190_s2 + $0xd8] sm:$0xff] }
  0x19   : > { %1039 = vmatprep.subr.bf16.mxu0 %v1038_v4  ;;  %v1104_v13 = vpack.c.bf16 %v257_v11, %v249_v10  ;;  %1103 = vmatprep.subr.bf16.mxu1 %v1102_v8  ;;  %v1042_v17 = vpack.c.bf16 %v272_v14, %v264_v12  ;;  %v1106_v18 = vpack.c.bf16 %v274_v16, %v266_v15  ;;  %v263_v19 = vld [vmem:[%s2190_s2 + $0x80] sm:$0xff]  ;;  %v265_v21 = vld [vmem:[%s2190_s2 + $0x90] sm:$0xff]  ;;  %v280_v24 = vld [vmem:[%s2190_s2 + $0x108] sm:$0xff] }
  0x1a   : > { %1041 = vmatpush1.bf16.msra.mxu0 %v1040_v9  ;;  %v271_v20 = vld [vmem:[%s2190_s2 + $0xc0] sm:$0xff]  ;;  %v273_v23 = vld [vmem:[%s2190_s2 + $0xd0] sm:$0xff]  ;;  %v288_v25 = vld [vmem:[%s2190_s2 + $0x148] sm:$0xff] }
  0x1b   : > { %1105 = vmatpush1.bf16.msra.mxu1 %v1104_v13  ;;  %v1044_v22 = vpack.c.bf16 %v271_v20, %v263_v19  ;;  %1043 = vmatprep.subr.bf16.mxu0 %v1042_v17  ;;  %v1108_v26 = vpack.c.bf16 %v273_v23, %v265_v21  ;;  %v1046_v27 = vpack.c.bf16 %v288_v25, %v280_v24  ;;  %v282_v28 = vld [vmem:[%s2190_s2 + $0x118] sm:$0xff]  ;;  %v279_v30 = vld [vmem:[%s2190_s2 + $0x100] sm:$0xff]  ;;  %v281_v33 = vld [vmem:[%s2190_s2 + $0x110] sm:$0xff] }
  0x1c   : > { %1107 = vmatprep.subr.bf16.mxu1 %v1106_v18  ;;  %v290_v29 = vld [vmem:[%s2190_s2 + $0x158] sm:$0xff]  ;;  %v287_v32 = vld [vmem:[%s2190_s2 + $0x140] sm:$0xff]  ;;  %v289_v34 = vld [vmem:[%s2190_s2 + $0x150] sm:$0xff] }
  0x1d   : > { %v1110_v31 = vpack.c.bf16 %v290_v29, %v282_v28  ;;  %v1048_v35 = vpack.c.bf16 %v287_v32, %v279_v30  ;;  %v296_v36 = vld [vmem:[%s2190_s2 + $0x188] sm:$0xff]  ;;  %v298_v38 = vld [vmem:[%s2190_s2 + $0x198] sm:$0xff]  ;;  %v1112_v39 = vpack.c.bf16 %v289_v34, %v281_v33  ;;  %v295_v42 = vld [vmem:[%s2190_s2 + $0x180] sm:$0xff] }
  0x1e   : > { %1045 = vmatpush1.bf16.msra.mxu0 %v1044_v22  ;;  %v304_v37 = vld [vmem:[%s2190_s2 + $0x1c8] sm:$0xff]  ;;  %v306_v41 = vld [vmem:[%s2190_s2 + $0x1d8] sm:$0xff]  ;;  %v303_v43 = vld [vmem:[%s2190_s2 + $0x1c0] sm:$0xff] }
  0x1f   : > { %1109 = vmatpush1.bf16.msra.mxu1 %v1108_v26  ;;  %1047 = vmatprep.subr.bf16.mxu0 %v1046_v27  ;;  %v1050_v40 = vpack.c.bf16 %v304_v37, %v296_v36  ;;  %v1114_v44 = vpack.c.bf16 %v306_v41, %v298_v38  ;;  %v297_v45 = vld [vmem:[%s2190_s2 + $0x190] sm:$0xff]  ;;  %v312_v47 = vld [vmem:[%s2190_s2 + $0x208] sm:$0xff]  ;;  %v314_v49 = vld [vmem:[%s2190_s2 + $0x218] sm:$0xff]  ;;  %v1052_v51 = vpack.c.bf16 %v303_v43, %v295_v42 }
  0x20   : > { %1111 = vmatprep.subr.bf16.mxu1 %v1110_v31  ;;  %v305_v46 = vld [vmem:[%s2190_s2 + $0x1d0] sm:$0xff]  ;;  %v320_v48 = vld [vmem:[%s2190_s2 + $0x248] sm:$0xff]  ;;  %v322_v50 = vld [vmem:[%s2190_s2 + $0x258] sm:$0xff] }
  0x21   : > { %v1116_v52 = vpack.c.bf16 %v305_v46, %v297_v45  ;;  %v1054_v53 = vpack.c.bf16 %v320_v48, %v312_v47  ;;  %v311_v54 = vld [vmem:[%s2190_s2 + $0x200] sm:$0xff]  ;;  %v313_v56 = vld [vmem:[%s2190_s2 + $0x210] sm:$0xff]  ;;  %v1118_v57 = vpack.c.bf16 %v322_v50, %v314_v49  ;;  %v328_v59 = vld [vmem:[%s2190_s2 + $0x288] sm:$0xff] }
  0x22   : > { %1049 = vmatpush1.bf16.msra.mxu0 %v1048_v35  ;;  %v319_v55 = vld [vmem:[%s2190_s2 + $0x240] sm:$0xff]  ;;  %v321_v58 = vld [vmem:[%s2190_s2 + $0x250] sm:$0xff]  ;;  %v336_v60 = vld [vmem:[%s2190_s2 + $0x2c8] sm:$0xff] }
  0x23   : > { %1113 = vmatpush1.bf16.msra.mxu1 %v1112_v39  ;;  %1051 = vmatprep.subr.bf16.mxu0 %v1050_v40  ;;  %v330_v61 = vld [vmem:[%s2190_s2 + $0x298] sm:$0xff]  ;;  %v1056_v63 = vpack.c.bf16 %v319_v55, %v311_v54  ;;  %v1120_v0 = vpack.c.bf16 %v321_v58, %v313_v56  ;;  %v1058_v1 = vpack.c.bf16 %v336_v60, %v328_v59  ;;  %v327_v2 = vld [vmem:[%s2190_s2 + $0x280] sm:$0xff]  ;;  %v329_v4 = vld [vmem:[%s2190_s2 + $0x290] sm:$0xff] }
  0x24   : > { %1115 = vmatprep.subr.bf16.mxu1 %v1114_v44  ;;  %v338_v62 = vld [vmem:[%s2190_s2 + $0x2d8] sm:$0xff]  ;;  %v335_v3 = vld [vmem:[%s2190_s2 + $0x2c0] sm:$0xff]  ;;  %v337_v6 = vld [vmem:[%s2190_s2 + $0x2d0] sm:$0xff] }
  0x25   : > { %v1122_v5 = vpack.c.bf16 %v338_v62, %v330_v61  ;;  %v344_v7 = vld [vmem:[%s2190_s2 + $0x308] sm:$0xff]  ;;  %v346_v9 = vld [vmem:[%s2190_s2 + $0x318] sm:$0xff]  ;;  %v1060_v11 = vpack.c.bf16 %v335_v3, %v327_v2  ;;  %v1124_v12 = vpack.c.bf16 %v337_v6, %v329_v4  ;;  %v343_v14 = vld [vmem:[%s2190_s2 + $0x300] sm:$0xff] }
  0x26   : > { %1053 = vmatpush1.bf16.msra.mxu0 %v1052_v51  ;;  %v352_v8 = vld [vmem:[%s2190_s2 + $0x348] sm:$0xff]  ;;  %v354_v10 = vld [vmem:[%s2190_s2 + $0x358] sm:$0xff]  ;;  %v351_v15 = vld [vmem:[%s2190_s2 + $0x340] sm:$0xff] }
  0x27   : > { %1117 = vmatpush1.bf16.msra.mxu1 %v1116_v52  ;;  %1055 = vmatprep.subr.bf16.mxu0 %v1054_v53  ;;  %v1062_v13 = vpack.c.bf16 %v352_v8, %v344_v7  ;;  %v345_v16 = vld [vmem:[%s2190_s2 + $0x310] sm:$0xff]  ;;  %v1126_v17 = vpack.c.bf16 %v354_v10, %v346_v9  ;;  %v360_v19 = vld [vmem:[%s2190_s2 + $0x388] sm:$0xff]  ;;  %v362_v21 = vld [vmem:[%s2190_s2 + $0x398] sm:$0xff]  ;;  %v1064_v23 = vpack.c.bf16 %v351_v15, %v343_v14 }
  0x28   : > { %1119 = vmatprep.subr.bf16.mxu1 %v1118_v57  ;;  %v353_v18 = vld [vmem:[%s2190_s2 + $0x350] sm:$0xff]  ;;  %v368_v20 = vld [vmem:[%s2190_s2 + $0x3c8] sm:$0xff]  ;;  %v370_v22 = vld [vmem:[%s2190_s2 + $0x3d8] sm:$0xff] }
  0x29   : > { %v1128_v24 = vpack.c.bf16 %v353_v18, %v345_v16  ;;  %v1066_v25 = vpack.c.bf16 %v368_v20, %v360_v19  ;;  %v359_v26 = vld [vmem:[%s2190_s2 + $0x380] sm:$0xff]  ;;  %v361_v28 = vld [vmem:[%s2190_s2 + $0x390] sm:$0xff]  ;;  %v1130_v29 = vpack.c.bf16 %v370_v22, %v362_v21  ;;  %v376_v31 = vld [vmem:[%s2190_s2 + $0x408] sm:$0xff] }
  0x2a   : > { %1057 = vmatpush1.bf16.msra.mxu0 %v1056_v63  ;;  %v367_v27 = vld [vmem:[%s2190_s2 + $0x3c0] sm:$0xff]  ;;  %v369_v30 = vld [vmem:[%s2190_s2 + $0x3d0] sm:$0xff]  ;;  %v384_v32 = vld [vmem:[%s2190_s2 + $0x448] sm:$0xff] }
  0x2b   : > { %1121 = vmatpush1.bf16.msra.mxu1 %v1120_v0  ;;  %1059 = vmatprep.subr.bf16.mxu0 %v1058_v1  ;;  %v378_v33 = vld [vmem:[%s2190_s2 + $0x418] sm:$0xff]  ;;  %v1068_v35 = vpack.c.bf16 %v367_v27, %v359_v26  ;;  %v1132_v36 = vpack.c.bf16 %v369_v30, %v361_v28  ;;  %v1070_v37 = vpack.c.bf16 %v384_v32, %v376_v31  ;;  %v375_v38 = vld [vmem:[%s2190_s2 + $0x400] sm:$0xff]  ;;  %v377_v40 = vld [vmem:[%s2190_s2 + $0x410] sm:$0xff] }
  0x2c   : > { %1123 = vmatprep.subr.bf16.mxu1 %v1122_v5  ;;  %v386_v34 = vld [vmem:[%s2190_s2 + $0x458] sm:$0xff]  ;;  %v383_v39 = vld [vmem:[%s2190_s2 + $0x440] sm:$0xff]  ;;  %v385_v42 = vld [vmem:[%s2190_s2 + $0x450] sm:$0xff] }
  0x2d   : > { %v1134_v41 = vpack.c.bf16 %v386_v34, %v378_v33  ;;  %v392_v43 = vld [vmem:[%s2190_s2 + $0x488] sm:$0xff]  ;;  %v394_v45 = vld [vmem:[%s2190_s2 + $0x498] sm:$0xff]  ;;  %v1072_v47 = vpack.c.bf16 %v383_v39, %v375_v38  ;;  %v1136_v48 = vpack.c.bf16 %v385_v42, %v377_v40  ;;  %v391_v50 = vld [vmem:[%s2190_s2 + $0x480] sm:$0xff] }
  0x2e   : > { %1061 = vmatpush1.bf16.msra.mxu0 %v1060_v11  ;;  %v400_v44 = vld [vmem:[%s2190_s2 + $0x4c8] sm:$0xff]  ;;  %v402_v46 = vld [vmem:[%s2190_s2 + $0x4d8] sm:$0xff]  ;;  %v399_v51 = vld [vmem:[%s2190_s2 + $0x4c0] sm:$0xff] }
  0x2f   : > { %1125 = vmatpush1.bf16.msra.mxu1 %v1124_v12  ;;  %1063 = vmatprep.subr.bf16.mxu0 %v1062_v13  ;;  %v1074_v49 = vpack.c.bf16 %v400_v44, %v392_v43  ;;  %v393_v52 = vld [vmem:[%s2190_s2 + $0x490] sm:$0xff]  ;;  %v1138_v53 = vpack.c.bf16 %v402_v46, %v394_v45  ;;  %v408_v55 = vld [vmem:[%s2190_s2 + $0x508] sm:$0xff]  ;;  %v410_v57 = vld [vmem:[%s2190_s2 + $0x518] sm:$0xff]  ;;  %v1076_v59 = vpack.c.bf16 %v399_v51, %v391_v50 }
  0x30   : > { %1127 = vmatprep.subr.bf16.mxu1 %v1126_v17  ;;  %v401_v54 = vld [vmem:[%s2190_s2 + $0x4d0] sm:$0xff]  ;;  %v416_v56 = vld [vmem:[%s2190_s2 + $0x548] sm:$0xff]  ;;  %v418_v58 = vld [vmem:[%s2190_s2 + $0x558] sm:$0xff] }
  0x31   : > { %v1140_v60 = vpack.c.bf16 %v401_v54, %v393_v52  ;;  %v1078_v61 = vpack.c.bf16 %v416_v56, %v408_v55  ;;  %v407_v62 = vld [vmem:[%s2190_s2 + $0x500] sm:$0xff]  ;;  %v409_v0 = vld [vmem:[%s2190_s2 + $0x510] sm:$0xff]  ;;  %v1142_v1 = vpack.c.bf16 %v418_v58, %v410_v57  ;;  %v424_v3 = vld [vmem:[%s2190_s2 + $0x588] sm:$0xff] }
  0x32   : > { %1065 = vmatpush1.bf16.msra.mxu0 %v1064_v23  ;;  %v415_v63 = vld [vmem:[%s2190_s2 + $0x540] sm:$0xff]  ;;  %v417_v2 = vld [vmem:[%s2190_s2 + $0x550] sm:$0xff]  ;;  %v432_v4 = vld [vmem:[%s2190_s2 + $0x5c8] sm:$0xff] }
  0x33   : > { %1129 = vmatpush1.bf16.msra.mxu1 %v1128_v24  ;;  %1067 = vmatprep.subr.bf16.mxu0 %v1066_v25  ;;  %v426_v5 = vld [vmem:[%s2190_s2 + $0x598] sm:$0xff]  ;;  %v1080_v7 = vpack.c.bf16 %v415_v63, %v407_v62  ;;  %v423_v8 = vld [vmem:[%s2190_s2 + $0x580] sm:$0xff]  ;;  %v1144_v9 = vpack.c.bf16 %v417_v2, %v409_v0  ;;  %v1082_v10 = vpack.c.bf16 %v432_v4, %v424_v3  ;;  %v425_v12 = vld [vmem:[%s2190_s2 + $0x590] sm:$0xff] }
  0x34   : > { %1131 = vmatprep.subr.bf16.mxu1 %v1130_v29  ;;  %v434_v6 = vld [vmem:[%s2190_s2 + $0x5d8] sm:$0xff]  ;;  %v431_v11 = vld [vmem:[%s2190_s2 + $0x5c0] sm:$0xff]  ;;  %v433_v13 = vld [vmem:[%s2190_s2 + $0x5d0] sm:$0xff] }
  0x35   : > { %v1146_v14 = vpack.c.bf16 %v434_v6, %v426_v5  ;;  %v440_v15 = vld [vmem:[%s2190_s2 + $0x608] sm:$0xff]  ;;  %v1693_v17 = vld.sshfl [vmem:[#allocation2] sm:$0x33 pattern:$0x76325410]  ;;  %v442_v18 = vld [vmem:[%s2190_s2 + $0x618] sm:$0xff]  ;;  %v1084_v21 = vpack.c.bf16 %v431_v11, %v423_v8  ;;  %v1148_v22 = vpack.c.bf16 %v433_v13, %v425_v12 }
  0x36   : > { %1069 = vmatpush1.bf16.msra.mxu0 %v1068_v35  ;;  %v448_v16 = vld [vmem:[%s2190_s2 + $0x648] sm:$0xff]  ;;  %v450_v19 = vld [vmem:[%s2190_s2 + $0x658] sm:$0xff]  ;;  %v1703_v20 = vcombine.high %v1693_v17, %v1693_v17  ;;  %v439_v24 = vld [vmem:[%s2190_s2 + $0x600] sm:$0xff] }
  0x37   : > { %1133 = vmatpush1.bf16.msra.mxu1 %v1132_v36  ;;  %1071 = vmatprep.subr.bf16.mxu0 %v1070_v37  ;;  %v1086_v23 = vpack.c.bf16 %v448_v16, %v440_v15  ;;  %v447_v25 = vld [vmem:[%s2190_s2 + $0x640] sm:$0xff]  ;;  %v441_v26 = vld [vmem:[%s2190_s2 + $0x610] sm:$0xff]  ;;  %v1150_v27 = vpack.c.bf16 %v450_v19, %v442_v18  ;;  %v456_v29 = vld [vmem:[%s2190_s2 + $0x688] sm:$0xff] }
  0x38   : > { %1135 = vmatprep.subr.bf16.mxu1 %v1134_v41  ;;  %v449_v28 = vld [vmem:[%s2190_s2 + $0x650] sm:$0xff]  ;;  %v464_v30 = vld [vmem:[%s2190_s2 + $0x6c8] sm:$0xff]  ;;  %578 = vmatprep.mubr.f32.mxu0 %v1703_v20  ;;  %v458_v31 = vld [vmem:[%s2190_s2 + $0x698] sm:$0xff]  ;;  %v1088_v33 = vpack.c.bf16 %v447_v25, %v439_v24 }
  0x39   : > { %v466_v32 = vld [vmem:[%s2190_s2 + $0x6d8] sm:$0xff]  ;;  %649 = vmatprep.mubr.f32.mxu1 %v1703_v20  ;;  %v1152_v34 = vpack.c.bf16 %v449_v28, %v441_v26  ;;  %v1090_v35 = vpack.c.bf16 %v464_v30, %v456_v29  ;;  %v455_v36 = vld [vmem:[%s2190_s2 + $0x680] sm:$0xff]  ;;  %v457_v38 = vld [vmem:[%s2190_s2 + $0x690] sm:$0xff] }
  0x3a   : > { %1073 = vmatpush1.bf16.msra.mxu0 %v1072_v47  ;;  %v463_v37 = vld [vmem:[%s2190_s2 + $0x6c0] sm:$0xff]  ;;  %v1154_v39 = vpack.c.bf16 %v466_v32, %v458_v31  ;;  %v465_v40 = vld [vmem:[%s2190_s2 + $0x6d0] sm:$0xff]  ;;  %v472_v41 = vld [vmem:[%s2190_s2 + $0x708] sm:$0xff] }
  0x3b   : > { %1137 = vmatpush1.bf16.msra.mxu1 %v1136_v48  ;;  %1075 = vmatprep.subr.bf16.mxu0 %v1074_v49  ;;  %v480_v42 = vld [vmem:[%s2190_s2 + $0x748] sm:$0xff]  ;;  %v474_v43 = vld [vmem:[%s2190_s2 + $0x718] sm:$0xff]  ;;  %v1092_v45 = vpack.c.bf16 %v463_v37, %v455_v36  ;;  %v1156_v46 = vpack.c.bf16 %v465_v40, %v457_v38  ;;  %v471_v48 = vld [vmem:[%s2190_s2 + $0x700] sm:$0xff] }
  0x3c   : > { %1139 = vmatprep.subr.bf16.mxu1 %v1138_v53  ;;  %v482_v44 = vld [vmem:[%s2190_s2 + $0x758] sm:$0xff]  ;;  %v1094_v47 = vpack.c.bf16 %v480_v42, %v472_v41  ;;  %v479_v49 = vld [vmem:[%s2190_s2 + $0x740] sm:$0xff]  ;;  %v473_v50 = vld [vmem:[%s2190_s2 + $0x710] sm:$0xff] }
  0x3d   : > { %v1158_v51 = vpack.c.bf16 %v482_v44, %v474_v43  ;;  %v481_v52 = vld [vmem:[%s2190_s2 + $0x750] sm:$0xff]  ;;  %v488_v53 = vld [vmem:[%s2190_s2 + $0x788] sm:$0xff]  ;;  %v490_v55 = vld [vmem:[%s2190_s2 + $0x798] sm:$0xff]  ;;  %v1096_v57 = vpack.c.bf16 %v479_v49, %v471_v48 }
  0x3e   : > { %1077 = vmatpush1.bf16.msra.mxu0 %v1076_v59  ;;  %v496_v54 = vld [vmem:[%s2190_s2 + $0x7c8] sm:$0xff]  ;;  %v498_v56 = vld [vmem:[%s2190_s2 + $0x7d8] sm:$0xff]  ;;  %v1160_v58 = vpack.c.bf16 %v481_v52, %v473_v50  ;;  %v489_v62 = vld [vmem:[%s2190_s2 + $0x790] sm:$0xff] }
  0x3f   : > { %1141 = vmatpush1.bf16.msra.mxu1 %v1140_v60  ;;  %1079 = vmatprep.subr.bf16.mxu0 %v1078_v61  ;;  %v1098_v59 = vpack.c.bf16 %v496_v54, %v488_v53  ;;  %v487_v60 = vld [vmem:[%s2190_s2 + $0x780] sm:$0xff]  ;;  %v1162_v63 = vpack.c.bf16 %v498_v56, %v490_v55  ;;  %v497_v0 = vld [vmem:[%s2190_s2 + $0x7d0] sm:$0xff]  ;;  %v260_v2 = vld [vmem:[%s2190_s2 + $0x68] sm:$0xff] }
  0x40   : > { %1143 = vmatprep.subr.bf16.mxu1 %v1142_v1  ;;  %v495_v61 = vld [vmem:[%s2190_s2 + $0x7c0] sm:$0xff]  ;;  %v252_v1 = vld [vmem:[%s2190_s2 + $0x28] sm:$0xff]  ;;  %v254_v3 = vld [vmem:[%s2190_s2 + $0x38] sm:$0xff]  ;;  %v1164_v6 = vpack.c.bf16 %v497_v0, %v489_v62 }
  0x41   : > { %v262_v4 = vld [vmem:[%s2190_s2 + $0x78] sm:$0xff]  ;;  %v1100_v5 = vpack.c.bf16 %v495_v61, %v487_v60  ;;  %v251_v8 = vld [vmem:[%s2190_s2 + $0x20] sm:$0xff]  ;;  %v261_v12 = vld [vmem:[%s2190_s2 + $0x70] sm:$0xff] }
  0x42   : > { %1081 = vmatpush1.bf16.msra.mxu0 %v1080_v7  ;;  %v1166_v7 = vpack.c.bf16 %v260_v2, %v252_v1  ;;  %v1230_v11 = vpack.c.bf16 %v262_v4, %v254_v3  ;;  %v268_v13 = vld [vmem:[%s2190_s2 + $0xa8] sm:$0xff]  ;;  %v270_v15 = vld [vmem:[%s2190_s2 + $0xb8] sm:$0xff]  ;;  %v269_v24 = vld [vmem:[%s2190_s2 + $0xb0] sm:$0xff] }
  0x43   : > { %1145 = vmatpush1.bf16.msra.mxu1 %v1144_v9  ;;  %1083 = vmatprep.subr.bf16.mxu0 %v1082_v10  ;;  %v259_v9 = vld [vmem:[%s2190_s2 + $0x60] sm:$0xff]  ;;  %v253_v10 = vld [vmem:[%s2190_s2 + $0x30] sm:$0xff]  ;;  %v278_v16 = vld [vmem:[%s2190_s2 + $0xf8] sm:$0xff] }
  0x44   : > { %1147 = vmatprep.subr.bf16.mxu1 %v1146_v14  ;;  %v276_v14 = vld [vmem:[%s2190_s2 + $0xe8] sm:$0xff]  ;;  %v1168_v18 = vpack.c.bf16 %v259_v9, %v251_v8  ;;  %v1232_v19 = vpack.c.bf16 %v261_v12, %v253_v10  ;;  %v1234_v25 = vpack.c.bf16 %v278_v16, %v270_v15  ;;  %v277_v26 = vld [vmem:[%s2190_s2 + $0xf0] sm:$0xff]  ;;  %v286_v29 = vld [vmem:[%s2190_s2 + $0x138] sm:$0xff] }
  0x45   : > { %v292_v28 = vld [vmem:[%s2190_s2 + $0x168] sm:$0xff]  ;;  %v294_v30 = vld [vmem:[%s2190_s2 + $0x178] sm:$0xff]  ;;  %v1236_v32 = vpack.c.bf16 %v277_v26, %v269_v24  ;;  %v285_v36 = vld [vmem:[%s2190_s2 + $0x130] sm:$0xff] }
  0x46   : > { %1085 = vmatpush1.bf16.msra.mxu0 %v1084_v21  ;;  %v1170_v21 = vpack.c.bf16 %v276_v14, %v268_v13  ;;  %v1238_v37 = vpack.c.bf16 %v294_v30, %v286_v29  ;;  %v293_v38 = vld [vmem:[%s2190_s2 + $0x170] sm:$0xff]  ;;  %v308_v40 = vld [vmem:[%s2190_s2 + $0x1e8] sm:$0xff]  ;;  %v302_v41 = vld [vmem:[%s2190_s2 + $0x1b8] sm:$0xff] }
  0x47   : > { %1149 = vmatpush1.bf16.msra.mxu1 %v1148_v22  ;;  %1087 = vmatprep.subr.bf16.mxu0 %v1086_v23  ;;  %v267_v22 = vld [vmem:[%s2190_s2 + $0xa0] sm:$0xff]  ;;  %v310_v42 = vld [vmem:[%s2190_s2 + $0x1f8] sm:$0xff]  ;;  %v1240_v44 = vpack.c.bf16 %v293_v38, %v285_v36  ;;  %v301_v48 = vld [vmem:[%s2190_s2 + $0x1b0] sm:$0xff] }
  0x48   : > { %1151 = vmatprep.subr.bf16.mxu1 %v1150_v27  ;;  %v275_v23 = vld [vmem:[%s2190_s2 + $0xe0] sm:$0xff]  ;;  %v284_v27 = vld [vmem:[%s2190_s2 + $0x128] sm:$0xff]  ;;  %v309_v49 = vld [vmem:[%s2190_s2 + $0x1f0] sm:$0xff] }
  0x49   : > { %v1172_v31 = vpack.c.bf16 %v275_v23, %v267_v22  ;;  %v316_v50 = vld [vmem:[%s2190_s2 + $0x228] sm:$0xff]  ;;  %v318_v52 = vld [vmem:[%s2190_s2 + $0x238] sm:$0xff]  ;;  %v1244_v55 = vpack.c.bf16 %v309_v49, %v301_v48  ;;  %v325_v61 = vld [vmem:[%s2190_s2 + $0x270] sm:$0xff] }
  0x4a   : > { %1089 = vmatpush1.bf16.msra.mxu0 %v1088_v33  ;;  %v1174_v33 = vpack.c.bf16 %v292_v28, %v284_v27  ;;  %v326_v53 = vld [vmem:[%s2190_s2 + $0x278] sm:$0xff]  ;;  %v332_v62 = vld [vmem:[%s2190_s2 + $0x2a8] sm:$0xff]  ;;  %v341_v9 = vld [vmem:[%s2190_s2 + $0x2f0] sm:$0xff] }
  0x4b   : > { %1153 = vmatpush1.bf16.msra.mxu1 %v1152_v34  ;;  %1091 = vmatprep.subr.bf16.mxu0 %v1090_v35  ;;  %v283_v34 = vld [vmem:[%s2190_s2 + $0x120] sm:$0xff]  ;;  %v1246_v60 = vpack.c.bf16 %v326_v53, %v318_v52  ;;  %v334_v0 = vld [vmem:[%s2190_s2 + $0x2b8] sm:$0xff]  ;;  %v348_v10 = vld [vmem:[%s2190_s2 + $0x328] sm:$0xff] }
  0x4c   : > { %1155 = vmatprep.subr.bf16.mxu1 %v1154_v39  ;;  %v291_v35 = vld [vmem:[%s2190_s2 + $0x160] sm:$0xff]  ;;  %v300_v39 = vld [vmem:[%s2190_s2 + $0x1a8] sm:$0xff]  ;;  %v342_v1 = vld [vmem:[%s2190_s2 + $0x2f8] sm:$0xff] }
  0x4d   : > { %v1176_v43 = vpack.c.bf16 %v291_v35, %v283_v34  ;;  %v1250_v8 = vpack.c.bf16 %v342_v1, %v334_v0  ;;  %v350_v12 = vld [vmem:[%s2190_s2 + $0x338] sm:$0xff]  ;;  %v357_v23 = vld [vmem:[%s2190_s2 + $0x370] sm:$0xff]  ;;  %v364_v24 = vld [vmem:[%s2190_s2 + $0x3a8] sm:$0xff] }
  0x4e   : > { %1093 = vmatpush1.bf16.msra.mxu0 %v1092_v45  ;;  %v1178_v45 = vpack.c.bf16 %v308_v40, %v300_v39  ;;  %v358_v13 = vld [vmem:[%s2190_s2 + $0x378] sm:$0xff]  ;;  %v373_v35 = vld [vmem:[%s2190_s2 + $0x3f0] sm:$0xff]  ;;  %v380_v36 = vld [vmem:[%s2190_s2 + $0x428] sm:$0xff] }
  0x4f   : > { %1157 = vmatpush1.bf16.msra.mxu1 %v1156_v46  ;;  %1095 = vmatprep.subr.bf16.mxu0 %v1094_v47  ;;  %v299_v46 = vld [vmem:[%s2190_s2 + $0x1a0] sm:$0xff]  ;;  %v1254_v22 = vpack.c.bf16 %v358_v13, %v350_v12  ;;  %v366_v26 = vld [vmem:[%s2190_s2 + $0x3b8] sm:$0xff]  ;;  %v396_v48 = vld [vmem:[%s2190_s2 + $0x4a8] sm:$0xff] }
  0x50   : > { %1159 = vmatprep.subr.bf16.mxu1 %v1158_v51  ;;  %v307_v47 = vld [vmem:[%s2190_s2 + $0x1e0] sm:$0xff]  ;;  %v324_v51 = vld [vmem:[%s2190_s2 + $0x268] sm:$0xff]  ;;  %v374_v27 = vld [vmem:[%s2190_s2 + $0x3f8] sm:$0xff] }
  0x51   : > { %v1180_v54 = vpack.c.bf16 %v307_v47, %v299_v46  ;;  %v1182_v56 = vpack.c.bf16 %v324_v51, %v316_v50  ;;  %v1258_v34 = vpack.c.bf16 %v374_v27, %v366_v26  ;;  %v382_v38 = vld [vmem:[%s2190_s2 + $0x438] sm:$0xff]  ;;  %v389_v47 = vld [vmem:[%s2190_s2 + $0x470] sm:$0xff] }
  0x52   : > { %1097 = vmatpush1.bf16.msra.mxu0 %v1096_v57  ;;  %v315_v57 = vld [vmem:[%s2190_s2 + $0x220] sm:$0xff]  ;;  %v390_v39 = vld [vmem:[%s2190_s2 + $0x478] sm:$0xff] }
  0x53   : > { %1161 = vmatpush1.bf16.msra.mxu1 %v1160_v58  ;;  %1099 = vmatprep.subr.bf16.mxu0 %v1098_v59  ;;  %v323_v58 = vld [vmem:[%s2190_s2 + $0x260] sm:$0xff]  ;;  %v317_v59 = vld [vmem:[%s2190_s2 + $0x230] sm:$0xff]  ;;  %v1262_v46 = vpack.c.bf16 %v390_v39, %v382_v38  ;;  %v398_v49 = vld [vmem:[%s2190_s2 + $0x4b8] sm:$0xff] }
  0x54   : > { %1163 = vmatprep.subr.bf16.mxu1 %v1162_v63  ;;  %v340_v63 = vld [vmem:[%s2190_s2 + $0x2e8] sm:$0xff]  ;;  %v1184_v2 = vpack.c.bf16 %v323_v58, %v315_v57  ;;  %v1248_v3 = vpack.c.bf16 %v325_v61, %v317_v59  ;;  %v406_v50 = vld [vmem:[%s2190_s2 + $0x4f8] sm:$0xff]  ;;  %v405_v58 = vld [vmem:[%s2190_s2 + $0x4f0] sm:$0xff] }
  0x55   : > { %v1186_v4 = vpack.c.bf16 %v340_v63, %v332_v62  ;;  %v1266_v57 = vpack.c.bf16 %v406_v50, %v398_v49  ;;  %v412_v59 = vld [vmem:[%s2190_s2 + $0x528] sm:$0xff]  ;;  %v414_v61 = vld [vmem:[%s2190_s2 + $0x538] sm:$0xff] }
  0x56   : > { %1101 = vmatpush1.bf16.msra.mxu0 %v1100_v5  ;;  %v331_v5 = vld [vmem:[%s2190_s2 + $0x2a0] sm:$0xff]  ;;  %v422_v62 = vld [vmem:[%s2190_s2 + $0x578] sm:$0xff] }
  0x57   : > { %1165 = vmatpush1.bf16.msra.mxu1 %v1164_v6  ;;  %1167 = vmatprep.subr.bf16.mxu0 %v1166_v7  ;;  %v339_v6 = vld [vmem:[%s2190_s2 + $0x2e0] sm:$0xff]  ;;  %v333_v7 = vld [vmem:[%s2190_s2 + $0x2b0] sm:$0xff] }
  0x58   : > { %1231 = vmatprep.subr.bf16.mxu1 %v1230_v11  ;;  %v356_v11 = vld [vmem:[%s2190_s2 + $0x368] sm:$0xff]  ;;  %v1188_v14 = vpack.c.bf16 %v339_v6, %v331_v5  ;;  %v1252_v15 = vpack.c.bf16 %v341_v9, %v333_v7  ;;  %v1270_v5 = vpack.c.bf16 %v422_v62, %v414_v61  ;;  %v421_v6 = vld [vmem:[%s2190_s2 + $0x570] sm:$0xff]  ;;  %v430_v9 = vld [vmem:[%s2190_s2 + $0x5b8] sm:$0xff] }
  0x59   : > { %579 = vmatmul.mubr.f32.vlgmr.msra.gmra.mrb[0].mxu0 %v1693_v17  ;;  %v1190_v16 = vpack.c.bf16 %v356_v11, %v348_v10  ;;  %v428_v7 = vld [vmem:[%s2190_s2 + $0x5a8] sm:$0xff]  ;;  %v438_v10 = vld [vmem:[%s2190_s2 + $0x5f8] sm:$0xff] }
  0x5a   : > { %650 = vmatmul.mubr.f32.vlgmr.msra.gmra.mrb[0].mxu1 %v1693_v17  ;;  %1169 = vmatpush1.bf16.msra.mxu0 %v1168_v18  ;;  %v347_v18 = vld [vmem:[%s2190_s2 + $0x320] sm:$0xff] }
  0x5b   : > { %1233 = vmatpush1.bf16.msra.mxu1 %v1232_v19  ;;  %1171 = vmatprep.subr.bf16.mxu0 %v1170_v21  ;;  %v355_v19 = vld [vmem:[%s2190_s2 + $0x360] sm:$0xff]  ;;  %v349_v21 = vld [vmem:[%s2190_s2 + $0x330] sm:$0xff] }
  0x5c   : > { %1235 = vmatprep.subr.bf16.mxu1 %v1234_v25  ;;  %720 = vmatprep.mubr.f32.mxu0 %v1703_v20  ;;  %v372_v25 = vld [vmem:[%s2190_s2 + $0x3e8] sm:$0xff]  ;;  %v1192_v28 = vpack.c.bf16 %v355_v19, %v347_v18  ;;  %v1256_v29 = vpack.c.bf16 %v357_v23, %v349_v21  ;;  %v1274_v18 = vpack.c.bf16 %v438_v10, %v430_v9  ;;  %v437_v19 = vld [vmem:[%s2190_s2 + $0x5f0] sm:$0xff]  ;;  %v446_v23 = vld [vmem:[%s2190_s2 + $0x638] sm:$0xff] }
  0x5d   : > { %791 = vmatprep.mubr.f32.mxu1 %v1703_v20  ;;  %v1242_v20 = vpack.c.bf16 %v310_v42, %v302_v41  ;;  %v1194_v30 = vpack.c.bf16 %v372_v25, %v364_v24  ;;  %v444_v21 = vld [vmem:[%s2190_s2 + $0x628] sm:$0xff]  ;;  %v454_v24 = vld [vmem:[%s2190_s2 + $0x678] sm:$0xff] }
  0x5e   : > { %1173 = vmatpush1.bf16.msra.mxu0 %v1172_v31  ;;  %v363_v31 = vld [vmem:[%s2190_s2 + $0x3a0] sm:$0xff] }
  0x5f   : > { %1237 = vmatpush1.bf16.msra.mxu1 %v1236_v32  ;;  %1175 = vmatprep.subr.bf16.mxu0 %v1174_v33  ;;  %v371_v32 = vld [vmem:[%s2190_s2 + $0x3e0] sm:$0xff]  ;;  %v365_v33 = vld [vmem:[%s2190_s2 + $0x3b0] sm:$0xff] }
  0x60   : > { %1239 = vmatprep.subr.bf16.mxu1 %v1238_v37  ;;  %v388_v37 = vld [vmem:[%s2190_s2 + $0x468] sm:$0xff]  ;;  %v1196_v40 = vpack.c.bf16 %v371_v32, %v363_v31  ;;  %v1260_v41 = vpack.c.bf16 %v373_v35, %v365_v33  ;;  %v1278_v31 = vpack.c.bf16 %v454_v24, %v446_v23  ;;  %v453_v32 = vld [vmem:[%s2190_s2 + $0x670] sm:$0xff]  ;;  %v462_v35 = vld [vmem:[%s2190_s2 + $0x6b8] sm:$0xff] }
  0x61   : > { %v1198_v42 = vpack.c.bf16 %v388_v37, %v380_v36  ;;  %v460_v33 = vld [vmem:[%s2190_s2 + $0x6a8] sm:$0xff]  ;;  %v470_v36 = vld [vmem:[%s2190_s2 + $0x6f8] sm:$0xff] }
  0x62   : > { %1177 = vmatpush1.bf16.msra.mxu0 %v1176_v43  ;;  %v379_v43 = vld [vmem:[%s2190_s2 + $0x420] sm:$0xff] }
  0x63   : > { %1241 = vmatpush1.bf16.msra.mxu1 %v1240_v44  ;;  %1179 = vmatprep.subr.bf16.mxu0 %v1178_v45  ;;  %v387_v44 = vld [vmem:[%s2190_s2 + $0x460] sm:$0xff]  ;;  %v381_v45 = vld [vmem:[%s2190_s2 + $0x430] sm:$0xff] }
  0x64   : > { %1243 = vmatprep.subr.bf16.mxu1 %v1242_v20  ;;  %v404_v20 = vld [vmem:[%s2190_s2 + $0x4e8] sm:$0xff]  ;;  %v1200_v51 = vpack.c.bf16 %v387_v44, %v379_v43  ;;  %v1264_v52 = vpack.c.bf16 %v389_v47, %v381_v45  ;;  %v1282_v43 = vpack.c.bf16 %v470_v36, %v462_v35  ;;  %v469_v44 = vld [vmem:[%s2190_s2 + $0x6f0] sm:$0xff]  ;;  %v478_v47 = vld [vmem:[%s2190_s2 + $0x738] sm:$0xff] }
  0x65   : > { %v1202_v53 = vpack.c.bf16 %v404_v20, %v396_v48  ;;  %v476_v45 = vld [vmem:[%s2190_s2 + $0x728] sm:$0xff]  ;;  %v486_v48 = vld [vmem:[%s2190_s2 + $0x778] sm:$0xff]  ;;  %v846_v36 = vld [vmem:[#allocation3] sm:$0x3] }
  0x66   : > { %1181 = vmatpush1.bf16.msra.mxu0 %v1180_v54  ;;  %v395_v54 = vld [vmem:[%s2190_s2 + $0x4a0] sm:$0xff] }
  0x67   : > { %1245 = vmatpush1.bf16.msra.mxu1 %v1244_v55  ;;  %1183 = vmatprep.subr.bf16.mxu0 %v1182_v56  ;;  %v403_v55 = vld [vmem:[%s2190_s2 + $0x4e0] sm:$0xff]  ;;  %v397_v56 = vld [vmem:[%s2190_s2 + $0x4b0] sm:$0xff] }
  0x68   : > { %1247 = vmatprep.subr.bf16.mxu1 %v1246_v60  ;;  %v420_v60 = vld [vmem:[%s2190_s2 + $0x568] sm:$0xff]  ;;  %v1204_v63 = vpack.c.bf16 %v403_v55, %v395_v54  ;;  %v1268_v0 = vpack.c.bf16 %v405_v58, %v397_v56  ;;  %v1286_v54 = vpack.c.bf16 %v486_v48, %v478_v47  ;;  %v485_v55 = vld [vmem:[%s2190_s2 + $0x770] sm:$0xff]  ;;  %v494_v58 = vld [vmem:[%s2190_s2 + $0x7b8] sm:$0xff] }
  0x69   : > { %v1206_v1 = vpack.c.bf16 %v420_v60, %v412_v59  ;;  %v492_v56 = vld [vmem:[%s2190_s2 + $0x7a8] sm:$0xff]  ;;  %v502_v59 = vld [vmem:[%s2190_s2 + $0x7f8] sm:$0xff] }
  0x6a   : > { %1185 = vmatpush1.bf16.msra.mxu0 %v1184_v2  ;;  %v411_v2 = vld [vmem:[%s2190_s2 + $0x520] sm:$0xff] }
  0x6b   : > { %1249 = vmatpush1.bf16.msra.mxu1 %v1248_v3  ;;  %1187 = vmatprep.subr.bf16.mxu0 %v1186_v4  ;;  %v419_v3 = vld [vmem:[%s2190_s2 + $0x560] sm:$0xff]  ;;  %v413_v4 = vld [vmem:[%s2190_s2 + $0x530] sm:$0xff] }
  0x6c   : > { %1251 = vmatprep.subr.bf16.mxu1 %v1250_v8  ;;  %v436_v8 = vld [vmem:[%s2190_s2 + $0x5e8] sm:$0xff]  ;;  %v1208_v11 = vpack.c.bf16 %v419_v3, %v411_v2  ;;  %v1272_v12 = vpack.c.bf16 %v421_v6, %v413_v4  ;;  %v493_v2 = vld [vmem:[%s2190_s2 + $0x7b0] sm:$0xff]  ;;  %v1345_v6 = vmov 1983009808  }
  0x6d   : > { %v1210_v13 = vpack.c.bf16 %v436_v8, %v428_v7  ;;  %v501_v3 = vld [vmem:[%s2190_s2 + $0x7f0] sm:$0xff]  ;;  %v806_v7 = vunpack.c.l.s4 %v1345_v6  ;;  %v808_v8 = vlaneseq }
  0x6e   : > { %1189 = vmatpush1.bf16.msra.mxu0 %v1188_v14  ;;  %v427_v14 = vld [vmem:[%s2190_s2 + $0x5a0] sm:$0xff] }
  0x6f   : > { %1253 = vmatpush1.bf16.msra.mxu1 %v1252_v15  ;;  %1191 = vmatprep.subr.bf16.mxu0 %v1190_v16  ;;  %v435_v15 = vld [vmem:[%s2190_s2 + $0x5e0] sm:$0xff]  ;;  %v429_v16 = vld [vmem:[%s2190_s2 + $0x5b0] sm:$0xff]  ;;  %v807_v9 = vunpack.c.0.s8 %v806_v7  ;;  %v809_v10 = vshrl.u32 %v808_v8, 7 }
  0x70   : > { %1255 = vmatprep.subr.bf16.mxu1 %v1254_v22  ;;  %v452_v22 = vld [vmem:[%s2190_s2 + $0x668] sm:$0xff]  ;;  %v1212_v25 = vpack.c.bf16 %v435_v15, %v427_v14  ;;  %v1276_v26 = vpack.c.bf16 %v437_v19, %v429_v16 }
  0x71   : > { %v1214_v27 = vpack.c.bf16 %v452_v22, %v444_v21  ;;  %v798_v22 = vld [vmem:[%s1382_s23] sm:$0xff] }
  0x72   : > { %1193 = vmatpush1.bf16.msra.mxu0 %v1192_v28  ;;  %v443_v28 = vld [vmem:[%s2190_s2 + $0x620] sm:$0xff] }
  0x73   : > { %1257 = vmatpush1.bf16.msra.mxu1 %v1256_v29  ;;  %1195 = vmatprep.subr.bf16.mxu0 %v1194_v30  ;;  %v451_v29 = vld [vmem:[%s2190_s2 + $0x660] sm:$0xff]  ;;  %v445_v30 = vld [vmem:[%s2190_s2 + $0x630] sm:$0xff] }
  0x74   : > { %1259 = vmatprep.subr.bf16.mxu1 %v1258_v34  ;;  %v468_v34 = vld [vmem:[%s2190_s2 + $0x6e8] sm:$0xff]  ;;  %v1216_v37 = vpack.c.bf16 %v451_v29, %v443_v28  ;;  %v1280_v38 = vpack.c.bf16 %v453_v32, %v445_v30 }
  0x75   : > { %v1218_v39 = vpack.c.bf16 %v468_v34, %v460_v33 }
  0x76   : > { %1197 = vmatpush1.bf16.msra.mxu0 %v1196_v40  ;;  %v459_v40 = vld [vmem:[%s2190_s2 + $0x6a0] sm:$0xff] }
  0x77   : > { %1261 = vmatpush1.bf16.msra.mxu1 %v1260_v41  ;;  %1199 = vmatprep.subr.bf16.mxu0 %v1198_v42  ;;  %v467_v41 = vld [vmem:[%s2190_s2 + $0x6e0] sm:$0xff]  ;;  %v461_v42 = vld [vmem:[%s2190_s2 + $0x6b0] sm:$0xff] }
  0x78   : > { %1263 = vmatprep.subr.bf16.mxu1 %v1262_v46  ;;  %v484_v46 = vld [vmem:[%s2190_s2 + $0x768] sm:$0xff]  ;;  %v1220_v20 = vpack.c.bf16 %v467_v41, %v459_v40  ;;  %v1284_v49 = vpack.c.bf16 %v469_v44, %v461_v42 }
  0x79   : > { %v1222_v50 = vpack.c.bf16 %v484_v46, %v476_v45 }
  0x7a   : > { %1201 = vmatpush1.bf16.msra.mxu0 %v1200_v51  ;;  %v475_v51 = vld [vmem:[%s2190_s2 + $0x720] sm:$0xff] }
  0x7b   : > { %1265 = vmatpush1.bf16.msra.mxu1 %v1264_v52  ;;  %1203 = vmatprep.subr.bf16.mxu0 %v1202_v53  ;;  %v483_v52 = vld [vmem:[%s2190_s2 + $0x760] sm:$0xff]  ;;  %v477_v53 = vld [vmem:[%s2190_s2 + $0x730] sm:$0xff] }
  0x7c   : > { %1267 = vmatprep.subr.bf16.mxu1 %v1266_v57  ;;  %v500_v57 = vld [vmem:[%s2190_s2 + $0x7e8] sm:$0xff]  ;;  %v1224_v60 = vpack.c.bf16 %v483_v52, %v475_v51  ;;  %v1288_v61 = vpack.c.bf16 %v485_v55, %v477_v53  ;;  %v822_v53 = vld [vmem:[%s1387_s27] sm:$0xff] }
  0x7d   : > { %v1226_v62 = vpack.c.bf16 %v500_v57, %v492_v56 }
  0x7e   : > { %1205 = vmatpush1.bf16.msra.mxu0 %v1204_v63  ;;  %v491_v63 = vld [vmem:[%s2190_s2 + $0x7a0] sm:$0xff] }
  0x7f   : > { %1269 = vmatpush1.bf16.msra.mxu1 %v1268_v0  ;;  %1207 = vmatprep.subr.bf16.mxu0 %v1206_v1  ;;  %v499_v0 = vld [vmem:[%s2190_s2 + $0x7e0] sm:$0xff]  ;;  %v1290_v1 = vpack.c.bf16 %v502_v59, %v494_v58 }
  0x80   : > { %1271 = vmatprep.subr.bf16.mxu1 %v1270_v5  ;;  %v1228_v4 = vpack.c.bf16 %v499_v0, %v491_v63  ;;  %v1292_v5 = vpack.c.bf16 %v501_v3, %v493_v2 }
  0x82   : > { %1209 = vmatpush1.bf16.msra.mxu0 %v1208_v11 }
  0x83   : > { %1273 = vmatpush1.bf16.msra.mxu1 %v1272_v12  ;;  %1211 = vmatprep.subr.bf16.mxu0 %v1210_v13  ;;  %v810_v12 = vsub.s32 %v807_v9, %v809_v10 }
  0x84   : > { %1275 = vmatprep.subr.bf16.mxu1 %v1274_v18 }
  0x86   : > { %1213 = vmatpush1.bf16.msra.mxu0 %v1212_v25 }
  0x87   : > { %1277 = vmatpush1.bf16.msra.mxu1 %v1276_v26  ;;  %1215 = vmatprep.subr.bf16.mxu0 %v1214_v27 }
  0x88   : > { %1279 = vmatprep.subr.bf16.mxu1 %v1278_v31 }
  0x8a   : > { %1217 = vmatpush1.bf16.msra.mxu0 %v1216_v37 }
  0x8b   : > { %1281 = vmatpush1.bf16.msra.mxu1 %v1280_v38  ;;  %1219 = vmatprep.subr.bf16.mxu0 %v1218_v39 }
  0x8c   : > { %1283 = vmatprep.subr.bf16.mxu1 %v1282_v43 }
  0x8e   : > { %1221 = vmatpush1.bf16.msra.mxu0 %v1220_v20 }
  0x8f   : > { %1285 = vmatpush1.bf16.msra.mxu1 %v1284_v49  ;;  %1223 = vmatprep.subr.bf16.mxu0 %v1222_v50 }
  0x90   : > { %1287 = vmatprep.subr.bf16.mxu1 %v1286_v54 }
  0x92   : > { %1225 = vmatpush1.bf16.msra.mxu0 %v1224_v60 }
  0x93   : > { %1289 = vmatpush1.bf16.msra.mxu1 %v1288_v61  ;;  %1227 = vmatprep.subr.bf16.mxu0 %v1226_v62 }
  0x94   : > { %1291 = vmatprep.subr.bf16.mxu1 %v1290_v1 }
  0x96   : > { %1229 = vmatpush1.bf16.msra.mxu0 %v1228_v4  ;;  %v878_v4 = vld [vmem:[#allocation4] sm:$0x3] }
  0x97   : > { %1293 = vmatpush1.bf16.msra.mxu1 %v1292_v5 }
  0x99   : > { %721 = vmatmul.mubr.f32.vlgmr.msra.gmra.mrb[2].mxu0 %v1693_v17 }
  0x9a   : > { %792 = vmatmul.mubr.f32.vlgmr.msra.gmra.mrb[2].mxu1 %v1693_v17 }
 0x12c   : > { %v580_v11 = vpop.f32.mrb[0].mxu0 }
 0x12d   : > { %v651_v13 = vpop.f32.mrb[0].mxu1  ;;  %v582_v14 = vpop.f32.mrb[1].mxu0 }
 0x12e   : > { %v803_v15 = vcombine.low %v580_v11, %v582_v14  ;;  %v653_v16 = vpop.f32.mrb[1].mxu1 }
 0x12f   : > { %v804_v18 = vcombine.low %v651_v13, %v653_v16 }
 0x130   : > { %v811_v19 = vrot.slane %v803_v15, %v810_v12 }
 0x131   : > { %v818_v21 = vrot.slane %v804_v18, %v810_v12 }
 0x133   : > { %v819_v23 = vcombine.low %v811_v19, %v818_v21 }
 0x135   : > { %v821_v24 = vadd.f32 %v819_v23, %v798_v22 }
 0x137   : > { %v1028_v25 = vmul.f32 -1.442695, %v821_v24  ;;  %v854_v26 = vrot.slane %v821_v24, 2  ;;  %v865_v27 = vrot.slane %v821_v24, 6  ;;  %v862_v30 = vrot.slane %v821_v24, 4 }
 0x139   : > { %1304 = vpow2.f32 %v1028_v25  ;;  %v1029_v17 = vmul.f32 -1.442695, %v854_v26  ;;  %v1030_v28 = vmul.f32 -1.442695, %v865_v27 }
 0x13b   : > { %1306 = vpow2.f32 %v1029_v17 }
 0x13c   : > { %1308 = vpow2.f32 %v1030_v28 }
 0x143   : > { %v1305_v29 = vpop.eup %1304 }
 0x144   : > { %v850_v31 = vadd.f32 1.0, %v1305_v29 }
 0x145   : > { %v1307_v32 = vpop.eup %1306 }
 0x146   : > { %1310 = vrcp.f32 %v850_v31  ;;  %v859_v33 = vadd.f32 1.0, %v1307_v32  ;;  %v1309_v34 = vpop.eup %1308 }
 0x147   : > { %1312 = vtanh.f32 %v862_v30  ;;  %v870_v39 = vadd.f32 1.0, %v1309_v34 }
 0x148   : > { %1314 = vrcp.f32 %v859_v33 }
 0x149   : > { %1316 = vrcp.f32 %v870_v39 }
 0x150   : > { %v1311_v35 = vpop.eup %1310 }
 0x151   : > { %v1313_v37 = vpop.eup %1312 }
 0x152   : > { %v1315_v38 = vpop.eup %1314  ;;  %v874_v41 = vmul.f32 %v1313_v37, %v1311_v35 }
 0x153   : > { %v873_v40 = vmul.f32 %v1315_v38, %v846_v36  ;;  %v1317_v43 = vpop.eup %1316 }
 0x155   : > { %v875_v42 = vadd.f32 %v874_v41, %v873_v40 }
 0x157   : > { %1318 = vtanh.f32 %v875_v42  ;;  %910 = vst [vmem:[#allocation3] sm:$0x3] %v875_v42 }
 0x161   : > { %v1319_v44 = vpop.eup %1318 }
 0x162   : > { %v877_v45 = vmul.f32 %v1319_v44, %v1317_v43 }
 0x164   : > { %912 = vst [vmem:[#allocation2] sm:$0x3] %v877_v45  ;;  %914 = vst [vmem:[%s1392_s30] sm:$0x3] %v877_v45 }
 0x16c   : > { %v722_v46 = vpop.f32.mrb[2].mxu0 }
 0x16d   : > { %v793_v47 = vpop.f32.mrb[2].mxu1  ;;  %v724_v48 = vpop.f32.mrb[3].mxu0 }
 0x16e   : > { %v827_v20 = vcombine.low %v722_v46, %v724_v48  ;;  %v795_v49 = vpop.f32.mrb[3].mxu1 }
 0x16f   : > { %v828_v50 = vcombine.low %v793_v47, %v795_v49 }
 0x170   : > { %v835_v51 = vrot.slane %v827_v20, %v810_v12 }
 0x171   : > { %v842_v52 = vrot.slane %v828_v50, %v810_v12 }
 0x173   : > { %v843_v54 = vcombine.low %v835_v51, %v842_v52 }
 0x175   : > { %v845_v55 = vadd.f32 %v843_v54, %v822_v53 }
 0x177   : > { %v1031_v56 = vmul.f32 -1.442695, %v845_v55  ;;  %v886_v57 = vrot.slane %v845_v55, 2  ;;  %v897_v59 = vrot.slane %v845_v55, 6  ;;  %v894_v62 = vrot.slane %v845_v55, 4 }
 0x179   : > { %1320 = vpow2.f32 %v1031_v56  ;;  %v1032_v58 = vmul.f32 -1.442695, %v886_v57  ;;  %v1033_v60 = vmul.f32 -1.442695, %v897_v59 }
 0x17b   : > { %1322 = vpow2.f32 %v1032_v58 }
 0x17c   : > { %1324 = vpow2.f32 %v1033_v60 }
 0x183   : > { %v1321_v61 = vpop.eup %1320 }
 0x184   : > { %v882_v63 = vadd.f32 1.0, %v1321_v61 }
 0x185   : > { %v1323_v0 = vpop.eup %1322 }
 0x186   : > { %1326 = vrcp.f32 %v882_v63  ;;  %v891_v1 = vadd.f32 1.0, %v1323_v0  ;;  %v1325_v2 = vpop.eup %1324 }
 0x187   : > { %1328 = vtanh.f32 %v894_v62  ;;  %v902_v7 = vadd.f32 1.0, %v1325_v2 }
 0x188   : > { %1330 = vrcp.f32 %v891_v1 }
 0x189   : > { %1332 = vrcp.f32 %v902_v7 }
 0x190   : > { %v1327_v3 = vpop.eup %1326 }
 0x191   : > { %v1329_v5 = vpop.eup %1328 }
 0x192   : > { %v1331_v6 = vpop.eup %1330  ;;  %v906_v9 = vmul.f32 %v1329_v5, %v1327_v3 }
 0x193   : > { %v905_v8 = vmul.f32 %v1331_v6, %v878_v4  ;;  %v1333_v11 = vpop.eup %1332 }
 0x195   : > { %v907_v10 = vadd.f32 %v906_v9, %v905_v8 }
 0x197   : > { %1334 = vtanh.f32 %v907_v10  ;;  %911 = vst [vmem:[#allocation4] sm:$0x3] %v907_v10 }
 0x1a1   : > { %v1335_v12 = vpop.eup %1334 }
 0x1a2   : > { %v909_v13 = vmul.f32 %v1335_v12, %v1333_v11 }
 0x1a4   : > { %913 = vst [vmem:[#allocation2 + $0x2] sm:$0x3] %v909_v13  ;;  %915 = vst [vmem:[%s1397_s8] sm:$0x3] %v909_v13 }
 0x1a5 PF: > { %s15_s15 = sadd.s32 1, %s1342_s15  }
 0x1a6   : > { %p12_p6 = scmp.ge.s32.totalorder %s15_s15, 10  }
 0x1a8   :  { %14 = sbr.rel (!%p12_p6) target bundleno = 1 (0x1), region = 81 }

// kernel: convnet_forward.11
= control target key start
LH: loop header
LB: loop body
LE: loop exit
PB: predicated region body
PF: predicated region fallthrough
CT: control target
= control target key end

     0   :  { %s1786_s1 = inlined_call_operand.vmem [shape: f32[256,1024], index: 1, kind: input, shape index: {}]   ;;  %s1787_s0 = inlined_call_operand.vmem [shape: f32[16,256], index: 0, kind: input, shape index: {}]   ;;  %s1788_s2 = inlined_call_operand.vmem [shape: f32[1,1024], index: 2, kind: input, shape index: {}]   ;;  %s1789_s3 = inlined_call_operand.vmem [shape: f32[16,512], index: 3, kind: output, shape index: {0}]   ;;  %s1790_s4 = inlined_call_operand.vmem [shape: f32[16,512], index: 4, kind: output, shape index: {1}]  }
   0x1   :  { %v21_v0 = vld [vmem:[%s1786_s1 + $0x8] sm:$0xff]  ;;  %v23_v2 = vld [vmem:[%s1786_s1 + $0x18] sm:$0xff]  ;;  %v20_v5 = vld [vmem:[%s1786_s1] sm:$0xff] }
   0x2   :  { %v29_v1 = vld [vmem:[%s1786_s1 + $0x48] sm:$0xff]  ;;  %v31_v4 = vld [vmem:[%s1786_s1 + $0x58] sm:$0xff]  ;;  %v28_v6 = vld [vmem:[%s1786_s1 + $0x40] sm:$0xff] }
   0x3   :  { %v650_v3 = vpack.c.bf16 %v29_v1, %v21_v0  ;;  %v714_v7 = vpack.c.bf16 %v31_v4, %v23_v2  ;;  %v652_v8 = vpack.c.bf16 %v28_v6, %v20_v5  ;;  %v22_v9 = vld [vmem:[%s1786_s1 + $0x10] sm:$0xff]  ;;  %v37_v11 = vld [vmem:[%s1786_s1 + $0x88] sm:$0xff]  ;;  %v39_v14 = vld [vmem:[%s1786_s1 + $0x98] sm:$0xff] }
   0x4   :  { %v30_v10 = vld [vmem:[%s1786_s1 + $0x50] sm:$0xff]  ;;  %v45_v13 = vld [vmem:[%s1786_s1 + $0xc8] sm:$0xff]  ;;  %v47_v15 = vld [vmem:[%s1786_s1 + $0xd8] sm:$0xff] }
   0x5   :  { %651 = vmatprep.subr.bf16.mxu0 %v650_v3  ;;  %v716_v12 = vpack.c.bf16 %v30_v10, %v22_v9  ;;  %715 = vmatprep.subr.bf16.mxu1 %v714_v7  ;;  %v654_v16 = vpack.c.bf16 %v45_v13, %v37_v11  ;;  %v718_v17 = vpack.c.bf16 %v47_v15, %v39_v14  ;;  %v36_v18 = vld [vmem:[%s1786_s1 + $0x80] sm:$0xff]  ;;  %v38_v20 = vld [vmem:[%s1786_s1 + $0x90] sm:$0xff]  ;;  %v53_v23 = vld [vmem:[%s1786_s1 + $0x108] sm:$0xff] }
   0x6   :  { %653 = vmatpush1.bf16.msra.mxu0 %v652_v8  ;;  %v44_v19 = vld [vmem:[%s1786_s1 + $0xc0] sm:$0xff]  ;;  %v46_v22 = vld [vmem:[%s1786_s1 + $0xd0] sm:$0xff]  ;;  %v61_v24 = vld [vmem:[%s1786_s1 + $0x148] sm:$0xff] }
   0x7   :  { %717 = vmatpush1.bf16.msra.mxu1 %v716_v12  ;;  %v656_v21 = vpack.c.bf16 %v44_v19, %v36_v18  ;;  %655 = vmatprep.subr.bf16.mxu0 %v654_v16  ;;  %v720_v25 = vpack.c.bf16 %v46_v22, %v38_v20  ;;  %v658_v26 = vpack.c.bf16 %v61_v24, %v53_v23  ;;  %v55_v27 = vld [vmem:[%s1786_s1 + $0x118] sm:$0xff]  ;;  %v52_v29 = vld [vmem:[%s1786_s1 + $0x100] sm:$0xff]  ;;  %v54_v32 = vld [vmem:[%s1786_s1 + $0x110] sm:$0xff] }
   0x8   :  { %719 = vmatprep.subr.bf16.mxu1 %v718_v17  ;;  %v63_v28 = vld [vmem:[%s1786_s1 + $0x158] sm:$0xff]  ;;  %v60_v31 = vld [vmem:[%s1786_s1 + $0x140] sm:$0xff]  ;;  %v62_v33 = vld [vmem:[%s1786_s1 + $0x150] sm:$0xff] }
   0x9   :  { %v722_v30 = vpack.c.bf16 %v63_v28, %v55_v27  ;;  %v660_v34 = vpack.c.bf16 %v60_v31, %v52_v29  ;;  %v69_v35 = vld [vmem:[%s1786_s1 + $0x188] sm:$0xff]  ;;  %v71_v37 = vld [vmem:[%s1786_s1 + $0x198] sm:$0xff]  ;;  %v724_v38 = vpack.c.bf16 %v62_v33, %v54_v32  ;;  %v68_v41 = vld [vmem:[%s1786_s1 + $0x180] sm:$0xff] }
   0xa   :  { %657 = vmatpush1.bf16.msra.mxu0 %v656_v21  ;;  %v77_v36 = vld [vmem:[%s1786_s1 + $0x1c8] sm:$0xff]  ;;  %v79_v40 = vld [vmem:[%s1786_s1 + $0x1d8] sm:$0xff]  ;;  %v76_v42 = vld [vmem:[%s1786_s1 + $0x1c0] sm:$0xff] }
   0xb   :  { %721 = vmatpush1.bf16.msra.mxu1 %v720_v25  ;;  %659 = vmatprep.subr.bf16.mxu0 %v658_v26  ;;  %v662_v39 = vpack.c.bf16 %v77_v36, %v69_v35  ;;  %v726_v43 = vpack.c.bf16 %v79_v40, %v71_v37  ;;  %v70_v44 = vld [vmem:[%s1786_s1 + $0x190] sm:$0xff]  ;;  %v85_v46 = vld [vmem:[%s1786_s1 + $0x208] sm:$0xff]  ;;  %v87_v48 = vld [vmem:[%s1786_s1 + $0x218] sm:$0xff]  ;;  %v664_v50 = vpack.c.bf16 %v76_v42, %v68_v41 }
   0xc   :  { %723 = vmatprep.subr.bf16.mxu1 %v722_v30  ;;  %v78_v45 = vld [vmem:[%s1786_s1 + $0x1d0] sm:$0xff]  ;;  %v93_v47 = vld [vmem:[%s1786_s1 + $0x248] sm:$0xff]  ;;  %v95_v49 = vld [vmem:[%s1786_s1 + $0x258] sm:$0xff] }
   0xd   :  { %v728_v51 = vpack.c.bf16 %v78_v45, %v70_v44  ;;  %v666_v52 = vpack.c.bf16 %v93_v47, %v85_v46  ;;  %v84_v53 = vld [vmem:[%s1786_s1 + $0x200] sm:$0xff]  ;;  %v86_v55 = vld [vmem:[%s1786_s1 + $0x210] sm:$0xff]  ;;  %v730_v56 = vpack.c.bf16 %v95_v49, %v87_v48  ;;  %v101_v58 = vld [vmem:[%s1786_s1 + $0x288] sm:$0xff] }
   0xe   :  { %661 = vmatpush1.bf16.msra.mxu0 %v660_v34  ;;  %v92_v54 = vld [vmem:[%s1786_s1 + $0x240] sm:$0xff]  ;;  %v94_v57 = vld [vmem:[%s1786_s1 + $0x250] sm:$0xff]  ;;  %v109_v59 = vld [vmem:[%s1786_s1 + $0x2c8] sm:$0xff] }
   0xf   :  { %725 = vmatpush1.bf16.msra.mxu1 %v724_v38  ;;  %663 = vmatprep.subr.bf16.mxu0 %v662_v39  ;;  %v103_v60 = vld [vmem:[%s1786_s1 + $0x298] sm:$0xff]  ;;  %v668_v62 = vpack.c.bf16 %v92_v54, %v84_v53  ;;  %v732_v63 = vpack.c.bf16 %v94_v57, %v86_v55  ;;  %v670_v0 = vpack.c.bf16 %v109_v59, %v101_v58  ;;  %v100_v1 = vld [vmem:[%s1786_s1 + $0x280] sm:$0xff]  ;;  %v102_v3 = vld [vmem:[%s1786_s1 + $0x290] sm:$0xff] }
  0x10   :  { %727 = vmatprep.subr.bf16.mxu1 %v726_v43  ;;  %v111_v61 = vld [vmem:[%s1786_s1 + $0x2d8] sm:$0xff]  ;;  %v108_v2 = vld [vmem:[%s1786_s1 + $0x2c0] sm:$0xff]  ;;  %v110_v5 = vld [vmem:[%s1786_s1 + $0x2d0] sm:$0xff] }
  0x11   :  { %v734_v4 = vpack.c.bf16 %v111_v61, %v103_v60  ;;  %v117_v6 = vld [vmem:[%s1786_s1 + $0x308] sm:$0xff]  ;;  %v119_v8 = vld [vmem:[%s1786_s1 + $0x318] sm:$0xff]  ;;  %v672_v10 = vpack.c.bf16 %v108_v2, %v100_v1  ;;  %v736_v11 = vpack.c.bf16 %v110_v5, %v102_v3  ;;  %v116_v13 = vld [vmem:[%s1786_s1 + $0x300] sm:$0xff] }
  0x12   :  { %665 = vmatpush1.bf16.msra.mxu0 %v664_v50  ;;  %v125_v7 = vld [vmem:[%s1786_s1 + $0x348] sm:$0xff]  ;;  %v127_v9 = vld [vmem:[%s1786_s1 + $0x358] sm:$0xff]  ;;  %v124_v14 = vld [vmem:[%s1786_s1 + $0x340] sm:$0xff] }
  0x13   :  { %729 = vmatpush1.bf16.msra.mxu1 %v728_v51  ;;  %667 = vmatprep.subr.bf16.mxu0 %v666_v52  ;;  %v674_v12 = vpack.c.bf16 %v125_v7, %v117_v6  ;;  %v118_v15 = vld [vmem:[%s1786_s1 + $0x310] sm:$0xff]  ;;  %v738_v16 = vpack.c.bf16 %v127_v9, %v119_v8  ;;  %v133_v18 = vld [vmem:[%s1786_s1 + $0x388] sm:$0xff]  ;;  %v135_v20 = vld [vmem:[%s1786_s1 + $0x398] sm:$0xff]  ;;  %v676_v22 = vpack.c.bf16 %v124_v14, %v116_v13 }
  0x14   :  { %731 = vmatprep.subr.bf16.mxu1 %v730_v56  ;;  %v126_v17 = vld [vmem:[%s1786_s1 + $0x350] sm:$0xff]  ;;  %v141_v19 = vld [vmem:[%s1786_s1 + $0x3c8] sm:$0xff]  ;;  %v143_v21 = vld [vmem:[%s1786_s1 + $0x3d8] sm:$0xff] }
  0x15   :  { %v740_v23 = vpack.c.bf16 %v126_v17, %v118_v15  ;;  %v678_v24 = vpack.c.bf16 %v141_v19, %v133_v18  ;;  %v132_v25 = vld [vmem:[%s1786_s1 + $0x380] sm:$0xff]  ;;  %v134_v27 = vld [vmem:[%s1786_s1 + $0x390] sm:$0xff]  ;;  %v742_v28 = vpack.c.bf16 %v143_v21, %v135_v20  ;;  %v149_v30 = vld [vmem:[%s1786_s1 + $0x408] sm:$0xff] }
  0x16   :  { %669 = vmatpush1.bf16.msra.mxu0 %v668_v62  ;;  %v140_v26 = vld [vmem:[%s1786_s1 + $0x3c0] sm:$0xff]  ;;  %v142_v29 = vld [vmem:[%s1786_s1 + $0x3d0] sm:$0xff]  ;;  %v157_v31 = vld [vmem:[%s1786_s1 + $0x448] sm:$0xff] }
  0x17   :  { %733 = vmatpush1.bf16.msra.mxu1 %v732_v63  ;;  %671 = vmatprep.subr.bf16.mxu0 %v670_v0  ;;  %v151_v32 = vld [vmem:[%s1786_s1 + $0x418] sm:$0xff]  ;;  %v680_v34 = vpack.c.bf16 %v140_v26, %v132_v25  ;;  %v744_v35 = vpack.c.bf16 %v142_v29, %v134_v27  ;;  %v682_v36 = vpack.c.bf16 %v157_v31, %v149_v30  ;;  %v148_v37 = vld [vmem:[%s1786_s1 + $0x400] sm:$0xff]  ;;  %v150_v39 = vld [vmem:[%s1786_s1 + $0x410] sm:$0xff] }
  0x18   :  { %735 = vmatprep.subr.bf16.mxu1 %v734_v4  ;;  %v159_v33 = vld [vmem:[%s1786_s1 + $0x458] sm:$0xff]  ;;  %v156_v38 = vld [vmem:[%s1786_s1 + $0x440] sm:$0xff]  ;;  %v158_v41 = vld [vmem:[%s1786_s1 + $0x450] sm:$0xff] }
  0x19   :  { %v746_v40 = vpack.c.bf16 %v159_v33, %v151_v32  ;;  %v165_v42 = vld [vmem:[%s1786_s1 + $0x488] sm:$0xff]  ;;  %v167_v44 = vld [vmem:[%s1786_s1 + $0x498] sm:$0xff]  ;;  %v684_v46 = vpack.c.bf16 %v156_v38, %v148_v37  ;;  %v748_v47 = vpack.c.bf16 %v158_v41, %v150_v39  ;;  %v164_v49 = vld [vmem:[%s1786_s1 + $0x480] sm:$0xff] }
  0x1a   :  { %673 = vmatpush1.bf16.msra.mxu0 %v672_v10  ;;  %v173_v43 = vld [vmem:[%s1786_s1 + $0x4c8] sm:$0xff]  ;;  %v175_v45 = vld [vmem:[%s1786_s1 + $0x4d8] sm:$0xff]  ;;  %v172_v50 = vld [vmem:[%s1786_s1 + $0x4c0] sm:$0xff] }
  0x1b   :  { %737 = vmatpush1.bf16.msra.mxu1 %v736_v11  ;;  %675 = vmatprep.subr.bf16.mxu0 %v674_v12  ;;  %v686_v48 = vpack.c.bf16 %v173_v43, %v165_v42  ;;  %v166_v51 = vld [vmem:[%s1786_s1 + $0x490] sm:$0xff]  ;;  %v750_v52 = vpack.c.bf16 %v175_v45, %v167_v44  ;;  %v181_v54 = vld [vmem:[%s1786_s1 + $0x508] sm:$0xff]  ;;  %v183_v56 = vld [vmem:[%s1786_s1 + $0x518] sm:$0xff]  ;;  %v688_v58 = vpack.c.bf16 %v172_v50, %v164_v49 }
  0x1c   :  { %739 = vmatprep.subr.bf16.mxu1 %v738_v16  ;;  %v174_v53 = vld [vmem:[%s1786_s1 + $0x4d0] sm:$0xff]  ;;  %v189_v55 = vld [vmem:[%s1786_s1 + $0x548] sm:$0xff]  ;;  %v191_v57 = vld [vmem:[%s1786_s1 + $0x558] sm:$0xff] }
  0x1d   :  { %v752_v59 = vpack.c.bf16 %v174_v53, %v166_v51  ;;  %v690_v60 = vpack.c.bf16 %v189_v55, %v181_v54  ;;  %v180_v61 = vld [vmem:[%s1786_s1 + $0x500] sm:$0xff]  ;;  %v182_v63 = vld [vmem:[%s1786_s1 + $0x510] sm:$0xff]  ;;  %v754_v0 = vpack.c.bf16 %v191_v57, %v183_v56  ;;  %v197_v2 = vld [vmem:[%s1786_s1 + $0x588] sm:$0xff] }
  0x1e   :  { %677 = vmatpush1.bf16.msra.mxu0 %v676_v22  ;;  %v188_v62 = vld [vmem:[%s1786_s1 + $0x540] sm:$0xff]  ;;  %v190_v1 = vld [vmem:[%s1786_s1 + $0x550] sm:$0xff]  ;;  %v205_v3 = vld [vmem:[%s1786_s1 + $0x5c8] sm:$0xff] }
  0x1f   :  { %741 = vmatpush1.bf16.msra.mxu1 %v740_v23  ;;  %679 = vmatprep.subr.bf16.mxu0 %v678_v24  ;;  %v199_v4 = vld [vmem:[%s1786_s1 + $0x598] sm:$0xff]  ;;  %v692_v6 = vpack.c.bf16 %v188_v62, %v180_v61  ;;  %v196_v7 = vld [vmem:[%s1786_s1 + $0x580] sm:$0xff]  ;;  %v756_v8 = vpack.c.bf16 %v190_v1, %v182_v63  ;;  %v694_v9 = vpack.c.bf16 %v205_v3, %v197_v2  ;;  %v198_v11 = vld [vmem:[%s1786_s1 + $0x590] sm:$0xff] }
  0x20   :  { %743 = vmatprep.subr.bf16.mxu1 %v742_v28  ;;  %v207_v5 = vld [vmem:[%s1786_s1 + $0x5d8] sm:$0xff]  ;;  %v204_v10 = vld [vmem:[%s1786_s1 + $0x5c0] sm:$0xff]  ;;  %v206_v12 = vld [vmem:[%s1786_s1 + $0x5d0] sm:$0xff] }
  0x21   :  { %v758_v13 = vpack.c.bf16 %v207_v5, %v199_v4  ;;  %v213_v14 = vld [vmem:[%s1786_s1 + $0x608] sm:$0xff]  ;;  %v215_v17 = vld [vmem:[%s1786_s1 + $0x618] sm:$0xff]  ;;  %v696_v19 = vpack.c.bf16 %v204_v10, %v196_v7  ;;  %v760_v20 = vpack.c.bf16 %v206_v12, %v198_v11  ;;  %v212_v22 = vld [vmem:[%s1786_s1 + $0x600] sm:$0xff] }
  0x22   :  { %681 = vmatpush1.bf16.msra.mxu0 %v680_v34  ;;  %v221_v15 = vld [vmem:[%s1786_s1 + $0x648] sm:$0xff]  ;;  %v223_v18 = vld [vmem:[%s1786_s1 + $0x658] sm:$0xff]  ;;  %v220_v23 = vld [vmem:[%s1786_s1 + $0x640] sm:$0xff] }
  0x23   :  { %745 = vmatpush1.bf16.msra.mxu1 %v744_v35  ;;  %683 = vmatprep.subr.bf16.mxu0 %v682_v36  ;;  %v1228_v16 = vld [vmem:[%s1787_s0 + $0x8] sm:$0xff]  ;;  %v698_v21 = vpack.c.bf16 %v221_v15, %v213_v14  ;;  %v214_v24 = vld [vmem:[%s1786_s1 + $0x610] sm:$0xff]  ;;  %v762_v25 = vpack.c.bf16 %v223_v18, %v215_v17  ;;  %v231_v29 = vld [vmem:[%s1786_s1 + $0x698] sm:$0xff]  ;;  %v700_v31 = vpack.c.bf16 %v220_v23, %v212_v22 }
  0x24   :  { %747 = vmatprep.subr.bf16.mxu1 %v746_v40  ;;  %382 = vmatprep.mubr.f32.mxu0 %v1228_v16  ;;  %v222_v26 = vld [vmem:[%s1786_s1 + $0x650] sm:$0xff]  ;;  %v229_v27 = vld [vmem:[%s1786_s1 + $0x688] sm:$0xff]  ;;  %v239_v30 = vld [vmem:[%s1786_s1 + $0x6d8] sm:$0xff] }
  0x25   :  { %459 = vmatprep.mubr.f32.mxu1 %v1228_v16  ;;  %v237_v28 = vld [vmem:[%s1786_s1 + $0x6c8] sm:$0xff]  ;;  %v764_v32 = vpack.c.bf16 %v222_v26, %v214_v24  ;;  %v228_v34 = vld [vmem:[%s1786_s1 + $0x680] sm:$0xff]  ;;  %v230_v36 = vld [vmem:[%s1786_s1 + $0x690] sm:$0xff]  ;;  %v766_v37 = vpack.c.bf16 %v239_v30, %v231_v29 }
  0x26   :  { %685 = vmatpush1.bf16.msra.mxu0 %v684_v46  ;;  %v702_v33 = vpack.c.bf16 %v237_v28, %v229_v27  ;;  %v236_v35 = vld [vmem:[%s1786_s1 + $0x6c0] sm:$0xff]  ;;  %v238_v38 = vld [vmem:[%s1786_s1 + $0x6d0] sm:$0xff]  ;;  %v245_v39 = vld [vmem:[%s1786_s1 + $0x708] sm:$0xff] }
  0x27   :  { %749 = vmatpush1.bf16.msra.mxu1 %v748_v47  ;;  %687 = vmatprep.subr.bf16.mxu0 %v686_v48  ;;  %v253_v40 = vld [vmem:[%s1786_s1 + $0x748] sm:$0xff]  ;;  %v247_v41 = vld [vmem:[%s1786_s1 + $0x718] sm:$0xff]  ;;  %v704_v43 = vpack.c.bf16 %v236_v35, %v228_v34  ;;  %v768_v44 = vpack.c.bf16 %v238_v38, %v230_v36  ;;  %v244_v46 = vld [vmem:[%s1786_s1 + $0x700] sm:$0xff] }
  0x28   :  { %751 = vmatprep.subr.bf16.mxu1 %v750_v52  ;;  %v255_v42 = vld [vmem:[%s1786_s1 + $0x758] sm:$0xff]  ;;  %v706_v45 = vpack.c.bf16 %v253_v40, %v245_v39  ;;  %v252_v47 = vld [vmem:[%s1786_s1 + $0x740] sm:$0xff]  ;;  %v246_v48 = vld [vmem:[%s1786_s1 + $0x710] sm:$0xff] }
  0x29   :  { %v770_v49 = vpack.c.bf16 %v255_v42, %v247_v41  ;;  %v254_v50 = vld [vmem:[%s1786_s1 + $0x750] sm:$0xff]  ;;  %v261_v51 = vld [vmem:[%s1786_s1 + $0x788] sm:$0xff]  ;;  %v263_v53 = vld [vmem:[%s1786_s1 + $0x798] sm:$0xff]  ;;  %v708_v55 = vpack.c.bf16 %v252_v47, %v244_v46 }
  0x2a   :  { %689 = vmatpush1.bf16.msra.mxu0 %v688_v58  ;;  %v269_v52 = vld [vmem:[%s1786_s1 + $0x7c8] sm:$0xff]  ;;  %v271_v54 = vld [vmem:[%s1786_s1 + $0x7d8] sm:$0xff]  ;;  %v772_v56 = vpack.c.bf16 %v254_v50, %v246_v48  ;;  %v260_v58 = vld [vmem:[%s1786_s1 + $0x780] sm:$0xff] }
  0x2b   :  { %753 = vmatpush1.bf16.msra.mxu1 %v752_v59  ;;  %691 = vmatprep.subr.bf16.mxu0 %v690_v60  ;;  %v710_v57 = vpack.c.bf16 %v269_v52, %v261_v51  ;;  %v268_v59 = vld [vmem:[%s1786_s1 + $0x7c0] sm:$0xff]  ;;  %v262_v60 = vld [vmem:[%s1786_s1 + $0x790] sm:$0xff]  ;;  %v774_v61 = vpack.c.bf16 %v271_v54, %v263_v53  ;;  %v25_v63 = vld [vmem:[%s1786_s1 + $0x28] sm:$0xff] }
  0x2c   :  { %755 = vmatprep.subr.bf16.mxu1 %v754_v0  ;;  %v270_v62 = vld [vmem:[%s1786_s1 + $0x7d0] sm:$0xff]  ;;  %v33_v0 = vld [vmem:[%s1786_s1 + $0x68] sm:$0xff]  ;;  %v27_v1 = vld [vmem:[%s1786_s1 + $0x38] sm:$0xff]  ;;  %v712_v3 = vpack.c.bf16 %v268_v59, %v260_v58 }
  0x2d   :  { %v35_v2 = vld [vmem:[%s1786_s1 + $0x78] sm:$0xff]  ;;  %v776_v4 = vpack.c.bf16 %v270_v62, %v262_v60  ;;  %v778_v5 = vpack.c.bf16 %v33_v0, %v25_v63  ;;  %v32_v7 = vld [vmem:[%s1786_s1 + $0x60] sm:$0xff]  ;;  %v34_v10 = vld [vmem:[%s1786_s1 + $0x70] sm:$0xff] }
  0x2e   :  { %693 = vmatpush1.bf16.msra.mxu0 %v692_v6  ;;  %v24_v6 = vld [vmem:[%s1786_s1 + $0x20] sm:$0xff]  ;;  %v41_v11 = vld [vmem:[%s1786_s1 + $0xa8] sm:$0xff]  ;;  %v51_v14 = vld [vmem:[%s1786_s1 + $0xf8] sm:$0xff] }
  0x2f   :  { %757 = vmatpush1.bf16.msra.mxu1 %v756_v8  ;;  %695 = vmatprep.subr.bf16.mxu0 %v694_v9  ;;  %v26_v8 = vld [vmem:[%s1786_s1 + $0x30] sm:$0xff]  ;;  %v842_v9 = vpack.c.bf16 %v35_v2, %v27_v1  ;;  %v49_v12 = vld [vmem:[%s1786_s1 + $0xe8] sm:$0xff]  ;;  %v1361_v15 = vld [vmem:[%s1787_s0] sm:$0xff]  ;;  %v780_v17 = vpack.c.bf16 %v32_v7, %v24_v6 }
  0x30   :  { %759 = vmatprep.subr.bf16.mxu1 %v758_v13  ;;  %v43_v13 = vld [vmem:[%s1786_s1 + $0xb8] sm:$0xff]  ;;  %v844_v18 = vpack.c.bf16 %v34_v10, %v26_v8  ;;  %v42_v22 = vld [vmem:[%s1786_s1 + $0xb0] sm:$0xff]  ;;  %v65_v26 = vld [vmem:[%s1786_s1 + $0x168] sm:$0xff] }
  0x31   :  { %v846_v23 = vpack.c.bf16 %v51_v14, %v43_v13  ;;  %v50_v24 = vld [vmem:[%s1786_s1 + $0xf0] sm:$0xff]  ;;  %v59_v27 = vld [vmem:[%s1786_s1 + $0x138] sm:$0xff]  ;;  %v81_v38 = vld [vmem:[%s1786_s1 + $0x1e8] sm:$0xff] }
  0x32   :  { %697 = vmatpush1.bf16.msra.mxu0 %v696_v19  ;;  %v782_v19 = vpack.c.bf16 %v49_v12, %v41_v11  ;;  %v67_v28 = vld [vmem:[%s1786_s1 + $0x178] sm:$0xff]  ;;  %v848_v30 = vpack.c.bf16 %v50_v24, %v42_v22  ;;  %v58_v34 = vld [vmem:[%s1786_s1 + $0x130] sm:$0xff]  ;;  %v97_v50 = vld [vmem:[%s1786_s1 + $0x268] sm:$0xff] }
  0x33   :  { %761 = vmatpush1.bf16.msra.mxu1 %v760_v20  ;;  %699 = vmatprep.subr.bf16.mxu0 %v698_v21  ;;  %v40_v20 = vld [vmem:[%s1786_s1 + $0xa0] sm:$0xff]  ;;  %v850_v35 = vpack.c.bf16 %v67_v28, %v59_v27  ;;  %v66_v36 = vld [vmem:[%s1786_s1 + $0x170] sm:$0xff]  ;;  %v75_v39 = vld [vmem:[%s1786_s1 + $0x1b8] sm:$0xff] }
  0x34   :  { %763 = vmatprep.subr.bf16.mxu1 %v762_v25  ;;  %v48_v21 = vld [vmem:[%s1786_s1 + $0xe0] sm:$0xff]  ;;  %v57_v25 = vld [vmem:[%s1786_s1 + $0x128] sm:$0xff]  ;;  %v83_v40 = vld [vmem:[%s1786_s1 + $0x1f8] sm:$0xff]  ;;  %v852_v42 = vpack.c.bf16 %v66_v36, %v58_v34 }
  0x35   :  { %v784_v29 = vpack.c.bf16 %v48_v21, %v40_v20  ;;  %v74_v46 = vld [vmem:[%s1786_s1 + $0x1b0] sm:$0xff]  ;;  %v854_v47 = vpack.c.bf16 %v83_v40, %v75_v39  ;;  %v91_v51 = vld [vmem:[%s1786_s1 + $0x238] sm:$0xff]  ;;  %v113_v62 = vld [vmem:[%s1786_s1 + $0x2e8] sm:$0xff] }
  0x36   :  { %701 = vmatpush1.bf16.msra.mxu0 %v700_v31  ;;  %v786_v31 = vpack.c.bf16 %v65_v26, %v57_v25  ;;  %v82_v48 = vld [vmem:[%s1786_s1 + $0x1f0] sm:$0xff]  ;;  %v99_v52 = vld [vmem:[%s1786_s1 + $0x278] sm:$0xff]  ;;  %v129_v10 = vld [vmem:[%s1786_s1 + $0x368] sm:$0xff] }
  0x37   :  { %765 = vmatpush1.bf16.msra.mxu1 %v764_v32  ;;  %703 = vmatprep.subr.bf16.mxu0 %v702_v33  ;;  %v56_v32 = vld [vmem:[%s1786_s1 + $0x120] sm:$0xff]  ;;  %v856_v54 = vpack.c.bf16 %v82_v48, %v74_v46  ;;  %v90_v58 = vld [vmem:[%s1786_s1 + $0x230] sm:$0xff]  ;;  %v858_v59 = vpack.c.bf16 %v99_v52, %v91_v51  ;;  %v107_v63 = vld [vmem:[%s1786_s1 + $0x2b8] sm:$0xff] }
  0x38   :  { %767 = vmatprep.subr.bf16.mxu1 %v766_v37  ;;  %v64_v33 = vld [vmem:[%s1786_s1 + $0x160] sm:$0xff]  ;;  %v73_v37 = vld [vmem:[%s1786_s1 + $0x1a8] sm:$0xff]  ;;  %v98_v60 = vld [vmem:[%s1786_s1 + $0x270] sm:$0xff] }
  0x39   :  { %v788_v41 = vpack.c.bf16 %v64_v33, %v56_v32  ;;  %v115_v0 = vld [vmem:[%s1786_s1 + $0x2f8] sm:$0xff]  ;;  %v860_v2 = vpack.c.bf16 %v98_v60, %v90_v58  ;;  %v106_v6 = vld [vmem:[%s1786_s1 + $0x2b0] sm:$0xff]  ;;  %v120_v20 = vld [vmem:[%s1786_s1 + $0x320] sm:$0xff] }
  0x3a   :  { %705 = vmatpush1.bf16.msra.mxu0 %v704_v43  ;;  %v790_v43 = vpack.c.bf16 %v81_v38, %v73_v37  ;;  %v862_v7 = vpack.c.bf16 %v115_v0, %v107_v63  ;;  %v114_v8 = vld [vmem:[%s1786_s1 + $0x2f0] sm:$0xff]  ;;  %v123_v11 = vld [vmem:[%s1786_s1 + $0x338] sm:$0xff]  ;;  %v128_v21 = vld [vmem:[%s1786_s1 + $0x360] sm:$0xff] }
  0x3b   :  { %769 = vmatpush1.bf16.msra.mxu1 %v768_v44  ;;  %707 = vmatprep.subr.bf16.mxu0 %v706_v45  ;;  %v72_v44 = vld [vmem:[%s1786_s1 + $0x1a0] sm:$0xff]  ;;  %v131_v12 = vld [vmem:[%s1786_s1 + $0x378] sm:$0xff]  ;;  %v122_v22 = vld [vmem:[%s1786_s1 + $0x330] sm:$0xff] }
  0x3c   :  { %771 = vmatprep.subr.bf16.mxu1 %v770_v49  ;;  %v80_v45 = vld [vmem:[%s1786_s1 + $0x1e0] sm:$0xff]  ;;  %v89_v49 = vld [vmem:[%s1786_s1 + $0x228] sm:$0xff]  ;;  %v1488_v13 = vld [vmem:[%s1787_s0 + $0x18] sm:$0xff] }
  0x3d   :  { %v792_v53 = vpack.c.bf16 %v80_v45, %v72_v44  ;;  %v130_v24 = vld [vmem:[%s1786_s1 + $0x370] sm:$0xff]  ;;  %v137_v25 = vld [vmem:[%s1786_s1 + $0x3a8] sm:$0xff]  ;;  %v139_v27 = vld [vmem:[%s1786_s1 + $0x3b8] sm:$0xff] }
  0x3e   :  { %709 = vmatpush1.bf16.msra.mxu0 %v708_v55  ;;  %v794_v55 = vpack.c.bf16 %v97_v50, %v89_v49  ;;  %v145_v26 = vld [vmem:[%s1786_s1 + $0x3e8] sm:$0xff]  ;;  %v147_v28 = vld [vmem:[%s1786_s1 + $0x3f8] sm:$0xff]  ;;  %v136_v32 = vld [vmem:[%s1786_s1 + $0x3a0] sm:$0xff] }
  0x3f   :  { %773 = vmatpush1.bf16.msra.mxu1 %v772_v56  ;;  %711 = vmatprep.subr.bf16.mxu0 %v710_v57  ;;  %v88_v56 = vld [vmem:[%s1786_s1 + $0x220] sm:$0xff]  ;;  %v138_v34 = vld [vmem:[%s1786_s1 + $0x3b0] sm:$0xff]  ;;  %v153_v37 = vld [vmem:[%s1786_s1 + $0x428] sm:$0xff] }
  0x40   :  { %775 = vmatprep.subr.bf16.mxu1 %v774_v61  ;;  %v96_v57 = vld [vmem:[%s1786_s1 + $0x260] sm:$0xff]  ;;  %v105_v61 = vld [vmem:[%s1786_s1 + $0x2a8] sm:$0xff]  ;;  %v146_v36 = vld [vmem:[%s1786_s1 + $0x3f0] sm:$0xff] }
  0x41   :  { %v796_v1 = vpack.c.bf16 %v96_v57, %v88_v56  ;;  %v144_v33 = vld [vmem:[%s1786_s1 + $0x3e0] sm:$0xff]  ;;  %v161_v38 = vld [vmem:[%s1786_s1 + $0x468] sm:$0xff]  ;;  %v155_v39 = vld [vmem:[%s1786_s1 + $0x438] sm:$0xff] }
  0x42   :  { %713 = vmatpush1.bf16.msra.mxu0 %v712_v3  ;;  %v798_v3 = vpack.c.bf16 %v113_v62, %v105_v61  ;;  %v163_v40 = vld [vmem:[%s1786_s1 + $0x478] sm:$0xff]  ;;  %v152_v44 = vld [vmem:[%s1786_s1 + $0x420] sm:$0xff]  ;;  %v154_v45 = vld [vmem:[%s1786_s1 + $0x430] sm:$0xff] }
  0x43   :  { %777 = vmatpush1.bf16.msra.mxu1 %v776_v4  ;;  %779 = vmatprep.subr.bf16.mxu0 %v778_v5  ;;  %v104_v4 = vld [vmem:[%s1786_s1 + $0x2a0] sm:$0xff]  ;;  %v874_v46 = vpack.c.bf16 %v163_v40, %v155_v39  ;;  %v169_v48 = vld [vmem:[%s1786_s1 + $0x4a8] sm:$0xff]  ;;  %v171_v50 = vld [vmem:[%s1786_s1 + $0x4b8] sm:$0xff] }
  0x44   :  { %843 = vmatprep.subr.bf16.mxu1 %v842_v9  ;;  %v112_v5 = vld [vmem:[%s1786_s1 + $0x2e0] sm:$0xff]  ;;  %v121_v9 = vld [vmem:[%s1786_s1 + $0x328] sm:$0xff]  ;;  %v179_v51 = vld [vmem:[%s1786_s1 + $0x4f8] sm:$0xff] }
  0x45   :  { %383 = vmatmul.mubr.f32.vlgmr.msra.gmra.mrb[0].mxu0 %v1361_v15  ;;  %v800_v14 = vpack.c.bf16 %v112_v5, %v104_v4  ;;  %v177_v49 = vld [vmem:[%s1786_s1 + $0x4e8] sm:$0xff]  ;;  %v176_v56 = vld [vmem:[%s1786_s1 + $0x4e0] sm:$0xff]  ;;  %v170_v57 = vld [vmem:[%s1786_s1 + $0x4b0] sm:$0xff]  ;;  %v878_v58 = vpack.c.bf16 %v179_v51, %v171_v50 }
  0x46   :  { %460 = vmatmul.mubr.f32.vlgmr.msra.gmra.mrb[0].mxu1 %v1361_v15  ;;  %781 = vmatpush1.bf16.msra.mxu0 %v780_v17  ;;  %v1494_v17 = vld [vmem:[%s1787_s0 + $0x10] sm:$0xff]  ;;  %v185_v60 = vld [vmem:[%s1786_s1 + $0x528] sm:$0xff]  ;;  %v187_v62 = vld [vmem:[%s1786_s1 + $0x538] sm:$0xff] }
  0x47   :  { %845 = vmatpush1.bf16.msra.mxu1 %v844_v18  ;;  %783 = vmatprep.subr.bf16.mxu0 %v782_v19  ;;  %v864_v18 = vpack.c.bf16 %v114_v8, %v106_v6  ;;  %v802_v19 = vpack.c.bf16 %v129_v10, %v121_v9  ;;  %v193_v61 = vld [vmem:[%s1786_s1 + $0x568] sm:$0xff]  ;;  %v195_v63 = vld [vmem:[%s1786_s1 + $0x578] sm:$0xff]  ;;  %v192_v4 = vld [vmem:[%s1786_s1 + $0x560] sm:$0xff] }
  0x48   :  { %847 = vmatprep.subr.bf16.mxu1 %v846_v23  ;;  %388 = vmatprep.mubr.f32.mxu0 %v1488_v13  ;;  %v866_v23 = vpack.c.bf16 %v131_v12, %v123_v11  ;;  %v186_v5 = vld [vmem:[%s1786_s1 + $0x530] sm:$0xff]  ;;  %v882_v6 = vpack.c.bf16 %v195_v63, %v187_v62  ;;  %v201_v8 = vld [vmem:[%s1786_s1 + $0x5a8] sm:$0xff]  ;;  %v203_v10 = vld [vmem:[%s1786_s1 + $0x5b8] sm:$0xff] }
  0x49   :  { %465 = vmatprep.mubr.f32.mxu1 %v1488_v13  ;;  %389 = vmatmul.mubr.f32.gmra.mrb[2].mxu0 %v1494_v17  ;;  %v209_v9 = vld [vmem:[%s1786_s1 + $0x5e8] sm:$0xff]  ;;  %v211_v11 = vld [vmem:[%s1786_s1 + $0x5f8] sm:$0xff] }
  0x4a   :  { %785 = vmatpush1.bf16.msra.mxu0 %v784_v29  ;;  %466 = vmatmul.mubr.f32.gmra.mrb[2].mxu1 %v1494_v17  ;;  %v804_v29 = vpack.c.bf16 %v128_v21, %v120_v20  ;;  %v208_v20 = vld [vmem:[%s1786_s1 + $0x5e0] sm:$0xff]  ;;  %v202_v21 = vld [vmem:[%s1786_s1 + $0x5b0] sm:$0xff]  ;;  %v243_v39 = vld [vmem:[%s1786_s1 + $0x6f8] sm:$0xff] }
  0x4b   :  { %849 = vmatpush1.bf16.msra.mxu1 %v848_v30  ;;  %787 = vmatprep.subr.bf16.mxu0 %v786_v31  ;;  %v868_v30 = vpack.c.bf16 %v130_v24, %v122_v22  ;;  %v806_v31 = vpack.c.bf16 %v145_v26, %v137_v25  ;;  %v886_v22 = vpack.c.bf16 %v211_v11, %v203_v10  ;;  %v217_v24 = vld [vmem:[%s1786_s1 + $0x628] sm:$0xff]  ;;  %v219_v26 = vld [vmem:[%s1786_s1 + $0x638] sm:$0xff] }
  0x4c   :  { %851 = vmatprep.subr.bf16.mxu1 %v850_v35  ;;  %536 = vmatprep.mubr.f32.mxu0 %v1228_v16  ;;  %v870_v35 = vpack.c.bf16 %v147_v28, %v139_v27  ;;  %v225_v25 = vld [vmem:[%s1786_s1 + $0x668] sm:$0xff]  ;;  %v227_v27 = vld [vmem:[%s1786_s1 + $0x678] sm:$0xff] }
  0x4d   :  { %613 = vmatprep.mubr.f32.mxu1 %v1228_v16  ;;  %v160_v16 = vld [vmem:[%s1786_s1 + $0x460] sm:$0xff]  ;;  %v259_v50 = vld [vmem:[%s1786_s1 + $0x778] sm:$0xff] }
  0x4e   :  { %789 = vmatpush1.bf16.msra.mxu0 %v788_v41  ;;  %v808_v41 = vpack.c.bf16 %v144_v33, %v136_v32  ;;  %v812_v52 = vpack.c.bf16 %v160_v16, %v152_v44  ;;  %v224_v32 = vld [vmem:[%s1786_s1 + $0x660] sm:$0xff]  ;;  %v218_v33 = vld [vmem:[%s1786_s1 + $0x630] sm:$0xff]  ;;  %v275_v62 = vld [vmem:[%s1786_s1 + $0x7f8] sm:$0xff] }
  0x4f   :  { %853 = vmatpush1.bf16.msra.mxu1 %v852_v42  ;;  %791 = vmatprep.subr.bf16.mxu0 %v790_v43  ;;  %v872_v42 = vpack.c.bf16 %v146_v36, %v138_v34  ;;  %v810_v43 = vpack.c.bf16 %v161_v38, %v153_v37  ;;  %v890_v34 = vpack.c.bf16 %v227_v27, %v219_v26  ;;  %v233_v36 = vld [vmem:[%s1786_s1 + $0x6a8] sm:$0xff]  ;;  %v235_v38 = vld [vmem:[%s1786_s1 + $0x6b8] sm:$0xff]  ;;  %v240_v44 = vld [vmem:[%s1786_s1 + $0x6e0] sm:$0xff] }
  0x50   :  { %855 = vmatprep.subr.bf16.mxu1 %v854_v47  ;;  %v162_v47 = vld [vmem:[%s1786_s1 + $0x470] sm:$0xff]  ;;  %v241_v37 = vld [vmem:[%s1786_s1 + $0x6e8] sm:$0xff] }
  0x51   :  { %v234_v16 = vld [vmem:[%s1786_s1 + $0x6b0] sm:$0xff] }
  0x52   :  { %793 = vmatpush1.bf16.msra.mxu0 %v792_v53  ;;  %v876_v53 = vpack.c.bf16 %v162_v47, %v154_v45  ;;  %v894_v45 = vpack.c.bf16 %v243_v39, %v235_v38  ;;  %v249_v47 = vld [vmem:[%s1786_s1 + $0x728] sm:$0xff] }
  0x53   :  { %857 = vmatpush1.bf16.msra.mxu1 %v856_v54  ;;  %795 = vmatprep.subr.bf16.mxu0 %v794_v55  ;;  %v814_v54 = vpack.c.bf16 %v177_v49, %v169_v48  ;;  %v168_v55 = vld [vmem:[%s1786_s1 + $0x4a0] sm:$0xff]  ;;  %v257_v48 = vld [vmem:[%s1786_s1 + $0x768] sm:$0xff]  ;;  %v251_v49 = vld [vmem:[%s1786_s1 + $0x738] sm:$0xff] }
  0x54   :  { %859 = vmatprep.subr.bf16.mxu1 %v858_v59  ;;  %v178_v59 = vld [vmem:[%s1786_s1 + $0x4f0] sm:$0xff]  ;;  %v816_v0 = vpack.c.bf16 %v176_v56, %v168_v55  ;;  %v256_v55 = vld [vmem:[%s1786_s1 + $0x760] sm:$0xff] }
  0x55   :  { %v250_v56 = vld [vmem:[%s1786_s1 + $0x730] sm:$0xff] }
  0x56   :  { %797 = vmatpush1.bf16.msra.mxu0 %v796_v1  ;;  %v880_v1 = vpack.c.bf16 %v178_v59, %v170_v57  ;;  %v898_v57 = vpack.c.bf16 %v259_v50, %v251_v49  ;;  %v265_v59 = vld [vmem:[%s1786_s1 + $0x7a8] sm:$0xff] }
  0x57   :  { %861 = vmatpush1.bf16.msra.mxu1 %v860_v2  ;;  %799 = vmatprep.subr.bf16.mxu0 %v798_v3  ;;  %v818_v2 = vpack.c.bf16 %v193_v61, %v185_v60  ;;  %v184_v3 = vld [vmem:[%s1786_s1 + $0x520] sm:$0xff]  ;;  %v273_v60 = vld [vmem:[%s1786_s1 + $0x7e8] sm:$0xff]  ;;  %v267_v61 = vld [vmem:[%s1786_s1 + $0x7b8] sm:$0xff] }
  0x58   :  { %863 = vmatprep.subr.bf16.mxu1 %v862_v7  ;;  %v194_v7 = vld [vmem:[%s1786_s1 + $0x570] sm:$0xff]  ;;  %v820_v12 = vpack.c.bf16 %v192_v4, %v184_v3  ;;  %v272_v3 = vld [vmem:[%s1786_s1 + $0x7e0] sm:$0xff]  ;;  %v902_v4 = vpack.c.bf16 %v275_v62, %v267_v61 }
  0x5a   :  { %801 = vmatpush1.bf16.msra.mxu0 %v800_v14  ;;  %v884_v14 = vpack.c.bf16 %v194_v7, %v186_v5  ;;  %v266_v5 = vld [vmem:[%s1786_s1 + $0x7b0] sm:$0xff] }
  0x5b   :  { %865 = vmatpush1.bf16.msra.mxu1 %v864_v18  ;;  %803 = vmatprep.subr.bf16.mxu0 %v802_v19  ;;  %v822_v18 = vpack.c.bf16 %v209_v9, %v201_v8  ;;  %v200_v19 = vld [vmem:[%s1786_s1 + $0x5a0] sm:$0xff]  ;;  %v278_v9 = vlaneseq }
  0x5c   :  { %867 = vmatprep.subr.bf16.mxu1 %v866_v23  ;;  %v210_v23 = vld [vmem:[%s1786_s1 + $0x5f0] sm:$0xff]  ;;  %v824_v28 = vpack.c.bf16 %v208_v20, %v200_v19 }
  0x5d   :  { %v279_v10 = vshrl.u32 %v278_v9, 7 }
  0x5e   :  { %805 = vmatpush1.bf16.msra.mxu0 %v804_v29  ;;  %v888_v29 = vpack.c.bf16 %v210_v23, %v202_v21 }
  0x5f   :  { %869 = vmatpush1.bf16.msra.mxu1 %v868_v30  ;;  %807 = vmatprep.subr.bf16.mxu0 %v806_v31  ;;  %v826_v30 = vpack.c.bf16 %v225_v25, %v217_v24  ;;  %v216_v31 = vld [vmem:[%s1786_s1 + $0x620] sm:$0xff]  ;;  %v280_v11 = vsub.s32 0, %v279_v10  ;;  %v292_v19 = vsub.s32 3, %v279_v10  ;;  %v304_v38 = vsub.s32 6, %v279_v10 }
  0x60   :  { %871 = vmatprep.subr.bf16.mxu1 %v870_v35  ;;  %v226_v35 = vld [vmem:[%s1786_s1 + $0x670] sm:$0xff]  ;;  %v828_v40 = vpack.c.bf16 %v224_v32, %v216_v31  ;;  %v300_v39 = vsub.s32 5, %v279_v10 }
  0x62   :  { %809 = vmatpush1.bf16.msra.mxu0 %v808_v41  ;;  %v892_v41 = vpack.c.bf16 %v226_v35, %v218_v33 }
  0x63   :  { %873 = vmatpush1.bf16.msra.mxu1 %v872_v42  ;;  %811 = vmatprep.subr.bf16.mxu0 %v810_v43  ;;  %v830_v42 = vpack.c.bf16 %v241_v37, %v233_v36  ;;  %v232_v43 = vld [vmem:[%s1786_s1 + $0x6a0] sm:$0xff]  ;;  %v296_v37 = vsub.s32 4, %v279_v10 }
  0x64   :  { %875 = vmatprep.subr.bf16.mxu1 %v874_v46  ;;  %v242_v46 = vld [vmem:[%s1786_s1 + $0x6f0] sm:$0xff]  ;;  %v832_v51 = vpack.c.bf16 %v240_v44, %v232_v43 }
  0x66   :  { %813 = vmatpush1.bf16.msra.mxu0 %v812_v52  ;;  %v896_v52 = vpack.c.bf16 %v242_v46, %v234_v16 }
  0x67   :  { %877 = vmatpush1.bf16.msra.mxu1 %v876_v53  ;;  %815 = vmatprep.subr.bf16.mxu0 %v814_v54  ;;  %v834_v53 = vpack.c.bf16 %v257_v48, %v249_v47  ;;  %v248_v54 = vld [vmem:[%s1786_s1 + $0x720] sm:$0xff] }
  0x68   :  { %879 = vmatprep.subr.bf16.mxu1 %v878_v58  ;;  %v258_v58 = vld [vmem:[%s1786_s1 + $0x770] sm:$0xff]  ;;  %v836_v63 = vpack.c.bf16 %v256_v55, %v248_v54 }
  0x6a   :  { %817 = vmatpush1.bf16.msra.mxu0 %v816_v0  ;;  %v900_v0 = vpack.c.bf16 %v258_v58, %v250_v56 }
  0x6b   :  { %881 = vmatpush1.bf16.msra.mxu1 %v880_v1  ;;  %819 = vmatprep.subr.bf16.mxu0 %v818_v2  ;;  %v838_v1 = vpack.c.bf16 %v273_v60, %v265_v59  ;;  %v264_v2 = vld [vmem:[%s1786_s1 + $0x7a0] sm:$0xff] }
  0x6c   :  { %883 = vmatprep.subr.bf16.mxu1 %v882_v6  ;;  %v274_v6 = vld [vmem:[%s1786_s1 + $0x7f0] sm:$0xff]  ;;  %v840_v7 = vpack.c.bf16 %v272_v3, %v264_v2 }
  0x6d   :  { %v904_v8 = vpack.c.bf16 %v274_v6, %v266_v5 }
  0x6e   :  { %821 = vmatpush1.bf16.msra.mxu0 %v820_v12  ;;  %v276_v12 = vld [vmem:[%s1788_s2] sm:$0xff] }
  0x6f   :  { %885 = vmatpush1.bf16.msra.mxu1 %v884_v14  ;;  %823 = vmatprep.subr.bf16.mxu0 %v822_v18  ;;  %v288_v14 = vsub.s32 2, %v279_v10  ;;  %v284_v18 = vsub.s32 1, %v279_v10  ;;  %v281_v20 = vrot.slane %v276_v12, %v280_v11  ;;  %v301_v43 = vrot.slane %v276_v12, %v300_v39 }
  0x70   :  { %887 = vmatprep.subr.bf16.mxu1 %v886_v22  ;;  %v293_v22 = vrot.slane %v276_v12, %v292_v19 }
  0x71   :  { %v285_v21 = vrot.slane %v276_v12, %v284_v18 }
  0x72   :  { %825 = vmatpush1.bf16.msra.mxu0 %v824_v28 }
  0x73   :  { %889 = vmatpush1.bf16.msra.mxu1 %v888_v29  ;;  %827 = vmatprep.subr.bf16.mxu0 %v826_v30 }
  0x74   :  { %891 = vmatprep.subr.bf16.mxu1 %v890_v34 }
  0x76   :  { %829 = vmatpush1.bf16.msra.mxu0 %v828_v40  ;;  %v308_v40 = vsub.s32 7, %v279_v10 }
  0x77   :  { %893 = vmatpush1.bf16.msra.mxu1 %v892_v41  ;;  %831 = vmatprep.subr.bf16.mxu0 %v830_v42  ;;  %v297_v41 = vrot.slane %v276_v12, %v296_v37  ;;  %v305_v42 = vrot.slane %v276_v12, %v304_v38 }
  0x78   :  { %895 = vmatprep.subr.bf16.mxu1 %v894_v45  ;;  %v309_v44 = vrot.slane %v276_v12, %v308_v40 }
  0x7a   :  { %833 = vmatpush1.bf16.msra.mxu0 %v832_v51 }
  0x7b   :  { %897 = vmatpush1.bf16.msra.mxu1 %v896_v52  ;;  %835 = vmatprep.subr.bf16.mxu0 %v834_v53 }
  0x7c   :  { %899 = vmatprep.subr.bf16.mxu1 %v898_v57 }
  0x7e   :  { %837 = vmatpush1.bf16.msra.mxu0 %v836_v63 }
  0x7f   :  { %901 = vmatpush1.bf16.msra.mxu1 %v900_v0  ;;  %839 = vmatprep.subr.bf16.mxu0 %v838_v1 }
  0x80   :  { %903 = vmatprep.subr.bf16.mxu1 %v902_v4 }
  0x82   :  { %841 = vmatpush1.bf16.msra.mxu0 %v840_v7 }
  0x83   :  { %905 = vmatpush1.bf16.msra.mxu1 %v904_v8 }
  0x85   :  { %537 = vmatmul.mubr.f32.vlgmr.msra.gmra.mrb[4].mxu0 %v1361_v15 }
  0x86   :  { %614 = vmatmul.mubr.f32.vlgmr.msra.gmra.mrb[4].mxu1 %v1361_v15  ;;  %542 = vmatprep.mubr.f32.mxu0 %v1488_v13  ;;  %v289_v15 = vrot.slane %v276_v12, %v288_v14 }
  0x87   :  { %619 = vmatprep.mubr.f32.mxu1 %v1488_v13 }
  0x89   :  { %543 = vmatmul.mubr.f32.gmra.mrb[6].mxu0 %v1494_v17 }
  0x8a   :  { %620 = vmatmul.mubr.f32.gmra.mrb[6].mxu1 %v1494_v17 }
 0x118   :  { %v384_v23 = vpop.f32.mrb[0].mxu0 }
 0x119   :  { %v385_v13 = vadd.f32 %v384_v23, %v281_v20  ;;  %v461_v24 = vpop.f32.mrb[0].mxu1  ;;  %v386_v25 = vpop.f32.mrb[1].mxu0 }
 0x11a   :  { %v462_v26 = vadd.f32 %v461_v24, %v289_v15  ;;  %v387_v17 = vadd.f32 %v386_v25, %v285_v21  ;;  %v463_v27 = vpop.f32.mrb[1].mxu1 }
 0x11b   :  { %626 = vst [vmem:[%s1789_s3] sm:$0xff] %v385_v13  ;;  %v464_v28 = vadd.f32 %v463_v27, %v293_v22 }
 0x11c   :  { %628 = vst [vmem:[%s1789_s3 + $0x10] sm:$0xff] %v462_v26  ;;  %627 = vst [vmem:[%s1789_s3 + $0x8] sm:$0xff] %v387_v17  ;;  %v390_v29 = vpop.f32.mrb[2].mxu0 }
 0x11d   :  { %629 = vst [vmem:[%s1789_s3 + $0x18] sm:$0xff] %v464_v28  ;;  %v467_v30 = vpop.f32.mrb[2].mxu1  ;;  %v391_v31 = vadd.f32 %v390_v29, %v281_v20  ;;  %v392_v33 = vpop.f32.mrb[3].mxu0 }
 0x11e   :  { %v468_v32 = vadd.f32 %v467_v30, %v289_v15  ;;  %v469_v34 = vpop.f32.mrb[3].mxu1  ;;  %v393_v35 = vadd.f32 %v392_v33, %v285_v21 }
 0x11f   :  { %v470_v36 = vadd.f32 %v469_v34, %v293_v22  ;;  %630 = vst [vmem:[%s1789_s3 + $0x20] sm:$0xff] %v391_v31 }
 0x120   :  { %632 = vst [vmem:[%s1789_s3 + $0x30] sm:$0xff] %v468_v32  ;;  %631 = vst [vmem:[%s1789_s3 + $0x28] sm:$0xff] %v393_v35 }
 0x121   :  { %633 = vst [vmem:[%s1789_s3 + $0x38] sm:$0xff] %v470_v36 }
 0x158   :  { %v538_v16 = vpop.f32.mrb[4].mxu0 }
 0x159   :  { %v539_v45 = vadd.f32 %v538_v16, %v297_v41  ;;  %v615_v46 = vpop.f32.mrb[4].mxu1  ;;  %v540_v47 = vpop.f32.mrb[5].mxu0 }
 0x15a   :  { %v616_v48 = vadd.f32 %v615_v46, %v305_v42  ;;  %v541_v49 = vadd.f32 %v540_v47, %v301_v43  ;;  %v617_v50 = vpop.f32.mrb[5].mxu1 }
 0x15b   :  { %634 = vst [vmem:[%s1790_s4] sm:$0xff] %v539_v45  ;;  %v618_v51 = vadd.f32 %v617_v50, %v309_v44 }
 0x15c   :  { %636 = vst [vmem:[%s1790_s4 + $0x10] sm:$0xff] %v616_v48  ;;  %635 = vst [vmem:[%s1790_s4 + $0x8] sm:$0xff] %v541_v49  ;;  %v544_v52 = vpop.f32.mrb[6].mxu0 }
 0x15d   :  { %637 = vst [vmem:[%s1790_s4 + $0x18] sm:$0xff] %v618_v51  ;;  %v545_v53 = vadd.f32 %v544_v52, %v297_v41  ;;  %v621_v54 = vpop.f32.mrb[6].mxu1  ;;  %v546_v55 = vpop.f32.mrb[7].mxu0 }
 0x15e   :  { %v622_v56 = vadd.f32 %v621_v54, %v305_v42  ;;  %v547_v57 = vadd.f32 %v546_v55, %v301_v43  ;;  %v623_v58 = vpop.f32.mrb[7].mxu1 }
 0x15f   :  { %638 = vst [vmem:[%s1790_s4 + $0x20] sm:$0xff] %v545_v53  ;;  %v624_v59 = vadd.f32 %v623_v58, %v309_v44 }
 0x160   :  { %640 = vst [vmem:[%s1790_s4 + $0x30] sm:$0xff] %v622_v56  ;;  %639 = vst [vmem:[%s1790_s4 + $0x28] sm:$0xff] %v547_v57 }
 0x161   :  { %641 = vst [vmem:[%s1790_s4 + $0x38] sm:$0xff] %v624_v59 }

// kernel: convnet_forward.13
= control target key start
LH: loop header
LB: loop body
LE: loop exit
PB: predicated region body
PF: predicated region fallthrough
CT: control target
= control target key end

     0   :  { %v639_v3 = vmov 0   ;;  %vm326_vm0 = vcmask 982016   ;;  %vm408_vm1 = vcmask 1043456   ;;  %s923_s0 = inlined_call_operand.vmem [shape: f32[256,128], index: 0, kind: input, shape index: {}]   ;;  %s924_s1 = inlined_call_operand.vmem [shape: f32[120,256], index: 1, kind: input, shape index: {}]   ;;  %s925_s2 = inlined_call_operand.vmem [shape: f32[120,1], index: 2, kind: input, shape index: {}]   ;;  %s926_s4 = inlined_call_operand.vmem [shape: f32[12,1], index: 4, kind: input, shape index: {}]   ;;  %s927_s3 = inlined_call_operand.vmem [shape: f32[12,120], index: 3, kind: input, shape index: {}]   ;;  %s928_s5 = inlined_call_operand.vmem [shape: f32[12,128], index: 5, kind: output, shape index: {}]  }
   0x1   :  { %v66_v0 = vld [vmem:[%s923_s0 + $0x80] sm:$0xff]  ;;  %v67_v1 = vld [vmem:[%s923_s0 + $0x88] sm:$0xff]  ;;  %631 = vset.pattern.permute.xlu0 %v639_v3  ;;  %632 = vset.pattern.permute.xlu1 %v639_v3  ;;  %v68_v6 = vld [vmem:[%s923_s0 + $0x90] sm:$0xff] }
   0x2   :  { %v50_v2 = vld [vmem:[%s923_s0] sm:$0xff]  ;;  %v570_v4 = vpack.c.bf16 %v67_v1, %v66_v0  ;;  %v51_v5 = vld [vmem:[%s923_s0 + $0x8] sm:$0xff]  ;;  %v69_v7 = vld [vmem:[%s923_s0 + $0x98] sm:$0xff] }
   0x3   :  { %v572_v8 = vpack.c.bf16 %v51_v5, %v50_v2  ;;  %v574_v9 = vpack.c.bf16 %v69_v7, %v68_v6  ;;  %v52_v10 = vld [vmem:[%s923_s0 + $0x10] sm:$0xff]  ;;  %v53_v11 = vld [vmem:[%s923_s0 + $0x18] sm:$0xff]  ;;  %v70_v12 = vld [vmem:[%s923_s0 + $0xa0] sm:$0xff] }
   0x4   :  { %571 = vmatprep.subr.bf16.mxu0 %v570_v4  ;;  %v71_v13 = vld [vmem:[%s923_s0 + $0xa8] sm:$0xff]  ;;  %v576_v14 = vpack.c.bf16 %v53_v11, %v52_v10  ;;  %v54_v16 = vld [vmem:[%s923_s0 + $0x20] sm:$0xff]  ;;  %v72_v18 = vld [vmem:[%s923_s0 + $0xb0] sm:$0xff] }
   0x5   :  { %573 = vmatpush3.bf16.msra.mxu0 %v572_v8  ;;  %v578_v15 = vpack.c.bf16 %v71_v13, %v70_v12  ;;  %v55_v17 = vld [vmem:[%s923_s0 + $0x28] sm:$0xff]  ;;  %v73_v19 = vld [vmem:[%s923_s0 + $0xb8] sm:$0xff]  ;;  %v56_v22 = vld [vmem:[%s923_s0 + $0x30] sm:$0xff] }
   0x6   :  { %575 = vmatprep.subr.bf16.mxu0 %v574_v9  ;;  %v580_v20 = vpack.c.bf16 %v55_v17, %v54_v16  ;;  %v582_v21 = vpack.c.bf16 %v73_v19, %v72_v18  ;;  %v57_v23 = vld [vmem:[%s923_s0 + $0x38] sm:$0xff]  ;;  %v74_v24 = vld [vmem:[%s923_s0 + $0xc0] sm:$0xff]  ;;  %v75_v25 = vld [vmem:[%s923_s0 + $0xc8] sm:$0xff] }
   0x7   :  { %v21_v26 = vld [vmem:[%s924_s1 + $0x8] sm:$0xff]  ;;  %v584_v27 = vpack.c.bf16 %v57_v23, %v56_v22  ;;  %v586_v28 = vpack.c.bf16 %v75_v25, %v74_v24  ;;  %v58_v29 = vld [vmem:[%s923_s0 + $0x40] sm:$0xff]  ;;  %v76_v31 = vld [vmem:[%s923_s0 + $0xd0] sm:$0xff] }
   0x8   :  { %236 = vmatprep.mubr.f32.mxu0 %v21_v26  ;;  %v59_v30 = vld [vmem:[%s923_s0 + $0x48] sm:$0xff]  ;;  %v77_v32 = vld [vmem:[%s923_s0 + $0xd8] sm:$0xff]  ;;  %v60_v35 = vld [vmem:[%s923_s0 + $0x50] sm:$0xff] }
   0x9   :  { %577 = vmatpush3.bf16.msra.mxu0 %v576_v14  ;;  %v588_v33 = vpack.c.bf16 %v59_v30, %v58_v29  ;;  %v590_v34 = vpack.c.bf16 %v77_v32, %v76_v31  ;;  %v61_v36 = vld [vmem:[%s923_s0 + $0x58] sm:$0xff]  ;;  %v78_v37 = vld [vmem:[%s923_s0 + $0xe0] sm:$0xff]  ;;  %v79_v38 = vld [vmem:[%s923_s0 + $0xe8] sm:$0xff] }
   0xa   :  { %579 = vmatprep.subr.bf16.mxu0 %v578_v15  ;;  %v592_v39 = vpack.c.bf16 %v61_v36, %v60_v35  ;;  %v82_v40 = vld [vmem:[%s925_s2] sm:$0xff]  ;;  %v594_v41 = vpack.c.bf16 %v79_v38, %v78_v37  ;;  %v63_v43 = vld [vmem:[%s923_s0 + $0x68] sm:$0xff]  ;;  %v84_v44 = vld [vmem:[%s925_s2 + $0x10] sm:$0xff] }
   0xb   :  { %v62_v42 = vld [vmem:[%s923_s0 + $0x60] sm:$0xff]  ;;  %99 = vperm.xlu0 %631, %v82_v40   ;;  %v80_v45 = vld [vmem:[%s923_s0 + $0xf0] sm:$0xff]  ;;  %v81_v46 = vld [vmem:[%s923_s0 + $0xf8] sm:$0xff]  ;;  %109 = vperm.xlu1 %632, %v84_v44  }
   0xc   :  { %v83_v47 = vld [vmem:[%s925_s2 + $0x8] sm:$0xff]  ;;  %v85_v48 = vld [vmem:[%s925_s2 + $0x18] sm:$0xff]  ;;  %v596_v49 = vpack.c.bf16 %v63_v43, %v62_v42  ;;  %v598_v50 = vpack.c.bf16 %v81_v46, %v80_v45  ;;  %v64_v51 = vld [vmem:[%s923_s0 + $0x70] sm:$0xff] }
   0xd   :  { %581 = vmatpush3.bf16.msra.mxu0 %v580_v20  ;;  %v65_v52 = vld [vmem:[%s923_s0 + $0x78] sm:$0xff]  ;;  %v86_v53 = vld [vmem:[%s925_s2 + $0x20] sm:$0xff]  ;;  %v87_v54 = vld [vmem:[%s925_s2 + $0x28] sm:$0xff] }
   0xe   :  { %583 = vmatprep.subr.bf16.mxu0 %v582_v21  ;;  %v600_v55 = vpack.c.bf16 %v65_v52, %v64_v51  ;;  %v88_v56 = vld [vmem:[%s925_s2 + $0x30] sm:$0xff]  ;;  %v89_v57 = vld [vmem:[%s925_s2 + $0x38] sm:$0xff]  ;;  %v20_v58 = vld [vmem:[%s924_s1] sm:$0xff] }
   0xf   :  { %104 = vperm.xlu0 %631, %v83_v47   ;;  %114 = vperm.xlu1 %632, %v85_v48   ;;  %v23_v59 = vld [vmem:[%s924_s1 + $0x18] sm:$0xff]  ;;  %v90_v60 = vld [vmem:[%s925_s2 + $0x40] sm:$0xff]  ;;  %v91_v61 = vld [vmem:[%s925_s2 + $0x48] sm:$0xff] }
  0x10   :  { %v22_v62 = vld [vmem:[%s924_s1 + $0x10] sm:$0xff]  ;;  %v25_v63 = vld [vmem:[%s924_s1 + $0x28] sm:$0xff]  ;;  %v93_v1 = vld [vmem:[%s925_s2 + $0x58] sm:$0xff] }
  0x11   :  { %585 = vmatpush3.bf16.msra.mxu0 %v584_v27  ;;  %v92_v0 = vld [vmem:[%s925_s2 + $0x50] sm:$0xff]  ;;  %v24_v2 = vld [vmem:[%s924_s1 + $0x20] sm:$0xff]  ;;  %v27_v3 = vld [vmem:[%s924_s1 + $0x38] sm:$0xff] }
  0x12   :  { %587 = vmatprep.subr.bf16.mxu0 %v586_v28  ;;  %v94_v4 = vld [vmem:[%s925_s2 + $0x60] sm:$0xff]  ;;  %v95_v5 = vld [vmem:[%s925_s2 + $0x68] sm:$0xff]  ;;  %v26_v6 = vld [vmem:[%s924_s1 + $0x30] sm:$0xff] }
  0x13   :  { %119 = vperm.xlu0 %631, %v86_v53   ;;  %124 = vperm.xlu1 %632, %v87_v54   ;;  %v29_v7 = vld [vmem:[%s924_s1 + $0x48] sm:$0xff]  ;;  %v96_v8 = vld [vmem:[%s925_s2 + $0x70] sm:$0xff]  ;;  %v28_v10 = vld [vmem:[%s924_s1 + $0x40] sm:$0xff] }
  0x14   :  { %v315_v9 = vld [vmem:[%s926_s4 + $0x8] sm:$0xf]  ;;  %v31_v11 = vld [vmem:[%s924_s1 + $0x58] sm:$0xff]  ;;  %v314_v12 = vld [vmem:[%s926_s4] sm:$0xff] }
  0x15   :  { %589 = vmatpush3.bf16.msra.mxu0 %v588_v33  ;;  %v30_v13 = vld [vmem:[%s924_s1 + $0x50] sm:$0xff]  ;;  %v33_v14 = vld [vmem:[%s924_s1 + $0x68] sm:$0xff]  ;;  %v32_v15 = vld [vmem:[%s924_s1 + $0x60] sm:$0xff] }
  0x16   :  { %591 = vmatprep.subr.bf16.mxu0 %v590_v34  ;;  %v35_v16 = vld [vmem:[%s924_s1 + $0x78] sm:$0xff]  ;;  %v34_v17 = vld [vmem:[%s924_s1 + $0x70] sm:$0xff]  ;;  %v37_v18 = vld [vmem:[%s924_s1 + $0x88] sm:$0xff] }
  0x17   :  { %129 = vperm.xlu0 %631, %v88_v56   ;;  %134 = vperm.xlu1 %632, %v89_v57   ;;  %v36_v19 = vld [vmem:[%s924_s1 + $0x80] sm:$0xff]  ;;  %v39_v20 = vld [vmem:[%s924_s1 + $0x98] sm:$0xff]  ;;  %v38_v21 = vld [vmem:[%s924_s1 + $0x90] sm:$0xff] }
  0x18   :  { %v41_v22 = vld [vmem:[%s924_s1 + $0xa8] sm:$0xff]  ;;  %v40_v23 = vld [vmem:[%s924_s1 + $0xa0] sm:$0xff]  ;;  %v43_v24 = vld [vmem:[%s924_s1 + $0xb8] sm:$0xff] }
  0x19   :  { %593 = vmatpush3.bf16.msra.mxu0 %v592_v39  ;;  %v42_v25 = vld [vmem:[%s924_s1 + $0xb0] sm:$0xff]  ;;  %v45_v26 = vld [vmem:[%s924_s1 + $0xc8] sm:$0xff]  ;;  %v44_v27 = vld [vmem:[%s924_s1 + $0xc0] sm:$0xff] }
  0x1a   :  { %595 = vmatprep.subr.bf16.mxu0 %v594_v41  ;;  %v47_v28 = vld [vmem:[%s924_s1 + $0xd8] sm:$0xff]  ;;  %v46_v29 = vld [vmem:[%s924_s1 + $0xd0] sm:$0xff]  ;;  %v49_v30 = vld [vmem:[%s924_s1 + $0xe8] sm:$0xff] }
  0x1b   :  { %139 = vperm.xlu0 %631, %v90_v60   ;;  %144 = vperm.xlu1 %632, %v91_v61   ;;  %v48_v31 = vld [vmem:[%s924_s1 + $0xe0] sm:$0xff] }
  0x1c   :  { %v312_v32 = vld [vmem:[%s927_s3] sm:$0xff] }
  0x1d   :  { %597 = vmatpush3.bf16.msra.mxu0 %v596_v49  ;;  %567 = vmatprep.mubr.msk.f32.mxu1 %vm326_vm0, %v312_v32 }
  0x1e   :  { %599 = vmatprep.subr.bf16.mxu0 %v598_v50 }
  0x1f   :  { %149 = vperm.xlu0 %631, %v92_v0   ;;  %154 = vperm.xlu1 %632, %v93_v1  }
  0x21   :  { %601 = vmatpush3.bf16.msra.mxu0 %v600_v55 }
  0x23   :  { %159 = vperm.xlu0 %631, %v94_v4   ;;  %164 = vperm.xlu1 %632, %v95_v5  }
  0x24   :  { %237 = vmatmul.mubr.f32.vlgmr.msra.gmra.mrb[0].mxu0 %v20_v58 }
  0x25   :  { %241 = vmatprep.mubr.f32.mxu0 %v23_v59 }
  0x27   :  { %169 = vperm.xlu0 %631, %v96_v8   ;;  %323 = vperm.xlu1 %632, %v315_v9  }
  0x28   :  { %242 = vmatmul.mubr.f32.gmra.mrb[2].mxu0 %v22_v62 }
  0x29   :  { %246 = vmatprep.mubr.f32.mxu0 %v25_v63 }
  0x2b   :  { %318 = vperm.xlu0 %631, %v314_v12  }
  0x2c   :  { %247 = vmatmul.mubr.f32.gmra.mrb[4].mxu0 %v24_v2 }
  0x2d   :  { %251 = vmatprep.mubr.f32.mxu0 %v27_v3 }
  0x30   :  { %252 = vmatmul.mubr.f32.gmra.mrb[6].mxu0 %v26_v6 }
  0x31   :  { %256 = vmatprep.mubr.f32.mxu0 %v29_v7 }
  0x34   :  { %257 = vmatmul.mubr.f32.gmra.mrb[8].mxu0 %v28_v10 }
  0x35   :  { %261 = vmatprep.mubr.f32.mxu0 %v31_v11 }
  0x38   :  { %262 = vmatmul.mubr.f32.gmra.mrb[10].mxu0 %v30_v13 }
  0x39   :  { %266 = vmatprep.mubr.f32.mxu0 %v33_v14 }
  0x3c   :  { %267 = vmatmul.mubr.f32.gmra.mrb[12].mxu0 %v32_v15 }
  0x3d   :  { %271 = vmatprep.mubr.f32.mxu0 %v35_v16 }
  0x40   :  { %272 = vmatmul.mubr.f32.gmra.mrb[14].mxu0 %v34_v17 }
  0x41   :  { %276 = vmatprep.mubr.f32.mxu0 %v37_v18 }
  0x44   :  { %277 = vmatmul.mubr.f32.gmra.mrb[16].mxu0 %v36_v19 }
  0x45   :  { %281 = vmatprep.mubr.f32.mxu0 %v39_v20 }
  0x48   :  { %282 = vmatmul.mubr.f32.gmra.mrb[18].mxu0 %v38_v21 }
  0x49   :  { %286 = vmatprep.mubr.f32.mxu0 %v41_v22 }
  0x4c   :  { %287 = vmatmul.mubr.f32.gmra.mrb[20].mxu0 %v40_v23 }
  0x4d   :  { %291 = vmatprep.mubr.f32.mxu0 %v43_v24 }
  0x50   :  { %292 = vmatmul.mubr.f32.gmra.mrb[22].mxu0 %v42_v25 }
  0x51   :  { %296 = vmatprep.mubr.f32.mxu0 %v45_v26 }
  0x54   :  { %297 = vmatmul.mubr.f32.gmra.mrb[24].mxu0 %v44_v27 }
  0x55   :  { %301 = vmatprep.mubr.f32.mxu0 %v47_v28 }
  0x58   :  { %302 = vmatmul.mubr.f32.gmra.mrb[26].mxu0 %v46_v29 }
  0x59   :  { %306 = vmatprep.mubr.f32.mxu0 %v49_v30 }
  0x5c   :  { %307 = vmatmul.mubr.f32.gmra.mrb[28].mxu0 %v48_v31 }
  0x8a   :  { %v100_v34 = vpop.permute.xlu0 %99  ;;  %v110_v44 = vpop.permute.xlu1 %109 }
  0x8e   :  { %v105_v40 = vpop.permute.xlu0 %104  ;;  %v115_v51 = vpop.permute.xlu1 %114 }
  0x92   :  { %v120_v61 = vpop.permute.xlu0 %119  ;;  %v125_v62 = vpop.permute.xlu1 %124 }
  0x96   :  { %v130_v8 = vpop.permute.xlu0 %129  ;;  %v135_v9 = vpop.permute.xlu1 %134 }
  0x9a   :  { %v140_v19 = vpop.permute.xlu0 %139  ;;  %v145_v20 = vpop.permute.xlu1 %144 }
  0x9e   :  { %v150_v30 = vpop.permute.xlu0 %149  ;;  %v155_v31 = vpop.permute.xlu1 %154 }
  0xf7   :  { %v475_v33 = vpop.f32.mrb[0].mxu0 }
  0xf8   :  { %v476_v35 = vpop.f32.mrb[1].mxu0 }
  0xf9   :  { %v477_v36 = vadd.f32 %v476_v35, %v475_v33 }
  0xfb   :  { %v478_v37 = vpop.f32.mrb[2].mxu0  ;;  %v239_v41 = vadd.f32 %v477_v36, %v100_v34 }
  0xfc   :  { %v479_v38 = vpop.f32.mrb[3].mxu0 }
  0xfd   :  { %v480_v39 = vadd.f32 %v479_v38, %v478_v37 }
  0xff   :  { %v244_v42 = vadd.f32 %v480_v39, %v105_v40  ;;  %v481_v43 = vpop.f32.mrb[4].mxu0  ;;  %v160_v39 = vpop.permute.xlu0 %159 }
 0x100   :  { %v482_v45 = vpop.f32.mrb[5].mxu0 }
 0x101   :  { %v483_v46 = vadd.f32 %v482_v45, %v481_v43  ;;  %v602_v47 = vpack.c.bf16 %v244_v42, %v239_v41  ;;  %v165_v42 = vpop.permute.xlu1 %164 }
 0x103   :  { %v484_v48 = vpop.f32.mrb[6].mxu0  ;;  %603 = vmatprep.subr.bf16.mxu1 %v602_v47  ;;  %v249_v52 = vadd.f32 %v483_v46, %v110_v44 }
 0x104   :  { %v485_v49 = vpop.f32.mrb[7].mxu0  ;;  %605 = vmatpush3.bf16.msra.mxu1 %v602_v47 }
 0x105   :  { %v486_v50 = vadd.f32 %v485_v49, %v484_v48  ;;  %v170_v49 = vpop.permute.xlu0 %169 }
 0x107   :  { %v254_v53 = vadd.f32 %v486_v50, %v115_v51  ;;  %v487_v54 = vpop.f32.mrb[8].mxu0  ;;  %v313_v51 = vld [vmem:[%s927_s3 + $0x8] sm:$0xf] }
 0x108   :  { %v488_v55 = vpop.f32.mrb[9].mxu0 }
 0x109   :  { %v489_v56 = vadd.f32 %v488_v55, %v487_v54  ;;  %v606_v57 = vpack.c.bf16 %v254_v53, %v249_v52  ;;  %v324_v52 = vpop.permute.xlu1 %323  ;;  %v319_v54 = vpop.permute.xlu0 %318 }
 0x10b   :  { %v490_v58 = vpop.f32.mrb[10].mxu0  ;;  %607 = vmatprep.subr.bf16.mxu1 %v606_v57  ;;  %v259_v63 = vadd.f32 %v489_v56, %v120_v61 }
 0x10c   :  { %v491_v59 = vpop.f32.mrb[11].mxu0  ;;  %609 = vmatpush3.bf16.msra.mxu1 %v606_v57 }
 0x10d   :  { %v492_v60 = vadd.f32 %v491_v59, %v490_v58 }
 0x10f   :  { %v264_v0 = vadd.f32 %v492_v60, %v125_v62  ;;  %v493_v1 = vpop.f32.mrb[12].mxu0 }
 0x110   :  { %v494_v2 = vpop.f32.mrb[13].mxu0 }
 0x111   :  { %v495_v3 = vadd.f32 %v494_v2, %v493_v1  ;;  %v610_v4 = vpack.c.bf16 %v264_v0, %v259_v63 }
 0x113   :  { %v496_v5 = vpop.f32.mrb[14].mxu0  ;;  %611 = vmatprep.subr.bf16.mxu1 %v610_v4  ;;  %v269_v10 = vadd.f32 %v495_v3, %v130_v8 }
 0x114   :  { %v497_v6 = vpop.f32.mrb[15].mxu0  ;;  %613 = vmatpush3.bf16.msra.mxu1 %v610_v4 }
 0x115   :  { %v498_v7 = vadd.f32 %v497_v6, %v496_v5 }
 0x117   :  { %v274_v11 = vadd.f32 %v498_v7, %v135_v9  ;;  %v499_v12 = vpop.f32.mrb[16].mxu0 }
 0x118   :  { %v500_v13 = vpop.f32.mrb[17].mxu0 }
 0x119   :  { %v501_v14 = vadd.f32 %v500_v13, %v499_v12  ;;  %v614_v15 = vpack.c.bf16 %v274_v11, %v269_v10 }
 0x11b   :  { %v502_v16 = vpop.f32.mrb[18].mxu0  ;;  %615 = vmatprep.subr.bf16.mxu1 %v614_v15  ;;  %v279_v21 = vadd.f32 %v501_v14, %v140_v19 }
 0x11c   :  { %v503_v17 = vpop.f32.mrb[19].mxu0  ;;  %617 = vmatpush3.bf16.msra.mxu1 %v614_v15 }
 0x11d   :  { %v504_v18 = vadd.f32 %v503_v17, %v502_v16 }
 0x11f   :  { %v284_v22 = vadd.f32 %v504_v18, %v145_v20  ;;  %v505_v23 = vpop.f32.mrb[20].mxu0 }
 0x120   :  { %v506_v24 = vpop.f32.mrb[21].mxu0 }
 0x121   :  { %v507_v25 = vadd.f32 %v506_v24, %v505_v23  ;;  %v618_v26 = vpack.c.bf16 %v284_v22, %v279_v21 }
 0x123   :  { %v508_v27 = vpop.f32.mrb[22].mxu0  ;;  %619 = vmatprep.subr.bf16.mxu1 %v618_v26  ;;  %v289_v32 = vadd.f32 %v507_v25, %v150_v30 }
 0x124   :  { %v509_v28 = vpop.f32.mrb[23].mxu0  ;;  %621 = vmatpush3.bf16.msra.mxu1 %v618_v26 }
 0x125   :  { %v510_v29 = vadd.f32 %v509_v28, %v508_v27 }
 0x127   :  { %v294_v33 = vadd.f32 %v510_v29, %v155_v31  ;;  %v511_v34 = vpop.f32.mrb[24].mxu0 }
 0x128   :  { %v512_v35 = vpop.f32.mrb[25].mxu0 }
 0x129   :  { %v513_v36 = vadd.f32 %v512_v35, %v511_v34  ;;  %v622_v37 = vpack.c.bf16 %v294_v33, %v289_v32 }
 0x12b   :  { %v514_v38 = vpop.f32.mrb[26].mxu0  ;;  %623 = vmatprep.subr.bf16.mxu1 %v622_v37  ;;  %v299_v43 = vadd.f32 %v513_v36, %v160_v39 }
 0x12c   :  { %v515_v40 = vpop.f32.mrb[27].mxu0  ;;  %625 = vmatpush3.bf16.msra.mxu1 %v622_v37 }
 0x12d   :  { %v516_v41 = vadd.f32 %v515_v40, %v514_v38 }
 0x12f   :  { %v304_v44 = vadd.f32 %v516_v41, %v165_v42  ;;  %v517_v45 = vpop.f32.mrb[28].mxu0 }
 0x130   :  { %v518_v46 = vpop.f32.mrb[29].mxu0 }
 0x131   :  { %v519_v47 = vadd.f32 %v518_v46, %v517_v45  ;;  %v626_v48 = vpack.c.bf16 %v304_v44, %v299_v43 }
 0x133   :  { %v309_v50 = vadd.f32 %v519_v47, %v170_v49  ;;  %627 = vmatprep.subr.bf16.mxu1 %v626_v48 }
 0x134   :  { %629 = vmatpush3.bf16.msra.mxu1 %v626_v48 }
 0x135   :  { %565 = vmatprep.subr.mxu1 %v309_v50 }
 0x138   :  { %566 = vmatpush3.msra.mxu1 %v309_v50 }
 0x139   :  { %568 = vmatmul.mubr.msk.f32.vlgmr.msra.gmra.mrb[0].mxu1 %vm326_vm0, %v313_v51 }
 0x20c   :  { %v569_v53 = vpop.f32.mrb[0].mxu1 }
 0x20d   :  { %v405_v55 = vadd.f32 %v569_v53, %v324_v52  ;;  %v399_v56 = vpop.f32.mrb[1].mxu1 }
 0x20e   :  { %v400_v57 = vadd.f32 %v399_v56, %v319_v54 }
 0x20f   :  { %v409_v58 = vsel %vm408_vm1, %v405_v55, -inf }
 0x210   :  { %v410_v59 = vmax.f32 %v400_v57, %v409_v58 }
 0x212   :  { %v411_v60 = vrot.slane %v410_v59, 4 }
 0x214   :  { %v412_v61 = vmax.f32 %v410_v59, %v411_v60 }
 0x216   :  { %v413_v62 = vrot.slane %v412_v61, 2 }
 0x218   :  { %v414_v63 = vmax.f32 %v412_v61, %v413_v62 }
 0x21a   :  { %v415_v0 = vrot.slane %v414_v63, 1 }
 0x21c   :  { %v416_v1 = vmax.f32 %v414_v63, %v415_v0 }
 0x21e   :  { %v417_v2 = vsub.f32 %v400_v57, %v416_v1  ;;  %v418_v3 = vsub.f32 %v405_v55, %v416_v1 }
 0x220   :  { %v419_v4 = vmul.f32 1.442695, %v417_v2  ;;  %v421_v5 = vmul.f32 1.442695, %v418_v3 }
 0x222   :  { %633 = vpow2.f32 %v419_v4 }
 0x223   :  { %635 = vpow2.f32 %v421_v5 }
 0x22c   :  { %v634_v6 = vpop.eup %633 }
 0x22d   :  { %v636_v7 = vpop.eup %635 }
 0x22e   :  { %v423_v8 = vsel %vm408_vm1, %v636_v7, 0.0 }
 0x22f   :  { %v424_v9 = vadd.f32 %v634_v6, %v423_v8 }
 0x231   :  { %v425_v10 = vrot.slane %v424_v9, 4 }
 0x233   :  { %v426_v11 = vadd.f32 %v425_v10, %v424_v9 }
 0x235   :  { %v427_v12 = vrot.slane %v426_v11, 2 }
 0x237   :  { %v428_v13 = vadd.f32 %v427_v12, %v426_v11 }
 0x239   :  { %v429_v14 = vrot.slane %v428_v13, 1 }
 0x23b   :  { %v430_v15 = vadd.f32 %v429_v14, %v428_v13 }
 0x23d   :  { %637 = vlog2.f32 %v430_v15 }
 0x247   :  { %v638_v16 = vpop.eup %637 }
 0x248   :  { %v432_v17 = vmul.f32 0.6931472, %v638_v16 }
 0x24a   :  { %v433_v18 = vsub.f32 %v417_v2, %v432_v17  ;;  %v434_v19 = vsub.f32 %v418_v3, %v432_v17 }
 0x24c   :  { %435 = vst [vmem:[%s928_s5] sm:$0xff] %v433_v18  ;;  %436 = vst [vmem:[%s928_s5 + $0x8] sm:$0xf] %v434_v19 }

</bundles_post_ra>
